<compile_context>
chip_gen: v7x
topology: tpu7x:2x2x1
jax: 0.10.0
libtpu: 0.0.40
codegen_flags: <defaults>
</compile_context>

<pallas_src>
import jax
import jax.numpy as jnp
from jax.experimental import pallas as pl
from jax.experimental.pallas import tpu as pltpu


def _make_kernel(Bp, T, I, H, L):
    H2, H4, H6 = 2 * H, 4 * H, 6 * H

    def kernel(*refs):
        if L > 1:
            (x_ref, w1_ref, b1_ref, w2_ref, b2_ref, wih0_ref,
             wihA_ref, wihB_ref, gib_ref, whh_ref, bhh_ref,
             w3_ref, b3_ref, w4_ref, b4_ref, out_ref,
             proj_a, proj_b, outs_ref) = refs
        else:
            (x_ref, w1_ref, b1_ref, w2_ref, b2_ref, wih0_ref,
             gib_ref, whh_ref, bhh_ref,
             w3_ref, b3_ref, w4_ref, b4_ref, out_ref,
             proj_a) = refs
            wihA_ref = wihB_ref = proj_b = outs_ref = None

        # Lane layout of every 6H-wide tensor: [r_fwd|r_bwd|z_fwd|z_bwd|n_fwd|n_bwd].
        # Within each per-gate 2H block, lanes [:H] belong to the forward stream
        # (time s) and lanes [H:] to the backward stream (time T-1-s).
        fwd_mask = (jax.lax.broadcasted_iota(jnp.int32, (Bp, H6), 1) % H2) < H

        def run_layer(whh_l, bhh_l, two_proj, write_outs):
            # Fused bidirectional recurrence: one (Bp,2H)@(2H,6H) matmul/step.
            def body(s, h):
                fo = pl.multiple_of(s * Bp, Bp)
                bo = pl.multiple_of((T - 1 - s) * Bp, Bp)
                gi = jnp.where(fwd_mask,
                               proj_a[pl.ds(fo, Bp), :],
                               proj_a[pl.ds(bo, Bp), :])
                if two_proj:
                    gi = gi + jnp.where(fwd_mask,
                                        proj_b[pl.ds(bo, Bp), :],
                                        proj_b[pl.ds(fo, Bp), :])
                gh = jnp.dot(h, whh_l,
                             preferred_element_type=jnp.float32) + bhh_l
                rz = jax.nn.sigmoid(gi[:, :H4] + gh[:, :H4])
                r = rz[:, :H2]
                z = rz[:, H2:]
                n = jnp.tanh(gi[:, H4:] + r * gh[:, H4:])
                h_new = (1.0 - z) * n + z * h
                if write_outs:
                    outs_ref[pl.ds(fo, Bp), :] = h_new
                return h_new

            return jax.lax.fori_loop(0, T, body,
                                     jnp.zeros((Bp, H2), jnp.float32),
                                     unroll=True)

        # linear1 -> linear2, batched over all T*Bp rows (2 matmuls total).
        seq = jnp.dot(x_ref[...], w1_ref[...],
                      preferred_element_type=jnp.float32) + b1_ref[...]
        seq = jnp.dot(seq, w2_ref[...],
                      preferred_element_type=jnp.float32) + b2_ref[...]
        # seq: (T*Bp, I), forward time order (t-major, batch-minor rows).

        z3 = None
        for l in range(L):
            if l == 0:
                # Dense (I, 6H) weight: fwd/bwd columns side by side, no zeros.
                proj_a[...] = (jnp.dot(seq, wih0_ref[...],
                                       preferred_element_type=jnp.float32)
                               + gib_ref[0])
                two_proj = False
            else:
                # Previous layer outputs, row-block s = [fwd(s) | bwd(T-1-s)].
                prev = outs_ref[...]
                # Two dense half-input projections (no structural zeros):
                #   PA from the fwd half, PB from the bwd half of prev.
                proj_a[...] = (jnp.dot(prev[:, :H], wihA_ref[l - 1],
                                       preferred_element_type=jnp.float32)
                               + gib_ref[l])
                proj_b[...] = jnp.dot(prev[:, H:], wihB_ref[l - 1],
                                      preferred_element_type=jnp.float32)
                two_proj = True

            h = run_layer(whh_ref[l], bhh_ref[l], two_proj,
                          write_outs=(l < L - 1))

            # h: (Bp, 2H) = [fwd final | bwd final] of this layer -> feed the
            # matching chunk of linear3 directly (no h_n concat).
            contrib = jnp.dot(h, w3_ref[l], preferred_element_type=jnp.float32)
            z3 = contrib if z3 is None else z3 + contrib

        z3 = jnp.maximum(z3 + b3_ref[...], 0.0)          # relu(linear3)
        out = jnp.dot(z3, w4_ref[...],
                      preferred_element_type=jnp.float32) + b4_ref[...]
        out_ref[...] = out.astype(out_ref.dtype)

    return kernel


def bigru_forward(x, packed, hidden_size, num_layers):
    B, T, I = x.shape
    H = hidden_size
    Bp = max(8, ((B + 7) // 8) * 8)                      # f32 sublane padding
    x_pad = jnp.zeros((Bp, T, I), x.dtype).at[:B].set(x)
    # t-major, batch-minor rows so each timestep is a contiguous row block.
    x_flat = jnp.transpose(x_pad, (1, 0, 2)).reshape(T * Bp, I)

    inputs = [x_flat] + list(packed)
    kernel = _make_kernel(Bp, T, I, H, num_layers)

    scratch = [pltpu.VMEM((T * Bp, 6 * H), jnp.float32)]          # proj_a
    if num_layers > 1:
        scratch += [pltpu.VMEM((T * Bp, 6 * H), jnp.float32),     # proj_b
                    pltpu.VMEM((T * Bp, 2 * H), jnp.float32)]     # layer outputs

    out = pl.pallas_call(
        kernel,
        out_shape=jax.ShapeDtypeStruct((Bp, 1), jnp.float32),
        in_specs=[pl.BlockSpec(memory_space=pltpu.MemorySpace.VMEM)] * len(inputs),
        out_specs=pl.BlockSpec(memory_space=pltpu.MemorySpace.VMEM),
        scratch_shapes=scratch,
    )(*inputs)
    return out[:B]


def init_raw_params(key, input_size, hidden_size, num_layers):
    """PyTorch-like uniform(-1/sqrt(fan_in), +) init, weights pre-transposed."""
    I, H, L = input_size, hidden_size, num_layers
    keys = iter(jax.random.split(key, 8 + L * 2 * 4))

    def u(shape, fan_in):
        bound = 1.0 / (float(fan_in) ** 0.5)
        return jax.random.uniform(next(keys), shape, jnp.float32, -bound, bound)

    gru = []
    for l in range(L):
        in_dim = I if l == 0 else 2 * H
        for _d in range(2):                 # directions: forward, backward
            gru.append(dict(
                wih_t=u((in_dim, 3 * H), H),   # gates (r, z, n) along columns
                whh_t=u((H, 3 * H), H),
                bih=u((1, 3 * H), H),
                bhh=u((1, 3 * H), H)))
    return dict(
        w1t=u((I, I), I), b1=u((1, I), I),
        w2t=u((I, I), I), b2=u((1, I), I),
        gru=gru,
        w3t=u((L * 2 * H, H), L * 2 * H), b3=u((1, H), L * 2 * H),
        w4t=u((H, 1), H), b4=u((1, 1), H))


def pack_params(raw, input_size, hidden_size, num_layers):
    """Host-side packing into a few contiguous, kernel-friendly arrays.

    6H lane layout everywhere: [r_fwd|r_bwd|z_fwd|z_bwd|n_fwd|n_bwd].
    """
    I, H, L = input_size, hidden_size, num_layers
    H2 = 2 * H

    def gate(mat_t, g):   # (in, 3H) -> (in, H), gate order r, z, n
        return mat_t[:, g * H:(g + 1) * H]

    def bgate(vec, g):    # (1, 3H) -> (1, H)
        return vec[:, g * H:(g + 1) * H]

    zh = jnp.zeros((H, H), jnp.float32)
    wih0 = None
    wihA, wihB = [], []
    whh_all, gib, bhh6 = [], [], []

    for l in range(L):
        fwd = raw["gru"][2 * l + 0]
        bwd = raw["gru"][2 * l + 1]
        cols0, colsA, colsB = [], [], []
        cols_whh, cols_bias, cols_bhh = [], [], []
        for g in range(3):
            # --- fused recurrent weight: per-gate block-diag over directions
            wfh = gate(fwd["whh_t"], g)             # (H, H)
            wbh = gate(bwd["whh_t"], g)
            cols_whh.append(jnp.concatenate(
                [jnp.concatenate([wfh, zh], axis=1),
                 jnp.concatenate([zh, wbh], axis=1)], axis=0))      # (2H, 2H)
            # --- dense input-projection weights (no structural zeros)
            wfi = gate(fwd["wih_t"], g)             # (in_dim, H)
            wbi = gate(bwd["wih_t"], g)
            if l == 0:
                cols0.append(jnp.concatenate([wfi, wbi], axis=1))   # (I, 2H)
            else:
                # top H rows multiply the fwd-output half, bottom H rows the
                # bwd-output half of the previous layer's input.
                colsA.append(jnp.concatenate([wfi[:H], wbi[:H]], axis=1))  # (H,2H)
                colsB.append(jnp.concatenate([wfi[H:], wbi[H:]], axis=1))  # (H,2H)
            # --- folded input-side bias: bih+bhh for r,z; bih only for n
            if g < 2:
                bf = bgate(fwd["bih"], g) + bgate(fwd["bhh"], g)
                bb = bgate(bwd["bih"], g) + bgate(bwd["bhh"], g)
                cols_bhh.append(jnp.zeros((1, H2), jnp.float32))
            else:
                bf = bgate(fwd["bih"], g)
                bb = bgate(bwd["bih"], g)
                cols_bhh.append(jnp.concatenate(
                    [bgate(fwd["bhh"], 2), bgate(bwd["bhh"], 2)], axis=1))
            cols_bias.append(jnp.concatenate([bf, bb], axis=1))     # (1, 2H)

        whh_all.append(jnp.concatenate(cols_whh, axis=1))   # (2H, 6H)
        gib.append(jnp.concatenate(cols_bias, axis=1))      # (1, 6H)
        bhh6.append(jnp.concatenate(cols_bhh, axis=1))      # (1, 6H)
        if l == 0:
            wih0 = jnp.concatenate(cols0, axis=1)            # (I, 6H)
        else:
            wihA.append(jnp.concatenate(colsA, axis=1))      # (H, 6H)
            wihB.append(jnp.concatenate(colsB, axis=1))      # (H, 6H)

    packed = [raw["w1t"], raw["b1"], raw["w2t"], raw["b2"], wih0]
    if L > 1:
        packed += [jnp.stack(wihA, axis=0),                  # (L-1, H, 6H)
                   jnp.stack(wihB, axis=0)]                  # (L-1, H, 6H)
    packed += [
        jnp.stack(gib, axis=0),                              # (L, 1, 6H)
        jnp.stack(whh_all, axis=0),                          # (L, 2H, 6H)
        jnp.stack(bhh6, axis=0),                             # (L, 1, 6H)
        raw["w3t"].reshape(L, H2, H),                        # per-layer W3 chunks
        raw["b3"], raw["w4t"], raw["b4"],
    ]
    return packed


if __name__ == "__main__":
    B, T = 2, 8                         # batch, sequence length
    INPUT_SIZE, HIDDEN, LAYERS = 16, 32, 2

    key = jax.random.PRNGKey(0)
    kx, kp = jax.random.split(key)
    x = jax.random.normal(kx, (B, T, INPUT_SIZE), jnp.float32)
    raw = init_raw_params(kp, INPUT_SIZE, HIDDEN, LAYERS)
    packed = pack_params(raw, INPUT_SIZE, HIDDEN, LAYERS)

    out = bigru_forward(x, packed, HIDDEN, LAYERS)
    out = jax.block_until_ready(out)
    assert out.shape == (B, 1) and out.dtype == jnp.float32
    print("KERNEL_OK")
</pallas_src>

<mosaic_0001>
module attributes {stable_mosaic.version = 11 : i64} {
  func.func @kernel(%arg0: memref<64x16xf32, #tpu.memory_space<vmem>>, %arg1: memref<16x16xf32, #tpu.memory_space<vmem>>, %arg2: memref<1x16xf32, #tpu.memory_space<vmem>>, %arg3: memref<16x16xf32, #tpu.memory_space<vmem>>, %arg4: memref<1x16xf32, #tpu.memory_space<vmem>>, %arg5: memref<16x192xf32, #tpu.memory_space<vmem>>, %arg6: memref<1x32x192xf32, #tpu.memory_space<vmem>>, %arg7: memref<1x32x192xf32, #tpu.memory_space<vmem>>, %arg8: memref<2x1x192xf32, #tpu.memory_space<vmem>>, %arg9: memref<2x64x192xf32, #tpu.memory_space<vmem>>, %arg10: memref<2x1x192xf32, #tpu.memory_space<vmem>>, %arg11: memref<2x64x32xf32, #tpu.memory_space<vmem>>, %arg12: memref<1x32xf32, #tpu.memory_space<vmem>>, %arg13: memref<32x1xf32, #tpu.memory_space<vmem>>, %arg14: memref<1x1xf32, #tpu.memory_space<vmem>>, %arg15: memref<8x1xf32, #tpu.memory_space<vmem>>, %arg16: memref<64x192xf32, #tpu.memory_space<vmem>>, %arg17: memref<64x192xf32, #tpu.memory_space<vmem>>, %arg18: memref<64x64xf32, #tpu.memory_space<vmem>>) attributes {dimension_semantics = [], scalar_prefetch = 0 : i64, scratch_operands = 3 : i64, tpu.core_type = #tpu.core_type<tc>} {
    %0 = tpu.iota {dimensions = array<i32: 1>} : vector<8x192xi32>
    %c64_i32 = arith.constant 64 : i32
    %c0_i32 = arith.constant 0 : i32
    %1 = arith.cmpi eq, %c64_i32, %c0_i32 : i32
    %c1_i32 = arith.constant 1 : i32
    %2 = arith.select %1, %c1_i32, %c64_i32 : i32
    %3 = vector.broadcast %2 : i32 to vector<8x192xi32>
    %4 = arith.remsi %0, %3 : vector<8x192xi32>
    %c0_i32_0 = arith.constant 0 : i32
    %5 = vector.broadcast %c0_i32_0 : i32 to vector<8x192xi32>
    %6 = arith.cmpi ne, %4, %5 : vector<8x192xi32>
    %c0_i32_1 = arith.constant 0 : i32
    %7 = vector.broadcast %c0_i32_1 : i32 to vector<8x192xi32>
    %8 = arith.cmpi slt, %4, %7 : vector<8x192xi32>
    %c0_i32_2 = arith.constant 0 : i32
    %9 = arith.cmpi slt, %2, %c0_i32_2 : i32
    %10 = vector.broadcast %9 : i1 to vector<8x192xi1>
    %11 = vector.broadcast %10 : vector<8x192xi1> to vector<8x192xi1>
    %12 = arith.xori %8, %11 : vector<8x192xi1>
    %13 = arith.andi %12, %6 : vector<8x192xi1>
    %14 = vector.broadcast %2 : i32 to vector<8x192xi32>
    %15 = arith.addi %4, %14 : vector<8x192xi32>
    %16 = arith.select %13, %15, %4 : vector<8x192xi1>, vector<8x192xi32>
    %c32_i32 = arith.constant 32 : i32
    %17 = vector.broadcast %c32_i32 : i32 to vector<8x192xi32>
    %18 = arith.cmpi slt, %16, %17 : vector<8x192xi32>
    %c0 = arith.constant 0 : index
    %c0_3 = arith.constant 0 : index
    %19 = vector.load %arg0[%c0, %c0_3] : memref<64x16xf32, #tpu.memory_space<vmem>>, vector<64x16xf32>
    %c0_4 = arith.constant 0 : index
    %c0_5 = arith.constant 0 : index
    %20 = vector.load %arg1[%c0_4, %c0_5] : memref<16x16xf32, #tpu.memory_space<vmem>>, vector<16x16xf32>
    %cst = arith.constant dense<0.000000e+00> : vector<64x16xf32>
    %21 = tpu.matmul %19, %20, %cst {dimension_numbers = #tpu.dot_dimension_numbers<[1], [0], [0], [1], [0, 0, 1, 1], [], []>} : vector<64x16xf32>, vector<16x16xf32>, vector<64x16xf32> -> vector<64x16xf32>
    %c0_6 = arith.constant 0 : index
    %c0_7 = arith.constant 0 : index
    %22 = vector.load %arg2[%c0_6, %c0_7] : memref<1x16xf32, #tpu.memory_space<vmem>>, vector<1x16xf32>
    %23 = vector.broadcast %22 : vector<1x16xf32> to vector<64x16xf32>
    %24 = arith.addf %21, %23 : vector<64x16xf32>
    %c0_8 = arith.constant 0 : index
    %c0_9 = arith.constant 0 : index
    %25 = vector.load %arg3[%c0_8, %c0_9] : memref<16x16xf32, #tpu.memory_space<vmem>>, vector<16x16xf32>
    %cst_10 = arith.constant dense<0.000000e+00> : vector<64x16xf32>
    %26 = tpu.matmul %24, %25, %cst_10 {dimension_numbers = #tpu.dot_dimension_numbers<[1], [0], [0], [1], [0, 0, 1, 1], [], []>} : vector<64x16xf32>, vector<16x16xf32>, vector<64x16xf32> -> vector<64x16xf32>
    %c0_11 = arith.constant 0 : index
    %c0_12 = arith.constant 0 : index
    %27 = vector.load %arg4[%c0_11, %c0_12] : memref<1x16xf32, #tpu.memory_space<vmem>>, vector<1x16xf32>
    %28 = vector.broadcast %27 : vector<1x16xf32> to vector<64x16xf32>
    %29 = arith.addf %26, %28 : vector<64x16xf32>
    %c0_13 = arith.constant 0 : index
    %c0_14 = arith.constant 0 : index
    %30 = vector.load %arg5[%c0_13, %c0_14] : memref<16x192xf32, #tpu.memory_space<vmem>>, vector<16x192xf32>
    %cst_15 = arith.constant dense<0.000000e+00> : vector<64x192xf32>
    %31 = tpu.matmul %29, %30, %cst_15 {dimension_numbers = #tpu.dot_dimension_numbers<[1], [0], [0], [1], [0, 0, 1, 1], [], []>} : vector<64x16xf32>, vector<16x192xf32>, vector<64x192xf32> -> vector<64x192xf32>
    %c0_16 = arith.constant 0 : index
    %c0_17 = arith.constant 0 : index
    %c0_18 = arith.constant 0 : index
    %32 = vector.load %arg8[%c0_16, %c0_17, %c0_18] : memref<2x1x192xf32, #tpu.memory_space<vmem>>, vector<1x1x192xf32>
    %33 = vector.shape_cast %32 : vector<1x1x192xf32> to vector<1x192xf32>
    %34 = vector.broadcast %33 : vector<1x192xf32> to vector<64x192xf32>
    %35 = arith.addf %31, %34 : vector<64x192xf32>
    %c0_19 = arith.constant 0 : index
    %c0_20 = arith.constant 0 : index
    %36 = vector.load %arg16[%c0_19, %c0_20] : memref<64x192xf32, #tpu.memory_space<vmem>>, vector<64x192xf32>
    tpu.vector_store %arg16[%c0_19, %c0_20], %35 {strides = array<i32>} : memref<64x192xf32, #tpu.memory_space<vmem>>, vector<64x192xf32>,
    %c0_21 = arith.constant 0 : index
    %c0_22 = arith.constant 0 : index
    %c0_23 = arith.constant 0 : index
    %37 = vector.load %arg9[%c0_21, %c0_22, %c0_23] : memref<2x64x192xf32, #tpu.memory_space<vmem>>, vector<1x64x192xf32>
    %38 = vector.shape_cast %37 : vector<1x64x192xf32> to vector<64x192xf32>
    %c0_24 = arith.constant 0 : index
    %c0_25 = arith.constant 0 : index
    %c0_26 = arith.constant 0 : index
    %39 = vector.load %arg10[%c0_24, %c0_25, %c0_26] : memref<2x1x192xf32, #tpu.memory_space<vmem>>, vector<1x1x192xf32>
    %40 = vector.shape_cast %39 : vector<1x1x192xf32> to vector<1x192xf32>
    %cst_27 = arith.constant 0.000000e+00 : f32
    %41 = vector.broadcast %cst_27 : f32 to vector<8x64xf32>
    %c0_i32_28 = arith.constant 0 : i32
    %c8_i32 = arith.constant 8 : i32
    %42 = arith.muli %c0_i32_28, %c8_i32 : i32
    %43 = tpu.assume_multiple %42, 8 : i32
    %c7_i32 = arith.constant 7 : i32
    %44 = arith.subi %c7_i32, %c0_i32_28 : i32
    %c8_i32_29 = arith.constant 8 : i32
    %45 = arith.muli %44, %c8_i32_29 : i32
    %46 = tpu.assume_multiple %45, 8 : i32
    %47 = arith.index_cast %43 : i32 to index
    %c0_30 = arith.constant 0 : index
    %48 = vector.load %arg16[%47, %c0_30] : memref<64x192xf32, #tpu.memory_space<vmem>>, vector<8x192xf32>
    %49 = arith.index_cast %46 : i32 to index
    %c0_31 = arith.constant 0 : index
    %50 = vector.load %arg16[%49, %c0_31] : memref<64x192xf32, #tpu.memory_space<vmem>>, vector<8x192xf32>
    %51 = arith.select %18, %48, %50 : vector<8x192xi1>, vector<8x192xf32>
    %cst_32 = arith.constant dense<0.000000e+00> : vector<8x192xf32>
    %52 = tpu.matmul %41, %38, %cst_32 {dimension_numbers = #tpu.dot_dimension_numbers<[1], [0], [0], [1], [0, 0, 1, 1], [], []>} : vector<8x64xf32>, vector<64x192xf32>, vector<8x192xf32> -> vector<8x192xf32>
    %53 = vector.broadcast %40 : vector<1x192xf32> to vector<8x192xf32>
    %54 = arith.addf %52, %53 : vector<8x192xf32>
    %55 = vector.extract_strided_slice %51 {offsets = [0, 0], sizes = [8, 128], strides = [1, 1]} : vector<8x192xf32> to vector<8x128xf32>
    %56 = vector.extract_strided_slice %54 {offsets = [0, 0], sizes = [8, 128], strides = [1, 1]} : vector<8x192xf32> to vector<8x128xf32>
    %57 = arith.addf %55, %56 : vector<8x128xf32>
    %58 = arith.negf %57 : vector<8x128xf32>
    %59 = math.exp %58 : vector<8x128xf32>
    %cst_33 = arith.constant 1.000000e+00 : f32
    %60 = vector.broadcast %cst_33 : f32 to vector<8x128xf32>
    %61 = arith.addf %60, %59 : vector<8x128xf32>
    %62 = arith.divf %60, %61 : vector<8x128xf32>
    %63 = vector.extract_strided_slice %62 {offsets = [0, 0], sizes = [8, 64], strides = [1, 1]} : vector<8x128xf32> to vector<8x64xf32>
    %64 = vector.extract_strided_slice %62 {offsets = [0, 64], sizes = [8, 64], strides = [1, 1]} : vector<8x128xf32> to vector<8x64xf32>
    %65 = vector.extract_strided_slice %51 {offsets = [0, 128], sizes = [8, 64], strides = [1, 1]} : vector<8x192xf32> to vector<8x64xf32>
    %66 = vector.extract_strided_slice %54 {offsets = [0, 128], sizes = [8, 64], strides = [1, 1]} : vector<8x192xf32> to vector<8x64xf32>
    %67 = arith.mulf %63, %66 : vector<8x64xf32>
    %68 = arith.addf %65, %67 : vector<8x64xf32>
    %69 = math.tanh %68 : vector<8x64xf32>
    %cst_34 = arith.constant 1.000000e+00 : f32
    %70 = vector.broadcast %cst_34 : f32 to vector<8x64xf32>
    %71 = arith.subf %70, %64 : vector<8x64xf32>
    %72 = arith.mulf %71, %69 : vector<8x64xf32>
    %73 = arith.mulf %64, %41 : vector<8x64xf32>
    %74 = arith.addf %72, %73 : vector<8x64xf32>
    %75 = arith.index_cast %43 : i32 to index
    %c0_35 = arith.constant 0 : index
    %76 = vector.load %arg18[%75, %c0_35] : memref<64x64xf32, #tpu.memory_space<vmem>>, vector<8x64xf32>
    tpu.vector_store %arg18[%75, %c0_35], %74 {strides = array<i32>} : memref<64x64xf32, #tpu.memory_space<vmem>>, vector<8x64xf32>,
    %c1_i32_36 = arith.constant 1 : i32
    %c8_i32_37 = arith.constant 8 : i32
    %77 = arith.muli %c1_i32_36, %c8_i32_37 : i32
    %78 = tpu.assume_multiple %77, 8 : i32
    %c7_i32_38 = arith.constant 7 : i32
    %79 = arith.subi %c7_i32_38, %c1_i32_36 : i32
    %c8_i32_39 = arith.constant 8 : i32
    %80 = arith.muli %79, %c8_i32_39 : i32
    %81 = tpu.assume_multiple %80, 8 : i32
    %82 = arith.index_cast %78 : i32 to index
    %c0_40 = arith.constant 0 : index
    %83 = vector.load %arg16[%82, %c0_40] : memref<64x192xf32, #tpu.memory_space<vmem>>, vector<8x192xf32>
    %84 = arith.index_cast %81 : i32 to index
    %c0_41 = arith.constant 0 : index
    %85 = vector.load %arg16[%84, %c0_41] : memref<64x192xf32, #tpu.memory_space<vmem>>, vector<8x192xf32>
    %86 = arith.select %18, %83, %85 : vector<8x192xi1>, vector<8x192xf32>
    %cst_42 = arith.constant dense<0.000000e+00> : vector<8x192xf32>
    %87 = tpu.matmul %74, %38, %cst_42 {dimension_numbers = #tpu.dot_dimension_numbers<[1], [0], [0], [1], [0, 0, 1, 1], [], []>} : vector<8x64xf32>, vector<64x192xf32>, vector<8x192xf32> -> vector<8x192xf32>
    %88 = vector.broadcast %40 : vector<1x192xf32> to vector<8x192xf32>
    %89 = arith.addf %87, %88 : vector<8x192xf32>
    %90 = vector.extract_strided_slice %86 {offsets = [0, 0], sizes = [8, 128], strides = [1, 1]} : vector<8x192xf32> to vector<8x128xf32>
    %91 = vector.extract_strided_slice %89 {offsets = [0, 0], sizes = [8, 128], strides = [1, 1]} : vector<8x192xf32> to vector<8x128xf32>
    %92 = arith.addf %90, %91 : vector<8x128xf32>
    %93 = arith.negf %92 : vector<8x128xf32>
    %94 = math.exp %93 : vector<8x128xf32>
    %cst_43 = arith.constant 1.000000e+00 : f32
    %95 = vector.broadcast %cst_43 : f32 to vector<8x128xf32>
    %96 = arith.addf %95, %94 : vector<8x128xf32>
    %97 = arith.divf %95, %96 : vector<8x128xf32>
    %98 = vector.extract_strided_slice %97 {offsets = [0, 0], sizes = [8, 64], strides = [1, 1]} : vector<8x128xf32> to vector<8x64xf32>
    %99 = vector.extract_strided_slice %97 {offsets = [0, 64], sizes = [8, 64], strides = [1, 1]} : vector<8x128xf32> to vector<8x64xf32>
    %100 = vector.extract_strided_slice %86 {offsets = [0, 128], sizes = [8, 64], strides = [1, 1]} : vector<8x192xf32> to vector<8x64xf32>
    %101 = vector.extract_strided_slice %89 {offsets = [0, 128], sizes = [8, 64], strides = [1, 1]} : vector<8x192xf32> to vector<8x64xf32>
    %102 = arith.mulf %98, %101 : vector<8x64xf32>
    %103 = arith.addf %100, %102 : vector<8x64xf32>
    %104 = math.tanh %103 : vector<8x64xf32>
    %cst_44 = arith.constant 1.000000e+00 : f32
    %105 = vector.broadcast %cst_44 : f32 to vector<8x64xf32>
    %106 = arith.subf %105, %99 : vector<8x64xf32>
    %107 = arith.mulf %106, %104 : vector<8x64xf32>
    %108 = arith.mulf %99, %74 : vector<8x64xf32>
    %109 = arith.addf %107, %108 : vector<8x64xf32>
    %110 = arith.index_cast %78 : i32 to index
    %c0_45 = arith.constant 0 : index
    %111 = vector.load %arg18[%110, %c0_45] : memref<64x64xf32, #tpu.memory_space<vmem>>, vector<8x64xf32>
    tpu.vector_store %arg18[%110, %c0_45], %109 {strides = array<i32>} : memref<64x64xf32, #tpu.memory_space<vmem>>, vector<8x64xf32>,
    %c2_i32 = arith.constant 2 : i32
    %c8_i32_46 = arith.constant 8 : i32
    %112 = arith.muli %c2_i32, %c8_i32_46 : i32
    %113 = tpu.assume_multiple %112, 8 : i32
    %c7_i32_47 = arith.constant 7 : i32
    %114 = arith.subi %c7_i32_47, %c2_i32 : i32
    %c8_i32_48 = arith.constant 8 : i32
    %115 = arith.muli %114, %c8_i32_48 : i32
    %116 = tpu.assume_multiple %115, 8 : i32
    %117 = arith.index_cast %113 : i32 to index
    %c0_49 = arith.constant 0 : index
    %118 = vector.load %arg16[%117, %c0_49] : memref<64x192xf32, #tpu.memory_space<vmem>>, vector<8x192xf32>
    %119 = arith.index_cast %116 : i32 to index
    %c0_50 = arith.constant 0 : index
    %120 = vector.load %arg16[%119, %c0_50] : memref<64x192xf32, #tpu.memory_space<vmem>>, vector<8x192xf32>
    %121 = arith.select %18, %118, %120 : vector<8x192xi1>, vector<8x192xf32>
    %cst_51 = arith.constant dense<0.000000e+00> : vector<8x192xf32>
    %122 = tpu.matmul %109, %38, %cst_51 {dimension_numbers = #tpu.dot_dimension_numbers<[1], [0], [0], [1], [0, 0, 1, 1], [], []>} : vector<8x64xf32>, vector<64x192xf32>, vector<8x192xf32> -> vector<8x192xf32>
    %123 = vector.broadcast %40 : vector<1x192xf32> to vector<8x192xf32>
    %124 = arith.addf %122, %123 : vector<8x192xf32>
    %125 = vector.extract_strided_slice %121 {offsets = [0, 0], sizes = [8, 128], strides = [1, 1]} : vector<8x192xf32> to vector<8x128xf32>
    %126 = vector.extract_strided_slice %124 {offsets = [0, 0], sizes = [8, 128], strides = [1, 1]} : vector<8x192xf32> to vector<8x128xf32>
    %127 = arith.addf %125, %126 : vector<8x128xf32>
    %128 = arith.negf %127 : vector<8x128xf32>
    %129 = math.exp %128 : vector<8x128xf32>
    %cst_52 = arith.constant 1.000000e+00 : f32
    %130 = vector.broadcast %cst_52 : f32 to vector<8x128xf32>
    %131 = arith.addf %130, %129 : vector<8x128xf32>
    %132 = arith.divf %130, %131 : vector<8x128xf32>
    %133 = vector.extract_strided_slice %132 {offsets = [0, 0], sizes = [8, 64], strides = [1, 1]} : vector<8x128xf32> to vector<8x64xf32>
    %134 = vector.extract_strided_slice %132 {offsets = [0, 64], sizes = [8, 64], strides = [1, 1]} : vector<8x128xf32> to vector<8x64xf32>
    %135 = vector.extract_strided_slice %121 {offsets = [0, 128], sizes = [8, 64], strides = [1, 1]} : vector<8x192xf32> to vector<8x64xf32>
    %136 = vector.extract_strided_slice %124 {offsets = [0, 128], sizes = [8, 64], strides = [1, 1]} : vector<8x192xf32> to vector<8x64xf32>
    %137 = arith.mulf %133, %136 : vector<8x64xf32>
    %138 = arith.addf %135, %137 : vector<8x64xf32>
    %139 = math.tanh %138 : vector<8x64xf32>
    %cst_53 = arith.constant 1.000000e+00 : f32
    %140 = vector.broadcast %cst_53 : f32 to vector<8x64xf32>
    %141 = arith.subf %140, %134 : vector<8x64xf32>
    %142 = arith.mulf %141, %139 : vector<8x64xf32>
    %143 = arith.mulf %134, %109 : vector<8x64xf32>
    %144 = arith.addf %142, %143 : vector<8x64xf32>
    %145 = arith.index_cast %113 : i32 to index
    %c0_54 = arith.constant 0 : index
    %146 = vector.load %arg18[%145, %c0_54] : memref<64x64xf32, #tpu.memory_space<vmem>>, vector<8x64xf32>
    tpu.vector_store %arg18[%145, %c0_54], %144 {strides = array<i32>} : memref<64x64xf32, #tpu.memory_space<vmem>>, vector<8x64xf32>,
    %c3_i32 = arith.constant 3 : i32
    %c8_i32_55 = arith.constant 8 : i32
    %147 = arith.muli %c3_i32, %c8_i32_55 : i32
    %148 = tpu.assume_multiple %147, 8 : i32
    %c7_i32_56 = arith.constant 7 : i32
    %149 = arith.subi %c7_i32_56, %c3_i32 : i32
    %c8_i32_57 = arith.constant 8 : i32
    %150 = arith.muli %149, %c8_i32_57 : i32
    %151 = tpu.assume_multiple %150, 8 : i32
    %152 = arith.index_cast %148 : i32 to index
    %c0_58 = arith.constant 0 : index
    %153 = vector.load %arg16[%152, %c0_58] : memref<64x192xf32, #tpu.memory_space<vmem>>, vector<8x192xf32>
    %154 = arith.index_cast %151 : i32 to index
    %c0_59 = arith.constant 0 : index
    %155 = vector.load %arg16[%154, %c0_59] : memref<64x192xf32, #tpu.memory_space<vmem>>, vector<8x192xf32>
    %156 = arith.select %18, %153, %155 : vector<8x192xi1>, vector<8x192xf32>
    %cst_60 = arith.constant dense<0.000000e+00> : vector<8x192xf32>
    %157 = tpu.matmul %144, %38, %cst_60 {dimension_numbers = #tpu.dot_dimension_numbers<[1], [0], [0], [1], [0, 0, 1, 1], [], []>} : vector<8x64xf32>, vector<64x192xf32>, vector<8x192xf32> -> vector<8x192xf32>
    %158 = vector.broadcast %40 : vector<1x192xf32> to vector<8x192xf32>
    %159 = arith.addf %157, %158 : vector<8x192xf32>
    %160 = vector.extract_strided_slice %156 {offsets = [0, 0], sizes = [8, 128], strides = [1, 1]} : vector<8x192xf32> to vector<8x128xf32>
    %161 = vector.extract_strided_slice %159 {offsets = [0, 0], sizes = [8, 128], strides = [1, 1]} : vector<8x192xf32> to vector<8x128xf32>
    %162 = arith.addf %160, %161 : vector<8x128xf32>
    %163 = arith.negf %162 : vector<8x128xf32>
    %164 = math.exp %163 : vector<8x128xf32>
    %cst_61 = arith.constant 1.000000e+00 : f32
    %165 = vector.broadcast %cst_61 : f32 to vector<8x128xf32>
    %166 = arith.addf %165, %164 : vector<8x128xf32>
    %167 = arith.divf %165, %166 : vector<8x128xf32>
    %168 = vector.extract_strided_slice %167 {offsets = [0, 0], sizes = [8, 64], strides = [1, 1]} : vector<8x128xf32> to vector<8x64xf32>
    %169 = vector.extract_strided_slice %167 {offsets = [0, 64], sizes = [8, 64], strides = [1, 1]} : vector<8x128xf32> to vector<8x64xf32>
    %170 = vector.extract_strided_slice %156 {offsets = [0, 128], sizes = [8, 64], strides = [1, 1]} : vector<8x192xf32> to vector<8x64xf32>
    %171 = vector.extract_strided_slice %159 {offsets = [0, 128], sizes = [8, 64], strides = [1, 1]} : vector<8x192xf32> to vector<8x64xf32>
    %172 = arith.mulf %168, %171 : vector<8x64xf32>
    %173 = arith.addf %170, %172 : vector<8x64xf32>
    %174 = math.tanh %173 : vector<8x64xf32>
    %cst_62 = arith.constant 1.000000e+00 : f32
    %175 = vector.broadcast %cst_62 : f32 to vector<8x64xf32>
    %176 = arith.subf %175, %169 : vector<8x64xf32>
    %177 = arith.mulf %176, %174 : vector<8x64xf32>
    %178 = arith.mulf %169, %144 : vector<8x64xf32>
    %179 = arith.addf %177, %178 : vector<8x64xf32>
    %180 = arith.index_cast %148 : i32 to index
    %c0_63 = arith.constant 0 : index
    %181 = vector.load %arg18[%180, %c0_63] : memref<64x64xf32, #tpu.memory_space<vmem>>, vector<8x64xf32>
    tpu.vector_store %arg18[%180, %c0_63], %179 {strides = array<i32>} : memref<64x64xf32, #tpu.memory_space<vmem>>, vector<8x64xf32>,
    %c4_i32 = arith.constant 4 : i32
    %c8_i32_64 = arith.constant 8 : i32
    %182 = arith.muli %c4_i32, %c8_i32_64 : i32
    %183 = tpu.assume_multiple %182, 8 : i32
    %c7_i32_65 = arith.constant 7 : i32
    %184 = arith.subi %c7_i32_65, %c4_i32 : i32
    %c8_i32_66 = arith.constant 8 : i32
    %185 = arith.muli %184, %c8_i32_66 : i32
    %186 = tpu.assume_multiple %185, 8 : i32
    %187 = arith.index_cast %183 : i32 to index
    %c0_67 = arith.constant 0 : index
    %188 = vector.load %arg16[%187, %c0_67] : memref<64x192xf32, #tpu.memory_space<vmem>>, vector<8x192xf32>
    %189 = arith.index_cast %186 : i32 to index
    %c0_68 = arith.constant 0 : index
    %190 = vector.load %arg16[%189, %c0_68] : memref<64x192xf32, #tpu.memory_space<vmem>>, vector<8x192xf32>
    %191 = arith.select %18, %188, %190 : vector<8x192xi1>, vector<8x192xf32>
    %cst_69 = arith.constant dense<0.000000e+00> : vector<8x192xf32>
    %192 = tpu.matmul %179, %38, %cst_69 {dimension_numbers = #tpu.dot_dimension_numbers<[1], [0], [0], [1], [0, 0, 1, 1], [], []>} : vector<8x64xf32>, vector<64x192xf32>, vector<8x192xf32> -> vector<8x192xf32>
    %193 = vector.broadcast %40 : vector<1x192xf32> to vector<8x192xf32>
    %194 = arith.addf %192, %193 : vector<8x192xf32>
    %195 = vector.extract_strided_slice %191 {offsets = [0, 0], sizes = [8, 128], strides = [1, 1]} : vector<8x192xf32> to vector<8x128xf32>
    %196 = vector.extract_strided_slice %194 {offsets = [0, 0], sizes = [8, 128], strides = [1, 1]} : vector<8x192xf32> to vector<8x128xf32>
    %197 = arith.addf %195, %196 : vector<8x128xf32>
    %198 = arith.negf %197 : vector<8x128xf32>
    %199 = math.exp %198 : vector<8x128xf32>
    %cst_70 = arith.constant 1.000000e+00 : f32
    %200 = vector.broadcast %cst_70 : f32 to vector<8x128xf32>
    %201 = arith.addf %200, %199 : vector<8x128xf32>
    %202 = arith.divf %200, %201 : vector<8x128xf32>
    %203 = vector.extract_strided_slice %202 {offsets = [0, 0], sizes = [8, 64], strides = [1, 1]} : vector<8x128xf32> to vector<8x64xf32>
    %204 = vector.extract_strided_slice %202 {offsets = [0, 64], sizes = [8, 64], strides = [1, 1]} : vector<8x128xf32> to vector<8x64xf32>
    %205 = vector.extract_strided_slice %191 {offsets = [0, 128], sizes = [8, 64], strides = [1, 1]} : vector<8x192xf32> to vector<8x64xf32>
    %206 = vector.extract_strided_slice %194 {offsets = [0, 128], sizes = [8, 64], strides = [1, 1]} : vector<8x192xf32> to vector<8x64xf32>
    %207 = arith.mulf %203, %206 : vector<8x64xf32>
    %208 = arith.addf %205, %207 : vector<8x64xf32>
    %209 = math.tanh %208 : vector<8x64xf32>
    %cst_71 = arith.constant 1.000000e+00 : f32
    %210 = vector.broadcast %cst_71 : f32 to vector<8x64xf32>
    %211 = arith.subf %210, %204 : vector<8x64xf32>
    %212 = arith.mulf %211, %209 : vector<8x64xf32>
    %213 = arith.mulf %204, %179 : vector<8x64xf32>
    %214 = arith.addf %212, %213 : vector<8x64xf32>
    %215 = arith.index_cast %183 : i32 to index
    %c0_72 = arith.constant 0 : index
    %216 = vector.load %arg18[%215, %c0_72] : memref<64x64xf32, #tpu.memory_space<vmem>>, vector<8x64xf32>
    tpu.vector_store %arg18[%215, %c0_72], %214 {strides = array<i32>} : memref<64x64xf32, #tpu.memory_space<vmem>>, vector<8x64xf32>,
    %c5_i32 = arith.constant 5 : i32
    %c8_i32_73 = arith.constant 8 : i32
    %217 = arith.muli %c5_i32, %c8_i32_73 : i32
    %218 = tpu.assume_multiple %217, 8 : i32
    %c7_i32_74 = arith.constant 7 : i32
    %219 = arith.subi %c7_i32_74, %c5_i32 : i32
    %c8_i32_75 = arith.constant 8 : i32
    %220 = arith.muli %219, %c8_i32_75 : i32
    %221 = tpu.assume_multiple %220, 8 : i32
    %222 = arith.index_cast %218 : i32 to index
    %c0_76 = arith.constant 0 : index
    %223 = vector.load %arg16[%222, %c0_76] : memref<64x192xf32, #tpu.memory_space<vmem>>, vector<8x192xf32>
    %224 = arith.index_cast %221 : i32 to index
    %c0_77 = arith.constant 0 : index
    %225 = vector.load %arg16[%224, %c0_77] : memref<64x192xf32, #tpu.memory_space<vmem>>, vector<8x192xf32>
    %226 = arith.select %18, %223, %225 : vector<8x192xi1>, vector<8x192xf32>
    %cst_78 = arith.constant dense<0.000000e+00> : vector<8x192xf32>
    %227 = tpu.matmul %214, %38, %cst_78 {dimension_numbers = #tpu.dot_dimension_numbers<[1], [0], [0], [1], [0, 0, 1, 1], [], []>} : vector<8x64xf32>, vector<64x192xf32>, vector<8x192xf32> -> vector<8x192xf32>
    %228 = vector.broadcast %40 : vector<1x192xf32> to vector<8x192xf32>
    %229 = arith.addf %227, %228 : vector<8x192xf32>
    %230 = vector.extract_strided_slice %226 {offsets = [0, 0], sizes = [8, 128], strides = [1, 1]} : vector<8x192xf32> to vector<8x128xf32>
    %231 = vector.extract_strided_slice %229 {offsets = [0, 0], sizes = [8, 128], strides = [1, 1]} : vector<8x192xf32> to vector<8x128xf32>
    %232 = arith.addf %230, %231 : vector<8x128xf32>
    %233 = arith.negf %232 : vector<8x128xf32>
    %234 = math.exp %233 : vector<8x128xf32>
    %cst_79 = arith.constant 1.000000e+00 : f32
    %235 = vector.broadcast %cst_79 : f32 to vector<8x128xf32>
    %236 = arith.addf %235, %234 : vector<8x128xf32>
    %237 = arith.divf %235, %236 : vector<8x128xf32>
    %238 = vector.extract_strided_slice %237 {offsets = [0, 0], sizes = [8, 64], strides = [1, 1]} : vector<8x128xf32> to vector<8x64xf32>
    %239 = vector.extract_strided_slice %237 {offsets = [0, 64], sizes = [8, 64], strides = [1, 1]} : vector<8x128xf32> to vector<8x64xf32>
    %240 = vector.extract_strided_slice %226 {offsets = [0, 128], sizes = [8, 64], strides = [1, 1]} : vector<8x192xf32> to vector<8x64xf32>
    %241 = vector.extract_strided_slice %229 {offsets = [0, 128], sizes = [8, 64], strides = [1, 1]} : vector<8x192xf32> to vector<8x64xf32>
    %242 = arith.mulf %238, %241 : vector<8x64xf32>
    %243 = arith.addf %240, %242 : vector<8x64xf32>
    %244 = math.tanh %243 : vector<8x64xf32>
    %cst_80 = arith.constant 1.000000e+00 : f32
    %245 = vector.broadcast %cst_80 : f32 to vector<8x64xf32>
    %246 = arith.subf %245, %239 : vector<8x64xf32>
    %247 = arith.mulf %246, %244 : vector<8x64xf32>
    %248 = arith.mulf %239, %214 : vector<8x64xf32>
    %249 = arith.addf %247, %248 : vector<8x64xf32>
    %250 = arith.index_cast %218 : i32 to index
    %c0_81 = arith.constant 0 : index
    %251 = vector.load %arg18[%250, %c0_81] : memref<64x64xf32, #tpu.memory_space<vmem>>, vector<8x64xf32>
    tpu.vector_store %arg18[%250, %c0_81], %249 {strides = array<i32>} : memref<64x64xf32, #tpu.memory_space<vmem>>, vector<8x64xf32>,
    %c6_i32 = arith.constant 6 : i32
    %c8_i32_82 = arith.constant 8 : i32
    %252 = arith.muli %c6_i32, %c8_i32_82 : i32
    %253 = tpu.assume_multiple %252, 8 : i32
    %c7_i32_83 = arith.constant 7 : i32
    %254 = arith.subi %c7_i32_83, %c6_i32 : i32
    %c8_i32_84 = arith.constant 8 : i32
    %255 = arith.muli %254, %c8_i32_84 : i32
    %256 = tpu.assume_multiple %255, 8 : i32
    %257 = arith.index_cast %253 : i32 to index
    %c0_85 = arith.constant 0 : index
    %258 = vector.load %arg16[%257, %c0_85] : memref<64x192xf32, #tpu.memory_space<vmem>>, vector<8x192xf32>
    %259 = arith.index_cast %256 : i32 to index
    %c0_86 = arith.constant 0 : index
    %260 = vector.load %arg16[%259, %c0_86] : memref<64x192xf32, #tpu.memory_space<vmem>>, vector<8x192xf32>
    %261 = arith.select %18, %258, %260 : vector<8x192xi1>, vector<8x192xf32>
    %cst_87 = arith.constant dense<0.000000e+00> : vector<8x192xf32>
    %262 = tpu.matmul %249, %38, %cst_87 {dimension_numbers = #tpu.dot_dimension_numbers<[1], [0], [0], [1], [0, 0, 1, 1], [], []>} : vector<8x64xf32>, vector<64x192xf32>, vector<8x192xf32> -> vector<8x192xf32>
    %263 = vector.broadcast %40 : vector<1x192xf32> to vector<8x192xf32>
    %264 = arith.addf %262, %263 : vector<8x192xf32>
    %265 = vector.extract_strided_slice %261 {offsets = [0, 0], sizes = [8, 128], strides = [1, 1]} : vector<8x192xf32> to vector<8x128xf32>
    %266 = vector.extract_strided_slice %264 {offsets = [0, 0], sizes = [8, 128], strides = [1, 1]} : vector<8x192xf32> to vector<8x128xf32>
    %267 = arith.addf %265, %266 : vector<8x128xf32>
    %268 = arith.negf %267 : vector<8x128xf32>
    %269 = math.exp %268 : vector<8x128xf32>
    %cst_88 = arith.constant 1.000000e+00 : f32
    %270 = vector.broadcast %cst_88 : f32 to vector<8x128xf32>
    %271 = arith.addf %270, %269 : vector<8x128xf32>
    %272 = arith.divf %270, %271 : vector<8x128xf32>
    %273 = vector.extract_strided_slice %272 {offsets = [0, 0], sizes = [8, 64], strides = [1, 1]} : vector<8x128xf32> to vector<8x64xf32>
    %274 = vector.extract_strided_slice %272 {offsets = [0, 64], sizes = [8, 64], strides = [1, 1]} : vector<8x128xf32> to vector<8x64xf32>
    %275 = vector.extract_strided_slice %261 {offsets = [0, 128], sizes = [8, 64], strides = [1, 1]} : vector<8x192xf32> to vector<8x64xf32>
    %276 = vector.extract_strided_slice %264 {offsets = [0, 128], sizes = [8, 64], strides = [1, 1]} : vector<8x192xf32> to vector<8x64xf32>
    %277 = arith.mulf %273, %276 : vector<8x64xf32>
    %278 = arith.addf %275, %277 : vector<8x64xf32>
    %279 = math.tanh %278 : vector<8x64xf32>
    %cst_89 = arith.constant 1.000000e+00 : f32
    %280 = vector.broadcast %cst_89 : f32 to vector<8x64xf32>
    %281 = arith.subf %280, %274 : vector<8x64xf32>
    %282 = arith.mulf %281, %279 : vector<8x64xf32>
    %283 = arith.mulf %274, %249 : vector<8x64xf32>
    %284 = arith.addf %282, %283 : vector<8x64xf32>
    %285 = arith.index_cast %253 : i32 to index
    %c0_90 = arith.constant 0 : index
    %286 = vector.load %arg18[%285, %c0_90] : memref<64x64xf32, #tpu.memory_space<vmem>>, vector<8x64xf32>
    tpu.vector_store %arg18[%285, %c0_90], %284 {strides = array<i32>} : memref<64x64xf32, #tpu.memory_space<vmem>>, vector<8x64xf32>,
    %c7_i32_91 = arith.constant 7 : i32
    %c8_i32_92 = arith.constant 8 : i32
    %287 = arith.muli %c7_i32_91, %c8_i32_92 : i32
    %288 = tpu.assume_multiple %287, 8 : i32
    %c7_i32_93 = arith.constant 7 : i32
    %289 = arith.subi %c7_i32_93, %c7_i32_91 : i32
    %c8_i32_94 = arith.constant 8 : i32
    %290 = arith.muli %289, %c8_i32_94 : i32
    %291 = tpu.assume_multiple %290, 8 : i32
    %292 = arith.index_cast %288 : i32 to index
    %c0_95 = arith.constant 0 : index
    %293 = vector.load %arg16[%292, %c0_95] : memref<64x192xf32, #tpu.memory_space<vmem>>, vector<8x192xf32>
    %294 = arith.index_cast %291 : i32 to index
    %c0_96 = arith.constant 0 : index
    %295 = vector.load %arg16[%294, %c0_96] : memref<64x192xf32, #tpu.memory_space<vmem>>, vector<8x192xf32>
    %296 = arith.select %18, %293, %295 : vector<8x192xi1>, vector<8x192xf32>
    %cst_97 = arith.constant dense<0.000000e+00> : vector<8x192xf32>
    %297 = tpu.matmul %284, %38, %cst_97 {dimension_numbers = #tpu.dot_dimension_numbers<[1], [0], [0], [1], [0, 0, 1, 1], [], []>} : vector<8x64xf32>, vector<64x192xf32>, vector<8x192xf32> -> vector<8x192xf32>
    %298 = vector.broadcast %40 : vector<1x192xf32> to vector<8x192xf32>
    %299 = arith.addf %297, %298 : vector<8x192xf32>
    %300 = vector.extract_strided_slice %296 {offsets = [0, 0], sizes = [8, 128], strides = [1, 1]} : vector<8x192xf32> to vector<8x128xf32>
    %301 = vector.extract_strided_slice %299 {offsets = [0, 0], sizes = [8, 128], strides = [1, 1]} : vector<8x192xf32> to vector<8x128xf32>
    %302 = arith.addf %300, %301 : vector<8x128xf32>
    %303 = arith.negf %302 : vector<8x128xf32>
    %304 = math.exp %303 : vector<8x128xf32>
    %cst_98 = arith.constant 1.000000e+00 : f32
    %305 = vector.broadcast %cst_98 : f32 to vector<8x128xf32>
    %306 = arith.addf %305, %304 : vector<8x128xf32>
    %307 = arith.divf %305, %306 : vector<8x128xf32>
    %308 = vector.extract_strided_slice %307 {offsets = [0, 0], sizes = [8, 64], strides = [1, 1]} : vector<8x128xf32> to vector<8x64xf32>
    %309 = vector.extract_strided_slice %307 {offsets = [0, 64], sizes = [8, 64], strides = [1, 1]} : vector<8x128xf32> to vector<8x64xf32>
    %310 = vector.extract_strided_slice %296 {offsets = [0, 128], sizes = [8, 64], strides = [1, 1]} : vector<8x192xf32> to vector<8x64xf32>
    %311 = vector.extract_strided_slice %299 {offsets = [0, 128], sizes = [8, 64], strides = [1, 1]} : vector<8x192xf32> to vector<8x64xf32>
    %312 = arith.mulf %308, %311 : vector<8x64xf32>
    %313 = arith.addf %310, %312 : vector<8x64xf32>
    %314 = math.tanh %313 : vector<8x64xf32>
    %cst_99 = arith.constant 1.000000e+00 : f32
    %315 = vector.broadcast %cst_99 : f32 to vector<8x64xf32>
    %316 = arith.subf %315, %309 : vector<8x64xf32>
    %317 = arith.mulf %316, %314 : vector<8x64xf32>
    %318 = arith.mulf %309, %284 : vector<8x64xf32>
    %319 = arith.addf %317, %318 : vector<8x64xf32>
    %320 = arith.index_cast %288 : i32 to index
    %c0_100 = arith.constant 0 : index
    %321 = vector.load %arg18[%320, %c0_100] : memref<64x64xf32, #tpu.memory_space<vmem>>, vector<8x64xf32>
    tpu.vector_store %arg18[%320, %c0_100], %319 {strides = array<i32>} : memref<64x64xf32, #tpu.memory_space<vmem>>, vector<8x64xf32>,
    %c8_i32_101 = arith.constant 8 : i32
    %c0_102 = arith.constant 0 : index
    %c0_103 = arith.constant 0 : index
    %c0_104 = arith.constant 0 : index
    %322 = vector.load %arg11[%c0_102, %c0_103, %c0_104] : memref<2x64x32xf32, #tpu.memory_space<vmem>>, vector<1x64x32xf32>
    %323 = vector.shape_cast %322 : vector<1x64x32xf32> to vector<64x32xf32>
    %cst_105 = arith.constant dense<0.000000e+00> : vector<8x32xf32>
    %324 = tpu.matmul %319, %323, %cst_105 {dimension_numbers = #tpu.dot_dimension_numbers<[1], [0], [0], [1], [0, 0, 1, 1], [], []>} : vector<8x64xf32>, vector<64x32xf32>, vector<8x32xf32> -> vector<8x32xf32>
    %c0_106 = arith.constant 0 : index
    %c0_107 = arith.constant 0 : index
    %325 = vector.load %arg18[%c0_106, %c0_107] : memref<64x64xf32, #tpu.memory_space<vmem>>, vector<64x64xf32>
    %326 = vector.extract_strided_slice %325 {offsets = [0, 0], sizes = [64, 32], strides = [1, 1]} : vector<64x64xf32> to vector<64x32xf32>
    %c0_108 = arith.constant 0 : index
    %c0_109 = arith.constant 0 : index
    %c0_110 = arith.constant 0 : index
    %327 = vector.load %arg6[%c0_108, %c0_109, %c0_110] : memref<1x32x192xf32, #tpu.memory_space<vmem>>, vector<1x32x192xf32>
    %328 = vector.shape_cast %327 : vector<1x32x192xf32> to vector<32x192xf32>
    %cst_111 = arith.constant dense<0.000000e+00> : vector<64x192xf32>
    %329 = tpu.matmul %326, %328, %cst_111 {dimension_numbers = #tpu.dot_dimension_numbers<[1], [0], [0], [1], [0, 0, 1, 1], [], []>} : vector<64x32xf32>, vector<32x192xf32>, vector<64x192xf32> -> vector<64x192xf32>
    %c1 = arith.constant 1 : index
    %c0_112 = arith.constant 0 : index
    %c0_113 = arith.constant 0 : index
    %330 = vector.load %arg8[%c1, %c0_112, %c0_113] : memref<2x1x192xf32, #tpu.memory_space<vmem>>, vector<1x1x192xf32>
    %331 = vector.shape_cast %330 : vector<1x1x192xf32> to vector<1x192xf32>
    %332 = vector.broadcast %331 : vector<1x192xf32> to vector<64x192xf32>
    %333 = arith.addf %329, %332 : vector<64x192xf32>
    %c0_114 = arith.constant 0 : index
    %c0_115 = arith.constant 0 : index
    %334 = vector.load %arg16[%c0_114, %c0_115] : memref<64x192xf32, #tpu.memory_space<vmem>>, vector<64x192xf32>
    tpu.vector_store %arg16[%c0_114, %c0_115], %333 {strides = array<i32>} : memref<64x192xf32, #tpu.memory_space<vmem>>, vector<64x192xf32>,
    %335 = vector.extract_strided_slice %325 {offsets = [0, 32], sizes = [64, 32], strides = [1, 1]} : vector<64x64xf32> to vector<64x32xf32>
    %c0_116 = arith.constant 0 : index
    %c0_117 = arith.constant 0 : index
    %c0_118 = arith.constant 0 : index
    %336 = vector.load %arg7[%c0_116, %c0_117, %c0_118] : memref<1x32x192xf32, #tpu.memory_space<vmem>>, vector<1x32x192xf32>
    %337 = vector.shape_cast %336 : vector<1x32x192xf32> to vector<32x192xf32>
    %cst_119 = arith.constant dense<0.000000e+00> : vector<64x192xf32>
    %338 = tpu.matmul %335, %337, %cst_119 {dimension_numbers = #tpu.dot_dimension_numbers<[1], [0], [0], [1], [0, 0, 1, 1], [], []>} : vector<64x32xf32>, vector<32x192xf32>, vector<64x192xf32> -> vector<64x192xf32>
    %c0_120 = arith.constant 0 : index
    %c0_121 = arith.constant 0 : index
    %339 = vector.load %arg17[%c0_120, %c0_121] : memref<64x192xf32, #tpu.memory_space<vmem>>, vector<64x192xf32>
    tpu.vector_store %arg17[%c0_120, %c0_121], %338 {strides = array<i32>} : memref<64x192xf32, #tpu.memory_space<vmem>>, vector<64x192xf32>,
    %c1_122 = arith.constant 1 : index
    %c0_123 = arith.constant 0 : index
    %c0_124 = arith.constant 0 : index
    %340 = vector.load %arg9[%c1_122, %c0_123, %c0_124] : memref<2x64x192xf32, #tpu.memory_space<vmem>>, vector<1x64x192xf32>
    %341 = vector.shape_cast %340 : vector<1x64x192xf32> to vector<64x192xf32>
    %c1_125 = arith.constant 1 : index
    %c0_126 = arith.constant 0 : index
    %c0_127 = arith.constant 0 : index
    %342 = vector.load %arg10[%c1_125, %c0_126, %c0_127] : memref<2x1x192xf32, #tpu.memory_space<vmem>>, vector<1x1x192xf32>
    %343 = vector.shape_cast %342 : vector<1x1x192xf32> to vector<1x192xf32>
    %cst_128 = arith.constant 0.000000e+00 : f32
    %344 = vector.broadcast %cst_128 : f32 to vector<8x64xf32>
    %c0_i32_129 = arith.constant 0 : i32
    %c8_i32_130 = arith.constant 8 : i32
    %345 = arith.muli %c0_i32_129, %c8_i32_130 : i32
    %346 = tpu.assume_multiple %345, 8 : i32
    %c7_i32_131 = arith.constant 7 : i32
    %347 = arith.subi %c7_i32_131, %c0_i32_129 : i32
    %c8_i32_132 = arith.constant 8 : i32
    %348 = arith.muli %347, %c8_i32_132 : i32
    %349 = tpu.assume_multiple %348, 8 : i32
    %350 = arith.index_cast %346 : i32 to index
    %c0_133 = arith.constant 0 : index
    %351 = vector.load %arg16[%350, %c0_133] : memref<64x192xf32, #tpu.memory_space<vmem>>, vector<8x192xf32>
    %352 = arith.index_cast %349 : i32 to index
    %c0_134 = arith.constant 0 : index
    %353 = vector.load %arg16[%352, %c0_134] : memref<64x192xf32, #tpu.memory_space<vmem>>, vector<8x192xf32>
    %354 = arith.select %18, %351, %353 : vector<8x192xi1>, vector<8x192xf32>
    %355 = arith.index_cast %349 : i32 to index
    %c0_135 = arith.constant 0 : index
    %356 = vector.load %arg17[%355, %c0_135] : memref<64x192xf32, #tpu.memory_space<vmem>>, vector<8x192xf32>
    %357 = arith.index_cast %346 : i32 to index
    %c0_136 = arith.constant 0 : index
    %358 = vector.load %arg17[%357, %c0_136] : memref<64x192xf32, #tpu.memory_space<vmem>>, vector<8x192xf32>
    %359 = arith.select %18, %356, %358 : vector<8x192xi1>, vector<8x192xf32>
    %360 = arith.addf %354, %359 : vector<8x192xf32>
    %cst_137 = arith.constant dense<0.000000e+00> : vector<8x192xf32>
    %361 = tpu.matmul %344, %341, %cst_137 {dimension_numbers = #tpu.dot_dimension_numbers<[1], [0], [0], [1], [0, 0, 1, 1], [], []>} : vector<8x64xf32>, vector<64x192xf32>, vector<8x192xf32> -> vector<8x192xf32>
    %362 = vector.broadcast %343 : vector<1x192xf32> to vector<8x192xf32>
    %363 = arith.addf %361, %362 : vector<8x192xf32>
    %364 = vector.extract_strided_slice %360 {offsets = [0, 0], sizes = [8, 128], strides = [1, 1]} : vector<8x192xf32> to vector<8x128xf32>
    %365 = vector.extract_strided_slice %363 {offsets = [0, 0], sizes = [8, 128], strides = [1, 1]} : vector<8x192xf32> to vector<8x128xf32>
    %366 = arith.addf %364, %365 : vector<8x128xf32>
    %367 = arith.negf %366 : vector<8x128xf32>
    %368 = math.exp %367 : vector<8x128xf32>
    %cst_138 = arith.constant 1.000000e+00 : f32
    %369 = vector.broadcast %cst_138 : f32 to vector<8x128xf32>
    %370 = arith.addf %369, %368 : vector<8x128xf32>
    %371 = arith.divf %369, %370 : vector<8x128xf32>
    %372 = vector.extract_strided_slice %371 {offsets = [0, 0], sizes = [8, 64], strides = [1, 1]} : vector<8x128xf32> to vector<8x64xf32>
    %373 = vector.extract_strided_slice %371 {offsets = [0, 64], sizes = [8, 64], strides = [1, 1]} : vector<8x128xf32> to vector<8x64xf32>
    %374 = vector.extract_strided_slice %360 {offsets = [0, 128], sizes = [8, 64], strides = [1, 1]} : vector<8x192xf32> to vector<8x64xf32>
    %375 = vector.extract_strided_slice %363 {offsets = [0, 128], sizes = [8, 64], strides = [1, 1]} : vector<8x192xf32> to vector<8x64xf32>
    %376 = arith.mulf %372, %375 : vector<8x64xf32>
    %377 = arith.addf %374, %376 : vector<8x64xf32>
    %378 = math.tanh %377 : vector<8x64xf32>
    %cst_139 = arith.constant 1.000000e+00 : f32
    %379 = vector.broadcast %cst_139 : f32 to vector<8x64xf32>
    %380 = arith.subf %379, %373 : vector<8x64xf32>
    %381 = arith.mulf %380, %378 : vector<8x64xf32>
    %382 = arith.mulf %373, %344 : vector<8x64xf32>
    %383 = arith.addf %381, %382 : vector<8x64xf32>
    %c1_i32_140 = arith.constant 1 : i32
    %c8_i32_141 = arith.constant 8 : i32
    %384 = arith.muli %c1_i32_140, %c8_i32_141 : i32
    %385 = tpu.assume_multiple %384, 8 : i32
    %c7_i32_142 = arith.constant 7 : i32
    %386 = arith.subi %c7_i32_142, %c1_i32_140 : i32
    %c8_i32_143 = arith.constant 8 : i32
    %387 = arith.muli %386, %c8_i32_143 : i32
    %388 = tpu.assume_multiple %387, 8 : i32
    %389 = arith.index_cast %385 : i32 to index
    %c0_144 = arith.constant 0 : index
    %390 = vector.load %arg16[%389, %c0_144] : memref<64x192xf32, #tpu.memory_space<vmem>>, vector<8x192xf32>
    %391 = arith.index_cast %388 : i32 to index
    %c0_145 = arith.constant 0 : index
    %392 = vector.load %arg16[%391, %c0_145] : memref<64x192xf32, #tpu.memory_space<vmem>>, vector<8x192xf32>
    %393 = arith.select %18, %390, %392 : vector<8x192xi1>, vector<8x192xf32>
    %394 = arith.index_cast %388 : i32 to index
    %c0_146 = arith.constant 0 : index
    %395 = vector.load %arg17[%394, %c0_146] : memref<64x192xf32, #tpu.memory_space<vmem>>, vector<8x192xf32>
    %396 = arith.index_cast %385 : i32 to index
    %c0_147 = arith.constant 0 : index
    %397 = vector.load %arg17[%396, %c0_147] : memref<64x192xf32, #tpu.memory_space<vmem>>, vector<8x192xf32>
    %398 = arith.select %18, %395, %397 : vector<8x192xi1>, vector<8x192xf32>
    %399 = arith.addf %393, %398 : vector<8x192xf32>
    %cst_148 = arith.constant dense<0.000000e+00> : vector<8x192xf32>
    %400 = tpu.matmul %383, %341, %cst_148 {dimension_numbers = #tpu.dot_dimension_numbers<[1], [0], [0], [1], [0, 0, 1, 1], [], []>} : vector<8x64xf32>, vector<64x192xf32>, vector<8x192xf32> -> vector<8x192xf32>
    %401 = vector.broadcast %343 : vector<1x192xf32> to vector<8x192xf32>
    %402 = arith.addf %400, %401 : vector<8x192xf32>
    %403 = vector.extract_strided_slice %399 {offsets = [0, 0], sizes = [8, 128], strides = [1, 1]} : vector<8x192xf32> to vector<8x128xf32>
    %404 = vector.extract_strided_slice %402 {offsets = [0, 0], sizes = [8, 128], strides = [1, 1]} : vector<8x192xf32> to vector<8x128xf32>
    %405 = arith.addf %403, %404 : vector<8x128xf32>
    %406 = arith.negf %405 : vector<8x128xf32>
    %407 = math.exp %406 : vector<8x128xf32>
    %cst_149 = arith.constant 1.000000e+00 : f32
    %408 = vector.broadcast %cst_149 : f32 to vector<8x128xf32>
    %409 = arith.addf %408, %407 : vector<8x128xf32>
    %410 = arith.divf %408, %409 : vector<8x128xf32>
    %411 = vector.extract_strided_slice %410 {offsets = [0, 0], sizes = [8, 64], strides = [1, 1]} : vector<8x128xf32> to vector<8x64xf32>
    %412 = vector.extract_strided_slice %410 {offsets = [0, 64], sizes = [8, 64], strides = [1, 1]} : vector<8x128xf32> to vector<8x64xf32>
    %413 = vector.extract_strided_slice %399 {offsets = [0, 128], sizes = [8, 64], strides = [1, 1]} : vector<8x192xf32> to vector<8x64xf32>
    %414 = vector.extract_strided_slice %402 {offsets = [0, 128], sizes = [8, 64], strides = [1, 1]} : vector<8x192xf32> to vector<8x64xf32>
    %415 = arith.mulf %411, %414 : vector<8x64xf32>
    %416 = arith.addf %413, %415 : vector<8x64xf32>
    %417 = math.tanh %416 : vector<8x64xf32>
    %cst_150 = arith.constant 1.000000e+00 : f32
    %418 = vector.broadcast %cst_150 : f32 to vector<8x64xf32>
    %419 = arith.subf %418, %412 : vector<8x64xf32>
    %420 = arith.mulf %419, %417 : vector<8x64xf32>
    %421 = arith.mulf %412, %383 : vector<8x64xf32>
    %422 = arith.addf %420, %421 : vector<8x64xf32>
    %c2_i32_151 = arith.constant 2 : i32
    %c8_i32_152 = arith.constant 8 : i32
    %423 = arith.muli %c2_i32_151, %c8_i32_152 : i32
    %424 = tpu.assume_multiple %423, 8 : i32
    %c7_i32_153 = arith.constant 7 : i32
    %425 = arith.subi %c7_i32_153, %c2_i32_151 : i32
    %c8_i32_154 = arith.constant 8 : i32
    %426 = arith.muli %425, %c8_i32_154 : i32
    %427 = tpu.assume_multiple %426, 8 : i32
    %428 = arith.index_cast %424 : i32 to index
    %c0_155 = arith.constant 0 : index
    %429 = vector.load %arg16[%428, %c0_155] : memref<64x192xf32, #tpu.memory_space<vmem>>, vector<8x192xf32>
    %430 = arith.index_cast %427 : i32 to index
    %c0_156 = arith.constant 0 : index
    %431 = vector.load %arg16[%430, %c0_156] : memref<64x192xf32, #tpu.memory_space<vmem>>, vector<8x192xf32>
    %432 = arith.select %18, %429, %431 : vector<8x192xi1>, vector<8x192xf32>
    %433 = arith.index_cast %427 : i32 to index
    %c0_157 = arith.constant 0 : index
    %434 = vector.load %arg17[%433, %c0_157] : memref<64x192xf32, #tpu.memory_space<vmem>>, vector<8x192xf32>
    %435 = arith.index_cast %424 : i32 to index
    %c0_158 = arith.constant 0 : index
    %436 = vector.load %arg17[%435, %c0_158] : memref<64x192xf32, #tpu.memory_space<vmem>>, vector<8x192xf32>
    %437 = arith.select %18, %434, %436 : vector<8x192xi1>, vector<8x192xf32>
    %438 = arith.addf %432, %437 : vector<8x192xf32>
    %cst_159 = arith.constant dense<0.000000e+00> : vector<8x192xf32>
    %439 = tpu.matmul %422, %341, %cst_159 {dimension_numbers = #tpu.dot_dimension_numbers<[1], [0], [0], [1], [0, 0, 1, 1], [], []>} : vector<8x64xf32>, vector<64x192xf32>, vector<8x192xf32> -> vector<8x192xf32>
    %440 = vector.broadcast %343 : vector<1x192xf32> to vector<8x192xf32>
    %441 = arith.addf %439, %440 : vector<8x192xf32>
    %442 = vector.extract_strided_slice %438 {offsets = [0, 0], sizes = [8, 128], strides = [1, 1]} : vector<8x192xf32> to vector<8x128xf32>
    %443 = vector.extract_strided_slice %441 {offsets = [0, 0], sizes = [8, 128], strides = [1, 1]} : vector<8x192xf32> to vector<8x128xf32>
    %444 = arith.addf %442, %443 : vector<8x128xf32>
    %445 = arith.negf %444 : vector<8x128xf32>
    %446 = math.exp %445 : vector<8x128xf32>
    %cst_160 = arith.constant 1.000000e+00 : f32
    %447 = vector.broadcast %cst_160 : f32 to vector<8x128xf32>
    %448 = arith.addf %447, %446 : vector<8x128xf32>
    %449 = arith.divf %447, %448 : vector<8x128xf32>
    %450 = vector.extract_strided_slice %449 {offsets = [0, 0], sizes = [8, 64], strides = [1, 1]} : vector<8x128xf32> to vector<8x64xf32>
    %451 = vector.extract_strided_slice %449 {offsets = [0, 64], sizes = [8, 64], strides = [1, 1]} : vector<8x128xf32> to vector<8x64xf32>
    %452 = vector.extract_strided_slice %438 {offsets = [0, 128], sizes = [8, 64], strides = [1, 1]} : vector<8x192xf32> to vector<8x64xf32>
    %453 = vector.extract_strided_slice %441 {offsets = [0, 128], sizes = [8, 64], strides = [1, 1]} : vector<8x192xf32> to vector<8x64xf32>
    %454 = arith.mulf %450, %453 : vector<8x64xf32>
    %455 = arith.addf %452, %454 : vector<8x64xf32>
    %456 = math.tanh %455 : vector<8x64xf32>
    %cst_161 = arith.constant 1.000000e+00 : f32
    %457 = vector.broadcast %cst_161 : f32 to vector<8x64xf32>
    %458 = arith.subf %457, %451 : vector<8x64xf32>
    %459 = arith.mulf %458, %456 : vector<8x64xf32>
    %460 = arith.mulf %451, %422 : vector<8x64xf32>
    %461 = arith.addf %459, %460 : vector<8x64xf32>
    %c3_i32_162 = arith.constant 3 : i32
    %c8_i32_163 = arith.constant 8 : i32
    %462 = arith.muli %c3_i32_162, %c8_i32_163 : i32
    %463 = tpu.assume_multiple %462, 8 : i32
    %c7_i32_164 = arith.constant 7 : i32
    %464 = arith.subi %c7_i32_164, %c3_i32_162 : i32
    %c8_i32_165 = arith.constant 8 : i32
    %465 = arith.muli %464, %c8_i32_165 : i32
    %466 = tpu.assume_multiple %465, 8 : i32
    %467 = arith.index_cast %463 : i32 to index
    %c0_166 = arith.constant 0 : index
    %468 = vector.load %arg16[%467, %c0_166] : memref<64x192xf32, #tpu.memory_space<vmem>>, vector<8x192xf32>
    %469 = arith.index_cast %466 : i32 to index
    %c0_167 = arith.constant 0 : index
    %470 = vector.load %arg16[%469, %c0_167] : memref<64x192xf32, #tpu.memory_space<vmem>>, vector<8x192xf32>
    %471 = arith.select %18, %468, %470 : vector<8x192xi1>, vector<8x192xf32>
    %472 = arith.index_cast %466 : i32 to index
    %c0_168 = arith.constant 0 : index
    %473 = vector.load %arg17[%472, %c0_168] : memref<64x192xf32, #tpu.memory_space<vmem>>, vector<8x192xf32>
    %474 = arith.index_cast %463 : i32 to index
    %c0_169 = arith.constant 0 : index
    %475 = vector.load %arg17[%474, %c0_169] : memref<64x192xf32, #tpu.memory_space<vmem>>, vector<8x192xf32>
    %476 = arith.select %18, %473, %475 : vector<8x192xi1>, vector<8x192xf32>
    %477 = arith.addf %471, %476 : vector<8x192xf32>
    %cst_170 = arith.constant dense<0.000000e+00> : vector<8x192xf32>
    %478 = tpu.matmul %461, %341, %cst_170 {dimension_numbers = #tpu.dot_dimension_numbers<[1], [0], [0], [1], [0, 0, 1, 1], [], []>} : vector<8x64xf32>, vector<64x192xf32>, vector<8x192xf32> -> vector<8x192xf32>
    %479 = vector.broadcast %343 : vector<1x192xf32> to vector<8x192xf32>
    %480 = arith.addf %478, %479 : vector<8x192xf32>
    %481 = vector.extract_strided_slice %477 {offsets = [0, 0], sizes = [8, 128], strides = [1, 1]} : vector<8x192xf32> to vector<8x128xf32>
    %482 = vector.extract_strided_slice %480 {offsets = [0, 0], sizes = [8, 128], strides = [1, 1]} : vector<8x192xf32> to vector<8x128xf32>
    %483 = arith.addf %481, %482 : vector<8x128xf32>
    %484 = arith.negf %483 : vector<8x128xf32>
    %485 = math.exp %484 : vector<8x128xf32>
    %cst_171 = arith.constant 1.000000e+00 : f32
    %486 = vector.broadcast %cst_171 : f32 to vector<8x128xf32>
    %487 = arith.addf %486, %485 : vector<8x128xf32>
    %488 = arith.divf %486, %487 : vector<8x128xf32>
    %489 = vector.extract_strided_slice %488 {offsets = [0, 0], sizes = [8, 64], strides = [1, 1]} : vector<8x128xf32> to vector<8x64xf32>
    %490 = vector.extract_strided_slice %488 {offsets = [0, 64], sizes = [8, 64], strides = [1, 1]} : vector<8x128xf32> to vector<8x64xf32>
    %491 = vector.extract_strided_slice %477 {offsets = [0, 128], sizes = [8, 64], strides = [1, 1]} : vector<8x192xf32> to vector<8x64xf32>
    %492 = vector.extract_strided_slice %480 {offsets = [0, 128], sizes = [8, 64], strides = [1, 1]} : vector<8x192xf32> to vector<8x64xf32>
    %493 = arith.mulf %489, %492 : vector<8x64xf32>
    %494 = arith.addf %491, %493 : vector<8x64xf32>
    %495 = math.tanh %494 : vector<8x64xf32>
    %cst_172 = arith.constant 1.000000e+00 : f32
    %496 = vector.broadcast %cst_172 : f32 to vector<8x64xf32>
    %497 = arith.subf %496, %490 : vector<8x64xf32>
    %498 = arith.mulf %497, %495 : vector<8x64xf32>
    %499 = arith.mulf %490, %461 : vector<8x64xf32>
    %500 = arith.addf %498, %499 : vector<8x64xf32>
    %c4_i32_173 = arith.constant 4 : i32
    %c8_i32_174 = arith.constant 8 : i32
    %501 = arith.muli %c4_i32_173, %c8_i32_174 : i32
    %502 = tpu.assume_multiple %501, 8 : i32
    %c7_i32_175 = arith.constant 7 : i32
    %503 = arith.subi %c7_i32_175, %c4_i32_173 : i32
    %c8_i32_176 = arith.constant 8 : i32
    %504 = arith.muli %503, %c8_i32_176 : i32
    %505 = tpu.assume_multiple %504, 8 : i32
    %506 = arith.index_cast %502 : i32 to index
    %c0_177 = arith.constant 0 : index
    %507 = vector.load %arg16[%506, %c0_177] : memref<64x192xf32, #tpu.memory_space<vmem>>, vector<8x192xf32>
    %508 = arith.index_cast %505 : i32 to index
    %c0_178 = arith.constant 0 : index
    %509 = vector.load %arg16[%508, %c0_178] : memref<64x192xf32, #tpu.memory_space<vmem>>, vector<8x192xf32>
    %510 = arith.select %18, %507, %509 : vector<8x192xi1>, vector<8x192xf32>
    %511 = arith.index_cast %505 : i32 to index
    %c0_179 = arith.constant 0 : index
    %512 = vector.load %arg17[%511, %c0_179] : memref<64x192xf32, #tpu.memory_space<vmem>>, vector<8x192xf32>
    %513 = arith.index_cast %502 : i32 to index
    %c0_180 = arith.constant 0 : index
    %514 = vector.load %arg17[%513, %c0_180] : memref<64x192xf32, #tpu.memory_space<vmem>>, vector<8x192xf32>
    %515 = arith.select %18, %512, %514 : vector<8x192xi1>, vector<8x192xf32>
    %516 = arith.addf %510, %515 : vector<8x192xf32>
    %cst_181 = arith.constant dense<0.000000e+00> : vector<8x192xf32>
    %517 = tpu.matmul %500, %341, %cst_181 {dimension_numbers = #tpu.dot_dimension_numbers<[1], [0], [0], [1], [0, 0, 1, 1], [], []>} : vector<8x64xf32>, vector<64x192xf32>, vector<8x192xf32> -> vector<8x192xf32>
    %518 = vector.broadcast %343 : vector<1x192xf32> to vector<8x192xf32>
    %519 = arith.addf %517, %518 : vector<8x192xf32>
    %520 = vector.extract_strided_slice %516 {offsets = [0, 0], sizes = [8, 128], strides = [1, 1]} : vector<8x192xf32> to vector<8x128xf32>
    %521 = vector.extract_strided_slice %519 {offsets = [0, 0], sizes = [8, 128], strides = [1, 1]} : vector<8x192xf32> to vector<8x128xf32>
    %522 = arith.addf %520, %521 : vector<8x128xf32>
    %523 = arith.negf %522 : vector<8x128xf32>
    %524 = math.exp %523 : vector<8x128xf32>
    %cst_182 = arith.constant 1.000000e+00 : f32
    %525 = vector.broadcast %cst_182 : f32 to vector<8x128xf32>
    %526 = arith.addf %525, %524 : vector<8x128xf32>
    %527 = arith.divf %525, %526 : vector<8x128xf32>
    %528 = vector.extract_strided_slice %527 {offsets = [0, 0], sizes = [8, 64], strides = [1, 1]} : vector<8x128xf32> to vector<8x64xf32>
    %529 = vector.extract_strided_slice %527 {offsets = [0, 64], sizes = [8, 64], strides = [1, 1]} : vector<8x128xf32> to vector<8x64xf32>
    %530 = vector.extract_strided_slice %516 {offsets = [0, 128], sizes = [8, 64], strides = [1, 1]} : vector<8x192xf32> to vector<8x64xf32>
    %531 = vector.extract_strided_slice %519 {offsets = [0, 128], sizes = [8, 64], strides = [1, 1]} : vector<8x192xf32> to vector<8x64xf32>
    %532 = arith.mulf %528, %531 : vector<8x64xf32>
    %533 = arith.addf %530, %532 : vector<8x64xf32>
    %534 = math.tanh %533 : vector<8x64xf32>
    %cst_183 = arith.constant 1.000000e+00 : f32
    %535 = vector.broadcast %cst_183 : f32 to vector<8x64xf32>
    %536 = arith.subf %535, %529 : vector<8x64xf32>
    %537 = arith.mulf %536, %534 : vector<8x64xf32>
    %538 = arith.mulf %529, %500 : vector<8x64xf32>
    %539 = arith.addf %537, %538 : vector<8x64xf32>
    %c5_i32_184 = arith.constant 5 : i32
    %c8_i32_185 = arith.constant 8 : i32
    %540 = arith.muli %c5_i32_184, %c8_i32_185 : i32
    %541 = tpu.assume_multiple %540, 8 : i32
    %c7_i32_186 = arith.constant 7 : i32
    %542 = arith.subi %c7_i32_186, %c5_i32_184 : i32
    %c8_i32_187 = arith.constant 8 : i32
    %543 = arith.muli %542, %c8_i32_187 : i32
    %544 = tpu.assume_multiple %543, 8 : i32
    %545 = arith.index_cast %541 : i32 to index
    %c0_188 = arith.constant 0 : index
    %546 = vector.load %arg16[%545, %c0_188] : memref<64x192xf32, #tpu.memory_space<vmem>>, vector<8x192xf32>
    %547 = arith.index_cast %544 : i32 to index
    %c0_189 = arith.constant 0 : index
    %548 = vector.load %arg16[%547, %c0_189] : memref<64x192xf32, #tpu.memory_space<vmem>>, vector<8x192xf32>
    %549 = arith.select %18, %546, %548 : vector<8x192xi1>, vector<8x192xf32>
    %550 = arith.index_cast %544 : i32 to index
    %c0_190 = arith.constant 0 : index
    %551 = vector.load %arg17[%550, %c0_190] : memref<64x192xf32, #tpu.memory_space<vmem>>, vector<8x192xf32>
    %552 = arith.index_cast %541 : i32 to index
    %c0_191 = arith.constant 0 : index
    %553 = vector.load %arg17[%552, %c0_191] : memref<64x192xf32, #tpu.memory_space<vmem>>, vector<8x192xf32>
    %554 = arith.select %18, %551, %553 : vector<8x192xi1>, vector<8x192xf32>
    %555 = arith.addf %549, %554 : vector<8x192xf32>
    %cst_192 = arith.constant dense<0.000000e+00> : vector<8x192xf32>
    %556 = tpu.matmul %539, %341, %cst_192 {dimension_numbers = #tpu.dot_dimension_numbers<[1], [0], [0], [1], [0, 0, 1, 1], [], []>} : vector<8x64xf32>, vector<64x192xf32>, vector<8x192xf32> -> vector<8x192xf32>
    %557 = vector.broadcast %343 : vector<1x192xf32> to vector<8x192xf32>
    %558 = arith.addf %556, %557 : vector<8x192xf32>
    %559 = vector.extract_strided_slice %555 {offsets = [0, 0], sizes = [8, 128], strides = [1, 1]} : vector<8x192xf32> to vector<8x128xf32>
    %560 = vector.extract_strided_slice %558 {offsets = [0, 0], sizes = [8, 128], strides = [1, 1]} : vector<8x192xf32> to vector<8x128xf32>
    %561 = arith.addf %559, %560 : vector<8x128xf32>
    %562 = arith.negf %561 : vector<8x128xf32>
    %563 = math.exp %562 : vector<8x128xf32>
    %cst_193 = arith.constant 1.000000e+00 : f32
    %564 = vector.broadcast %cst_193 : f32 to vector<8x128xf32>
    %565 = arith.addf %564, %563 : vector<8x128xf32>
    %566 = arith.divf %564, %565 : vector<8x128xf32>
    %567 = vector.extract_strided_slice %566 {offsets = [0, 0], sizes = [8, 64], strides = [1, 1]} : vector<8x128xf32> to vector<8x64xf32>
    %568 = vector.extract_strided_slice %566 {offsets = [0, 64], sizes = [8, 64], strides = [1, 1]} : vector<8x128xf32> to vector<8x64xf32>
    %569 = vector.extract_strided_slice %555 {offsets = [0, 128], sizes = [8, 64], strides = [1, 1]} : vector<8x192xf32> to vector<8x64xf32>
    %570 = vector.extract_strided_slice %558 {offsets = [0, 128], sizes = [8, 64], strides = [1, 1]} : vector<8x192xf32> to vector<8x64xf32>
    %571 = arith.mulf %567, %570 : vector<8x64xf32>
    %572 = arith.addf %569, %571 : vector<8x64xf32>
    %573 = math.tanh %572 : vector<8x64xf32>
    %cst_194 = arith.constant 1.000000e+00 : f32
    %574 = vector.broadcast %cst_194 : f32 to vector<8x64xf32>
    %575 = arith.subf %574, %568 : vector<8x64xf32>
    %576 = arith.mulf %575, %573 : vector<8x64xf32>
    %577 = arith.mulf %568, %539 : vector<8x64xf32>
    %578 = arith.addf %576, %577 : vector<8x64xf32>
    %c6_i32_195 = arith.constant 6 : i32
    %c8_i32_196 = arith.constant 8 : i32
    %579 = arith.muli %c6_i32_195, %c8_i32_196 : i32
    %580 = tpu.assume_multiple %579, 8 : i32
    %c7_i32_197 = arith.constant 7 : i32
    %581 = arith.subi %c7_i32_197, %c6_i32_195 : i32
    %c8_i32_198 = arith.constant 8 : i32
    %582 = arith.muli %581, %c8_i32_198 : i32
    %583 = tpu.assume_multiple %582, 8 : i32
    %584 = arith.index_cast %580 : i32 to index
    %c0_199 = arith.constant 0 : index
    %585 = vector.load %arg16[%584, %c0_199] : memref<64x192xf32, #tpu.memory_space<vmem>>, vector<8x192xf32>
    %586 = arith.index_cast %583 : i32 to index
    %c0_200 = arith.constant 0 : index
    %587 = vector.load %arg16[%586, %c0_200] : memref<64x192xf32, #tpu.memory_space<vmem>>, vector<8x192xf32>
    %588 = arith.select %18, %585, %587 : vector<8x192xi1>, vector<8x192xf32>
    %589 = arith.index_cast %583 : i32 to index
    %c0_201 = arith.constant 0 : index
    %590 = vector.load %arg17[%589, %c0_201] : memref<64x192xf32, #tpu.memory_space<vmem>>, vector<8x192xf32>
    %591 = arith.index_cast %580 : i32 to index
    %c0_202 = arith.constant 0 : index
    %592 = vector.load %arg17[%591, %c0_202] : memref<64x192xf32, #tpu.memory_space<vmem>>, vector<8x192xf32>
    %593 = arith.select %18, %590, %592 : vector<8x192xi1>, vector<8x192xf32>
    %594 = arith.addf %588, %593 : vector<8x192xf32>
    %cst_203 = arith.constant dense<0.000000e+00> : vector<8x192xf32>
    %595 = tpu.matmul %578, %341, %cst_203 {dimension_numbers = #tpu.dot_dimension_numbers<[1], [0], [0], [1], [0, 0, 1, 1], [], []>} : vector<8x64xf32>, vector<64x192xf32>, vector<8x192xf32> -> vector<8x192xf32>
    %596 = vector.broadcast %343 : vector<1x192xf32> to vector<8x192xf32>
    %597 = arith.addf %595, %596 : vector<8x192xf32>
    %598 = vector.extract_strided_slice %594 {offsets = [0, 0], sizes = [8, 128], strides = [1, 1]} : vector<8x192xf32> to vector<8x128xf32>
    %599 = vector.extract_strided_slice %597 {offsets = [0, 0], sizes = [8, 128], strides = [1, 1]} : vector<8x192xf32> to vector<8x128xf32>
    %600 = arith.addf %598, %599 : vector<8x128xf32>
    %601 = arith.negf %600 : vector<8x128xf32>
    %602 = math.exp %601 : vector<8x128xf32>
    %cst_204 = arith.constant 1.000000e+00 : f32
    %603 = vector.broadcast %cst_204 : f32 to vector<8x128xf32>
    %604 = arith.addf %603, %602 : vector<8x128xf32>
    %605 = arith.divf %603, %604 : vector<8x128xf32>
    %606 = vector.extract_strided_slice %605 {offsets = [0, 0], sizes = [8, 64], strides = [1, 1]} : vector<8x128xf32> to vector<8x64xf32>
    %607 = vector.extract_strided_slice %605 {offsets = [0, 64], sizes = [8, 64], strides = [1, 1]} : vector<8x128xf32> to vector<8x64xf32>
    %608 = vector.extract_strided_slice %594 {offsets = [0, 128], sizes = [8, 64], strides = [1, 1]} : vector<8x192xf32> to vector<8x64xf32>
    %609 = vector.extract_strided_slice %597 {offsets = [0, 128], sizes = [8, 64], strides = [1, 1]} : vector<8x192xf32> to vector<8x64xf32>
    %610 = arith.mulf %606, %609 : vector<8x64xf32>
    %611 = arith.addf %608, %610 : vector<8x64xf32>
    %612 = math.tanh %611 : vector<8x64xf32>
    %cst_205 = arith.constant 1.000000e+00 : f32
    %613 = vector.broadcast %cst_205 : f32 to vector<8x64xf32>
    %614 = arith.subf %613, %607 : vector<8x64xf32>
    %615 = arith.mulf %614, %612 : vector<8x64xf32>
    %616 = arith.mulf %607, %578 : vector<8x64xf32>
    %617 = arith.addf %615, %616 : vector<8x64xf32>
    %c7_i32_206 = arith.constant 7 : i32
    %c8_i32_207 = arith.constant 8 : i32
    %618 = arith.muli %c7_i32_206, %c8_i32_207 : i32
    %619 = tpu.assume_multiple %618, 8 : i32
    %c7_i32_208 = arith.constant 7 : i32
    %620 = arith.subi %c7_i32_208, %c7_i32_206 : i32
    %c8_i32_209 = arith.constant 8 : i32
    %621 = arith.muli %620, %c8_i32_209 : i32
    %622 = tpu.assume_multiple %621, 8 : i32
    %623 = arith.index_cast %619 : i32 to index
    %c0_210 = arith.constant 0 : index
    %624 = vector.load %arg16[%623, %c0_210] : memref<64x192xf32, #tpu.memory_space<vmem>>, vector<8x192xf32>
    %625 = arith.index_cast %622 : i32 to index
    %c0_211 = arith.constant 0 : index
    %626 = vector.load %arg16[%625, %c0_211] : memref<64x192xf32, #tpu.memory_space<vmem>>, vector<8x192xf32>
    %627 = arith.select %18, %624, %626 : vector<8x192xi1>, vector<8x192xf32>
    %628 = arith.index_cast %622 : i32 to index
    %c0_212 = arith.constant 0 : index
    %629 = vector.load %arg17[%628, %c0_212] : memref<64x192xf32, #tpu.memory_space<vmem>>, vector<8x192xf32>
    %630 = arith.index_cast %619 : i32 to index
    %c0_213 = arith.constant 0 : index
    %631 = vector.load %arg17[%630, %c0_213] : memref<64x192xf32, #tpu.memory_space<vmem>>, vector<8x192xf32>
    %632 = arith.select %18, %629, %631 : vector<8x192xi1>, vector<8x192xf32>
    %633 = arith.addf %627, %632 : vector<8x192xf32>
    %cst_214 = arith.constant dense<0.000000e+00> : vector<8x192xf32>
    %634 = tpu.matmul %617, %341, %cst_214 {dimension_numbers = #tpu.dot_dimension_numbers<[1], [0], [0], [1], [0, 0, 1, 1], [], []>} : vector<8x64xf32>, vector<64x192xf32>, vector<8x192xf32> -> vector<8x192xf32>
    %635 = vector.broadcast %343 : vector<1x192xf32> to vector<8x192xf32>
    %636 = arith.addf %634, %635 : vector<8x192xf32>
    %637 = vector.extract_strided_slice %633 {offsets = [0, 0], sizes = [8, 128], strides = [1, 1]} : vector<8x192xf32> to vector<8x128xf32>
    %638 = vector.extract_strided_slice %636 {offsets = [0, 0], sizes = [8, 128], strides = [1, 1]} : vector<8x192xf32> to vector<8x128xf32>
    %639 = arith.addf %637, %638 : vector<8x128xf32>
    %640 = arith.negf %639 : vector<8x128xf32>
    %641 = math.exp %640 : vector<8x128xf32>
    %cst_215 = arith.constant 1.000000e+00 : f32
    %642 = vector.broadcast %cst_215 : f32 to vector<8x128xf32>
    %643 = arith.addf %642, %641 : vector<8x128xf32>
    %644 = arith.divf %642, %643 : vector<8x128xf32>
    %645 = vector.extract_strided_slice %644 {offsets = [0, 0], sizes = [8, 64], strides = [1, 1]} : vector<8x128xf32> to vector<8x64xf32>
    %646 = vector.extract_strided_slice %644 {offsets = [0, 64], sizes = [8, 64], strides = [1, 1]} : vector<8x128xf32> to vector<8x64xf32>
    %647 = vector.extract_strided_slice %633 {offsets = [0, 128], sizes = [8, 64], strides = [1, 1]} : vector<8x192xf32> to vector<8x64xf32>
    %648 = vector.extract_strided_slice %636 {offsets = [0, 128], sizes = [8, 64], strides = [1, 1]} : vector<8x192xf32> to vector<8x64xf32>
    %649 = arith.mulf %645, %648 : vector<8x64xf32>
    %650 = arith.addf %647, %649 : vector<8x64xf32>
    %651 = math.tanh %650 : vector<8x64xf32>
    %cst_216 = arith.constant 1.000000e+00 : f32
    %652 = vector.broadcast %cst_216 : f32 to vector<8x64xf32>
    %653 = arith.subf %652, %646 : vector<8x64xf32>
    %654 = arith.mulf %653, %651 : vector<8x64xf32>
    %655 = arith.mulf %646, %617 : vector<8x64xf32>
    %656 = arith.addf %654, %655 : vector<8x64xf32>
    %c8_i32_217 = arith.constant 8 : i32
    %c1_218 = arith.constant 1 : index
    %c0_219 = arith.constant 0 : index
    %c0_220 = arith.constant 0 : index
    %657 = vector.load %arg11[%c1_218, %c0_219, %c0_220] : memref<2x64x32xf32, #tpu.memory_space<vmem>>, vector<1x64x32xf32>
    %658 = vector.shape_cast %657 : vector<1x64x32xf32> to vector<64x32xf32>
    %cst_221 = arith.constant dense<0.000000e+00> : vector<8x32xf32>
    %659 = tpu.matmul %656, %658, %cst_221 {dimension_numbers = #tpu.dot_dimension_numbers<[1], [0], [0], [1], [0, 0, 1, 1], [], []>} : vector<8x64xf32>, vector<64x32xf32>, vector<8x32xf32> -> vector<8x32xf32>
    %660 = arith.addf %324, %659 : vector<8x32xf32>
    %c0_222 = arith.constant 0 : index
    %c0_223 = arith.constant 0 : index
    %661 = vector.load %arg12[%c0_222, %c0_223] : memref<1x32xf32, #tpu.memory_space<vmem>>, vector<1x32xf32>
    %662 = vector.broadcast %661 : vector<1x32xf32> to vector<8x32xf32>
    %663 = arith.addf %660, %662 : vector<8x32xf32>
    %cst_224 = arith.constant 0.000000e+00 : f32
    %664 = vector.broadcast %cst_224 : f32 to vector<8x32xf32>
    %665 = arith.maximumf %663, %664 : vector<8x32xf32>
    %c0_225 = arith.constant 0 : index
    %c0_226 = arith.constant 0 : index
    %666 = vector.load %arg13[%c0_225, %c0_226] : memref<32x1xf32, #tpu.memory_space<vmem>>, vector<32x1xf32>
    %cst_227 = arith.constant dense<0.000000e+00> : vector<8x1xf32>
    %667 = tpu.matmul %665, %666, %cst_227 {dimension_numbers = #tpu.dot_dimension_numbers<[1], [0], [0], [1], [0, 0, 1, 1], [], []>} : vector<8x32xf32>, vector<32x1xf32>, vector<8x1xf32> -> vector<8x1xf32>
    %c0_228 = arith.constant 0 : index
    %c0_229 = arith.constant 0 : index
    %668 = vector.load %arg14[%c0_228, %c0_229] : memref<1x1xf32, #tpu.memory_space<vmem>>, vector<1x1xf32>
    %669 = vector.broadcast %668 : vector<1x1xf32> to vector<8x1xf32>
    %670 = arith.addf %667, %669 : vector<8x1xf32>
    %c0_230 = arith.constant 0 : index
    %c0_231 = arith.constant 0 : index
    %671 = vector.load %arg15[%c0_230, %c0_231] : memref<8x1xf32, #tpu.memory_space<vmem>>, vector<8x1xf32>
    tpu.vector_store %arg15[%c0_230, %c0_231], %670 {strides = array<i32>} : memref<8x1xf32, #tpu.memory_space<vmem>>, vector<8x1xf32>,
    return
  }
}

</mosaic_0001>

<bundles_post_ra>
// kernel: tpu_custom_call.1
= control target key start
LH: loop header
LB: loop body
LE: loop exit
PB: predicated region body
PF: predicated region fallthrough
CT: control target
= control target key end

     0   :  { %s4887_s0 = inlined_call_operand.vmem [shape: f32[64,16], index: 0, kind: input, shape index: {}]   ;;  %s4888_s1 = inlined_call_operand.vmem [shape: f32[16,16], index: 1, kind: input, shape index: {}]   ;;  %s4889_s2 = inlined_call_operand.vmem [shape: f32[1,16], index: 2, kind: input, shape index: {}]   ;;  %s4890_s3 = inlined_call_operand.hbm [shape: f32[16,16], index: 3, kind: input, shape index: {}]   ;;  %s4891_s4 = inlined_call_operand.vmem [shape: f32[1,16], index: 4, kind: input, shape index: {}]   ;;  %s4892_s5 = inlined_call_operand.hbm [shape: f32[16,192], index: 5, kind: input, shape index: {}]   ;;  %s4893_s6 = inlined_call_operand.hbm [shape: f32[1,32,192], index: 6, kind: input, shape index: {}]   ;;  %s4894_s7 = inlined_call_operand.hbm [shape: f32[1,32,192], index: 7, kind: input, shape index: {}]   ;;  %s4895_s8 = inlined_call_operand.vmem [shape: f32[2,1,192], index: 8, kind: input, shape index: {}]   ;;  %s4896_s9 = inlined_call_operand.vmem [shape: f32[2,64,192], index: 9, kind: input, shape index: {}]   ;;  %s4897_s10 = inlined_call_operand.vmem [shape: f32[2,1,192], index: 10, kind: input, shape index: {}]   ;;  %s4898_s11 = inlined_call_operand.vmem [shape: f32[2,64,32], index: 11, kind: input, shape index: {}]   ;;  %s4899_s12 = inlined_call_operand.vmem [shape: f32[1,32], index: 12, kind: input, shape index: {}]   ;;  %s4900_s13 = inlined_call_operand.vmem [shape: f32[32,1], index: 13, kind: input, shape index: {}]   ;;  %s4901_s14 = inlined_call_operand.<no memory space> [shape: f32[1,1], index: 14, kind: input, shape index: {}]   ;;  %s4902_s15 = inlined_call_operand.vmem [shape: f32[8,1], index: 15, kind: output, shape index: {}]  }
   0x1   :  { %v20_v0 = vstv %s4901_s14 }
   0x2   :  { %21 = vst [vmem:[#allocation5] sm:$0x1] %v20_v0 }
   0x3   :  { %22 = vsyncpa [#allocation7], 0 }
   0x4   :  { %23 = vsyncpa [#allocation9], 0 }
   0x5   :  { %24 = vsyncpa [#allocation12], 0  ;;  %s3718_s20 = smov [#allocation8]   ;;  %s3624_s24 = scalar_lea.hbm %s4892_s5, 512 }
   0x6   :  { %s50_s21 = sshll.u32 %s3718_s20, 4  ;;  %p3625_p0 = scmp.ne.s32.totalorder %s4892_s5, %s3624_s24  ;;  %s51_s21 = int_to_ptr.vmem [resolvable:$true] %s50_s21 }
   0x7   :  { %p3628_p1 = scmp.lt.u32.totalorder %s3624_s24, %s4892_s5 }
   0x9   :  { %p3630_p2 = pnand %p3628_p1, %p3625_p0 }
   0xb   :  { %3633 = shalt.err (!%p3630_p2)
}
   0xc   :  { %s3634_s14 = scalar_lea.vmem %s51_s21, 512  ;;  %p3639_p4 = scmp.lt.s32.totalorder %s51_s21, %s51_s21 }
   0xd   :  { %p3635_p3 = scmp.ne.s32.totalorder %s51_s21, %s3634_s14  ;;  %p3640_p5 = scmp.lt.s32.totalorder %s3634_s14, %s3634_s14 }
   0xf   :  { %p3641_p6 = por %p3640_p5, %p3639_p4 }
  0x11   :  { %p3642_p7 = pnand %p3641_p6, %p3635_p3 }
  0x13   :  { %3645 = shalt.err (!%p3642_p7)
}
  0x14   :  { %s4903_s29 = smov 256   ;;  %s3720_s30 = smov 16  }
  0x15   :  { %56 = dma.hbm_to_vmem [thread:$0]  %s4892_s5, 512, %s51_s21, [#allocation9], %s4903_s29, %s4903_s29, %s3720_s30  }
  0x16   :  { %s3721_s18 = smov [#allocation6]   ;;  %s3646_s23 = scalar_lea.hbm %s4890_s3, 256 }
  0x17   :  { %s36_s19 = sshll.u32 %s3721_s18, 4  ;;  %p3647_p8 = scmp.ne.s32.totalorder %s4890_s3, %s3646_s23  ;;  %s37_s19 = int_to_ptr.vmem [resolvable:$true] %s36_s19 }
  0x18   :  { %p3650_p9 = scmp.lt.u32.totalorder %s3646_s23, %s4890_s3 }
  0x1a   :  { %p3652_p10 = pnand %p3650_p9, %p3647_p8 }
  0x1c   :  { %3655 = shalt.err (!%p3652_p10)
}
  0x1d   :  { %s3656_s28 = scalar_lea.vmem %s37_s19, 256  ;;  %p3661_p12 = scmp.lt.s32.totalorder %s37_s19, %s37_s19 }
  0x1e   :  { %p3657_p11 = scmp.ne.s32.totalorder %s37_s19, %s3656_s28  ;;  %p3662_p13 = scmp.lt.s32.totalorder %s3656_s28, %s3656_s28 }
  0x20   :  { %p3663_p0 = por %p3662_p13, %p3661_p12 }
  0x22   :  { %p3664_p1 = pnand %p3663_p0, %p3657_p11 }
  0x24   :  { %3667 = shalt.err (!%p3664_p1)
}
  0x25   :  { %s3722_s5 = smov 128   ;;  %s3723_s21 = smov 8  }
  0x26   :  { %42 = dma.hbm_to_vmem [thread:$0]  %s4890_s3, 256, %s37_s19, [#allocation7], %s3722_s5, %s3722_s5, %s3723_s21  }
  0x27   :  { %s3724_s17 = smov [#allocation10]   ;;  %s3725_s20 = smov [#allocation11]  }
  0x28   :  { %s62_s18 = sshll.u32 %s3724_s17, 4  ;;  %s74_s22 = sshll.u32 %s3725_s20, 4  ;;  %s63_s18 = int_to_ptr.vmem [resolvable:$true] %s62_s18  ;;  %s3841_s22 = int_to_ptr.vmem [resolvable:$true] %s74_s22 }
  0x29   :  { %s3668_s25 = scalar_lea.hbm %s4893_s6, 1024 }
  0x2a   :  { %p3669_p2 = scmp.ne.s32.totalorder %s4893_s6, %s3668_s25  ;;  %p3672_p3 = scmp.lt.u32.totalorder %s3668_s25, %s4893_s6 }
  0x2c   :  { %p3674_p4 = pnand %p3672_p3, %p3669_p2 }
  0x2e   :  { %3677 = shalt.err (!%p3674_p4)
}
  0x2f   :  { %s3678_s3 = scalar_lea.vmem %s63_s18, 1024  ;;  %p3683_p6 = scmp.lt.s32.totalorder %s63_s18, %s63_s18 }
  0x30   :  { %p3679_p5 = scmp.ne.s32.totalorder %s63_s18, %s3678_s3  ;;  %p3684_p7 = scmp.lt.s32.totalorder %s3678_s3, %s3678_s3 }
  0x32   :  { %p3685_p8 = por %p3684_p7, %p3683_p6 }
  0x34   :  { %p3686_p9 = pnand %p3685_p8, %p3679_p5 }
  0x36   :  { %3689 = shalt.err (!%p3686_p9)
}
  0x37   :  { %s4905_s19 = smov 256   ;;  %s3690_s29 = scalar_lea.hbm %s4894_s7, 1024 }
  0x38   :  { %68 = dma.hbm_to_vmem [thread:$0]  %s4893_s6, 1024, %s63_s18, [#allocation9], %s4905_s19, %s4905_s19, %s3720_s30  }
  0x39   :  { %p3691_p10 = scmp.ne.s32.totalorder %s4894_s7, %s3690_s29  ;;  %p3694_p11 = scmp.lt.u32.totalorder %s3690_s29, %s4894_s7 }
  0x3b   :  { %p3696_p12 = pnand %p3694_p11, %p3691_p10 }
  0x3d   :  { %3699 = shalt.err (!%p3696_p12)
}
  0x3e   :  { %s3700_s25 = scalar_lea.vmem %s3841_s22, 1024  ;;  %p3705_p0 = scmp.lt.s32.totalorder %s3841_s22, %s3841_s22 }
  0x3f   :  { %p3701_p13 = scmp.ne.s32.totalorder %s3841_s22, %s3700_s25  ;;  %p3706_p1 = scmp.lt.s32.totalorder %s3700_s25, %s3700_s25 }
  0x41   :  { %p3707_p2 = por %p3706_p1, %p3705_p0 }
  0x43   :  { %p3708_p3 = pnand %p3707_p2, %p3701_p13 }
  0x45   :  { %3711 = shalt.err (!%p3708_p3)
}
  0x46   :  { %80 = dma.hbm_to_vmem [thread:$0]  %s4894_s7, 1024, %s3841_s22, [#allocation12], %s4905_s19, %s4905_s19, %s3720_s30  }
  0x47   :  { %3712 = dma.done.wait [#allocation7], 256  }
  0x48   :  { %3713 = vsyncadd [#allocation7], 4294967040 }
  0x49   :  { %3714 = dma.done.wait [#allocation9], 1536  }
  0x4a   :  { %3715 = vsyncadd [#allocation9], 4294965760 }
  0x4b   :  { %3716 = dma.done.wait [#allocation12], 1024  }
  0x4c   :  { %3717 = vsyncadd [#allocation12], 4294966272  ;;  %vm153_vm0 = vcmask 130048   ;;  %v144_v1 = vld [vmem:[%s4888_s1] sm:$0xff]  ;;  %v145_v2 = vld [vmem:[%s4888_s1 + $0x8] sm:$0xff]  ;;  %v3726_v38 = vmov 0.0  }
  0x4d   :  { %v136_v3 = vld [vmem:[%s4887_s0] sm:$0xff]  ;;  %v3199_v4 = vpack.c.bf16 %v145_v2, %v144_v1  ;;  %v142_v5 = vld [vmem:[%s4887_s0 + $0x30] sm:$0xff]  ;;  %v137_v6 = vld [vmem:[%s4887_s0 + $0x8] sm:$0xff]  ;;  %vm575_vm1 = vcmask 523264   ;;  %s3727_s29 = smov 64   ;;  %vm1504_vm4 = vcmask 261120  }
  0x4e   :  { %3122 = vmatprep.mubr.msk.f32.mxu0 %vm153_vm0, %v136_v3  ;;  %v143_v7 = vld [vmem:[%s4887_s0 + $0x38] sm:$0xff]  ;;  %v138_v8 = vld [vmem:[%s4887_s0 + $0x10] sm:$0xff]  ;;  %3131 = vmatprep.mubr.msk.f32.mxu1 %vm153_vm0, %v142_v5  ;;  %v140_v10 = vld [vmem:[%s4887_s0 + $0x20] sm:$0xff]  ;;  %vm3730_vm5 = vmmov 0   ;;  %vm2949_vm6 = vcmask 7168  }
  0x4f   :  { %3200 = vmatprep.subr.bf16.mxu0 %v3199_v4  ;;  %3513 = vmatprep.subr.bf16.mxu1 %v3199_v4  ;;  %v139_v9 = vld [vmem:[%s4887_s0 + $0x18] sm:$0xff]  ;;  %v141_v11 = vld [vmem:[%s4887_s0 + $0x28] sm:$0xff]  ;;  %v2972_v21 = vld [vmem:[%s4889_s2] ss:$0 sm:$0xff] }
  0x50   :  { %3202 = vmatpush3.bf16.msra.mxu0 %v3199_v4  ;;  %3514 = vmatpush3.bf16.msra.mxu1 %v3199_v4  ;;  %v283_v12 = vld [vmem:[#allocation6] sm:$0xff]  ;;  %v284_v13 = vld [vmem:[#allocation6 + $0x8] sm:$0xff]  ;;  %v422_v15 = vld [vmem:[#allocation8 + $0x8] sm:$0xff] }
  0x51   :  { %v3203_v14 = vpack.c.bf16 %v284_v13, %v283_v12  ;;  %v424_v16 = vld [vmem:[#allocation8 + $0x18] sm:$0xff]  ;;  %v421_v17 = vld [vmem:[#allocation8] sm:$0xff]  ;;  %v423_v19 = vld [vmem:[#allocation8 + $0x10] sm:$0xff] }
  0x52   :  { %v3207_v18 = vpack.c.bf16 %v424_v16, %v422_v15  ;;  %v3209_v20 = vpack.c.bf16 %v423_v19, %v421_v17  ;;  %v592_v39 = vld [vmem:[%s4896_s9 + $0x8] sm:$0xff]  ;;  %v594_v40 = vld [vmem:[%s4896_s9 + $0x18] sm:$0xff]  ;;  %v591_v42 = vld [vmem:[%s4896_s9] sm:$0xff] }
  0x53   :  { %3123 = vmatmul.mubr.msk.f32.vlgmr.msra.gmra.mrb[0].mxu0 %vm153_vm0, %v137_v6  ;;  %3132 = vmatmul.mubr.msk.f32.vlgmr.msra.gmra.mrb[0].mxu1 %vm153_vm0, %v143_v7  ;;  %v3935_v41 = vpack.c.bf16 %v594_v40, %v592_v39  ;;  %v593_v43 = vld [vmem:[%s4896_s9 + $0x10] sm:$0xff]  ;;  %v596_v45 = vld [vmem:[%s4896_s9 + $0x28] sm:$0xff]  ;;  %v598_v46 = vld [vmem:[%s4896_s9 + $0x38] sm:$0xff] }
  0x54   :  { %3125 = vmatprep.mubr.msk.f32.mxu0 %vm153_vm0, %v138_v8  ;;  %3204 = vmatprep.subr.bf16.mxu1 %v3203_v14  ;;  %v3943_v44 = vpack.c.bf16 %v593_v43, %v591_v42  ;;  %v3954_v47 = vpack.c.bf16 %v598_v46, %v596_v45  ;;  %v595_v48 = vld [vmem:[%s4896_s9 + $0x20] sm:$0xff]  ;;  %v597_v49 = vld [vmem:[%s4896_s9 + $0x30] sm:$0xff]  ;;  %v600_v51 = vld [vmem:[%s4896_s9 + $0x48] sm:$0xff] }
  0x55   :  { %3206 = vmatpush3.bf16.msra.mxu1 %v3203_v14  ;;  %3208 = vmatprep.subr.bf16.mxu0 %v3207_v18  ;;  %v3962_v50 = vpack.c.bf16 %v597_v49, %v595_v48  ;;  %v602_v52 = vld [vmem:[%s4896_s9 + $0x58] sm:$0xff]  ;;  %v599_v54 = vld [vmem:[%s4896_s9 + $0x40] sm:$0xff]  ;;  %v601_v55 = vld [vmem:[%s4896_s9 + $0x50] sm:$0xff]  ;;  %v107_v18 = vlaneseq }
  0x56   :  { %3210 = vmatpush1.bf16.msra.mxu0 %v3209_v20  ;;  %3212 = vmatprep.subr.bf16.mxu1 %v3935_v41  ;;  %v3972_v53 = vpack.c.bf16 %v602_v52, %v600_v51  ;;  %v3980_v56 = vpack.c.bf16 %v601_v55, %v599_v54  ;;  %v604_v57 = vld [vmem:[%s4896_s9 + $0x68] sm:$0xff]  ;;  %v606_v58 = vld [vmem:[%s4896_s9 + $0x78] sm:$0xff]  ;;  %v603_v60 = vld [vmem:[%s4896_s9 + $0x60] sm:$0xff] }
  0x57   :  { %3126 = vmatmul.mubr.msk.f32.gmra.mrb[2].mxu0 %vm153_vm0, %v139_v9  ;;  %3244 = vmatprep.subr.bf16.mxu0 %v3935_v41  ;;  %v3990_v59 = vpack.c.bf16 %v606_v58, %v604_v57  ;;  %v605_v61 = vld [vmem:[%s4896_s9 + $0x70] sm:$0xff]  ;;  %v2981_v63 = vld [vmem:[%s4891_s4] ss:$0 sm:$0xff]  ;;  %v428_v19 = vshrl.u32 %v107_v18, 7 }
  0x58   :  { %3128 = vmatprep.mubr.msk.f32.mxu0 %vm153_vm0, %v140_v10  ;;  %v3998_v62 = vpack.c.bf16 %v605_v61, %v603_v60  ;;  %v607_v60 = vld [vmem:[%s4897_s10] sm:$0x3] }
  0x59   :  { %v4042_v20 = vsub.s32 1, %v428_v19 }
  0x5b   :  { %3129 = vmatmul.mubr.msk.f32.gmra.mrb[4].mxu0 %vm153_vm0, %v141_v11 }
  0x5c   :  { %525 = vmatprep.mubr.f32.mxu0 %v3726_v38 }
 0x126   :  { %v3124_v22 = vpop.f32.mrb[0].mxu0  ;;  %v3133_v23 = vpop.f32.mrb[0].mxu1 }
 0x127   :  { %v244_v24 = vpop.f32.mrb[1].mxu0  ;;  %v274_v25 = vpop.f32.mrb[1].mxu1  ;;  %v250_v27 = vadd.f32 %v3124_v22, %v2972_v21  ;;  %v280_v37 = vadd.f32 %v3133_v23, %v2972_v21  ;;  %v4048_v23 = vsub.s32 0, %v428_v19 }
 0x128   :  { %v245_v26 = vadd.f32 %v2972_v21, %v244_v24  ;;  %v275_v36 = vadd.f32 %v2972_v21, %v274_v25 }
 0x12a   :  { %3138 = vmatprep.mubr.msk.f32.mxu1 %vm153_vm0, %v245_v26  ;;  %v3127_v28 = vpop.f32.mrb[2].mxu0 }
 0x12b   :  { %v260_v29 = vadd.f32 %v3127_v28, %v2972_v21  ;;  %3139 = vmatmul.mubr.msk.f32.vlgmr.msra.gmra.mrb[2].mxu1 %vm153_vm0, %v250_v27  ;;  %v254_v30 = vpop.f32.mrb[3].mxu0 }
 0x12c   :  { %v255_v31 = vadd.f32 %v2972_v21, %v254_v30  ;;  %3214 = vmatpush1.bf16.msra.mxu1 %v3943_v44 }
 0x12d   :  { %3216 = vmatprep.subr.bf16.mxu1 %v3954_v47 }
 0x12e   :  { %3141 = vmatprep.mubr.msk.f32.mxu1 %vm153_vm0, %v255_v31  ;;  %v3130_v32 = vpop.f32.mrb[4].mxu0 }
 0x12f   :  { %3142 = vmatmul.mubr.msk.f32.gmra.mrb[4].mxu1 %vm153_vm0, %v260_v29  ;;  %v270_v33 = vadd.f32 %v3130_v32, %v2972_v21  ;;  %v264_v34 = vpop.f32.mrb[5].mxu0  ;;  %v108_v32 = vand.u32 127, %v107_v18 }
 0x130   :  { %v265_v35 = vadd.f32 %v2972_v21, %v264_v34  ;;  %3218 = vmatpush1.bf16.msra.mxu1 %v3962_v50  ;;  %v425_v21 = vld [vmem:[%s4895_s8] sm:$0x3] }
 0x131   :  { %3220 = vmatprep.subr.bf16.mxu1 %v3972_v53  ;;  %v434_v22 = vrot.slane %v425_v21, %v4042_v20  ;;  %v430_v27 = vrot.slane %v425_v21, %v4048_v23 }
 0x132   :  { %3144 = vmatprep.mubr.msk.f32.mxu1 %vm153_vm0, %v265_v35 }
 0x133   :  { %3145 = vmatmul.mubr.msk.f32.gmra.mrb[6].mxu1 %vm153_vm0, %v270_v33 }
 0x134   :  { %3147 = vmatprep.mubr.msk.f32.mxu1 %vm153_vm0, %v275_v36  ;;  %3222 = vmatpush1.bf16.msra.mxu1 %v3980_v56 }
 0x135   :  { %3224 = vmatprep.subr.bf16.mxu1 %v3990_v59 }
 0x137   :  { %3148 = vmatmul.mubr.msk.f32.gmra.mrb[8].mxu1 %vm153_vm0, %v280_v37  ;;  %v114_v37 = vand.u32 63, %v108_v32 }
 0x138   :  { %698 = vmatprep.mubr.f32.mxu1 %v3726_v38  ;;  %3226 = vmatpush1.bf16.msra.mxu1 %v3998_v62 }
 0x139   :  { %3228 = vmatprep.subr.bf16.mxu1 %v3935_v41  ;;  %vm4060_vm2 = vcmp.lt.s32.totalorder %v114_v37, 32 }
 0x13b   :  { %699 = vmatmul.mubr.f32.vlgmr.msra.gmra.mrb[10].mxu1 %v3726_v38 }
 0x13c   :  { %3230 = vmatpush1.bf16.msra.mxu1 %v3943_v44  ;;  %806 = vmatprep.mubr.f32.mxu1 %v3726_v38 }
 0x13d   :  { %3232 = vmatprep.subr.bf16.mxu1 %v3954_v47 }
 0x140   :  { %3234 = vmatpush1.bf16.msra.mxu1 %v3962_v50 }
 0x141   :  { %3236 = vmatprep.subr.bf16.mxu1 %v3972_v53 }
 0x144   :  { %3238 = vmatpush1.bf16.msra.mxu1 %v3980_v56 }
 0x145   :  { %3240 = vmatprep.subr.bf16.mxu1 %v3990_v59 }
 0x148   :  { %3242 = vmatpush1.bf16.msra.mxu1 %v3998_v62 }
 0x149   :  { %3260 = vmatprep.subr.bf16.mxu1 %v3935_v41 }
 0x1fe   :  { %v3140_v0 = vpop.f32.mrb[2].mxu1 }
 0x1ff   :  { %v382_v1 = vpop.f32.mrb[3].mxu1  ;;  %v388_v5 = vadd.f32 %v3140_v0, %v2981_v63 }
 0x200   :  { %v383_v2 = vadd.f32 %v2981_v63, %v382_v1 }
 0x202   :  { %2990 = vmatmul.mubr.msk.f32.vlgmr.msra.gmra.mrb[6].mxu0 %vm153_vm0, %v383_v2  ;;  %v3143_v3 = vpop.f32.mrb[4].mxu1  ;;  %v4091_v2 = vrot.slane %v607_v60, %v4048_v23 }
 0x203   :  { %v392_v4 = vpop.f32.mrb[5].mxu1  ;;  %531 = vmatprep.mubr.f32.mxu0 %v3726_v38  ;;  %3246 = vmatpush1.bf16.msra.mxu0 %v3943_v44  ;;  %v398_v11 = vadd.f32 %v3143_v3, %v2981_v63 }
 0x204   :  { %3248 = vmatprep.subr.bf16.mxu0 %v3954_v47  ;;  %v393_v8 = vadd.f32 %v2981_v63, %v392_v4 }
 0x206   :  { %2991 = vmatmul.mubr.msk.f32.gmra.mrb[8].mxu0 %vm153_vm0, %v388_v5  ;;  %v3146_v6 = vpop.f32.mrb[6].mxu1 }
 0x207   :  { %537 = vmatprep.mubr.f32.mxu0 %v3726_v38  ;;  %v402_v7 = vpop.f32.mrb[7].mxu1  ;;  %3250 = vmatpush1.bf16.msra.mxu0 %v3962_v50  ;;  %v408_v13 = vadd.f32 %v3146_v6, %v2981_v63 }
 0x208   :  { %3252 = vmatprep.subr.bf16.mxu0 %v3972_v53  ;;  %v403_v12 = vadd.f32 %v2981_v63, %v402_v7 }
 0x20a   :  { %2992 = vmatmul.mubr.msk.f32.gmra.mrb[10].mxu0 %vm153_vm0, %v393_v8  ;;  %v3149_v9 = vpop.f32.mrb[8].mxu1 }
 0x20b   :  { %543 = vmatprep.mubr.f32.mxu0 %v3726_v38  ;;  %v412_v10 = vpop.f32.mrb[9].mxu1  ;;  %3254 = vmatpush1.bf16.msra.mxu0 %v3980_v56  ;;  %v418_v15 = vadd.f32 %v3149_v9, %v2981_v63 }
 0x20c   :  { %3256 = vmatprep.subr.bf16.mxu0 %v3990_v59  ;;  %v413_v14 = vadd.f32 %v2981_v63, %v412_v10 }
 0x20e   :  { %2993 = vmatmul.mubr.msk.f32.gmra.mrb[12].mxu0 %vm153_vm0, %v398_v11  ;;  %v700_v16 = vpop.f32.mrb[10].mxu1 }
 0x20f   :  { %549 = vmatprep.mubr.f32.mxu0 %v3726_v38  ;;  %3258 = vmatpush1.bf16.msra.mxu0 %v3998_v62  ;;  %v4040_v17 = vpop.f32.mrb[11].mxu1  ;;  %v701_v9 = vadd.f32 %v700_v16, %v4091_v2 }
 0x210   :  { %3276 = vmatprep.subr.bf16.mxu0 %v3935_v41 }
 0x212   :  { %2994 = vmatmul.mubr.msk.f32.gmra.mrb[14].mxu0 %vm153_vm0, %v403_v12 }
 0x213   :  { %555 = vmatprep.mubr.f32.mxu0 %v3726_v38 }
 0x216   :  { %2995 = vmatmul.mubr.msk.f32.gmra.mrb[16].mxu0 %vm153_vm0, %v408_v13 }
 0x217   :  { %561 = vmatprep.mubr.f32.mxu0 %v3726_v38 }
 0x21a   :  { %2996 = vmatmul.mubr.msk.f32.gmra.mrb[18].mxu0 %vm153_vm0, %v413_v14 }
 0x21b   :  { %567 = vmatprep.mubr.f32.mxu0 %v3726_v38 }
 0x21e   :  { %2997 = vmatmul.mubr.msk.f32.gmra.mrb[20].mxu0 %vm153_vm0, %v418_v15 }
 0x21f   :  { %915 = vmatprep.mubr.f32.mxu0 %v3726_v38 }
 0x2d5   :  { %v527_v24 = vpop.f32.mrb[6].mxu0 }
 0x2d6   :  { %v529_v25 = vpop.f32.mrb[7].mxu0  ;;  %v4105_v10 = vadd.f32 %v527_v24, %v430_v27  ;;  %v109_v24 = vadd.s32 128, %v108_v32 }
 0x2d7   :  { %v530_v26 = vadd.f32 %v529_v25, %v434_v22 }
 0x2d8   :  { %v121_v25 = vand.u32 63, %v109_v24 }
 0x2d9   :  { %576 = vst.msk [vmem:[#allocation2 + $0x8] sm:$0xff] %vm575_vm1, %v530_v26  ;;  %v533_v28 = vpop.f32.mrb[8].mxu0 }
 0x2da   :  { %v4052_v29 = vadd.f32 %v533_v28, %v430_v27  ;;  %v535_v30 = vpop.f32.mrb[9].mxu0  ;;  %vm4125_vm3 = vcmp.lt.s32.totalorder %v121_v25, 32 }
 0x2db   :  { %v536_v31 = vadd.f32 %v535_v30, %v434_v22 }
 0x2dd   :  { %578 = vst.msk [vmem:[#allocation2 + $0x18] sm:$0xff] %vm575_vm1, %v536_v31  ;;  %v539_v33 = vpop.f32.mrb[10].mxu0 }
 0x2de   :  { %v4055_v34 = vadd.f32 %v539_v33, %v430_v27  ;;  %v541_v35 = vpop.f32.mrb[11].mxu0 }
 0x2df   :  { %v542_v36 = vadd.f32 %v541_v35, %v434_v22 }
 0x2e0   :  { %v4129_v31 = vld [vmem:[#allocation2 + $0x8] sm:$0xff] }
 0x2e1   :  { %580 = vst.msk [vmem:[#allocation2 + $0x28] sm:$0xff] %vm575_vm1, %v542_v36  ;;  %v545_v39 = vpop.f32.mrb[12].mxu0 }
 0x2e2   :  { %v4058_v40 = vadd.f32 %v545_v39, %v430_v27  ;;  %v547_v42 = vpop.f32.mrb[13].mxu0 }
 0x2e3   :  { %v548_v43 = vadd.f32 %v547_v42, %v434_v22 }
 0x2e5   :  { %582 = vst.msk [vmem:[#allocation2 + $0x38] sm:$0xff] %vm575_vm1, %v548_v43  ;;  %v551_v46 = vpop.f32.mrb[14].mxu0 }
 0x2e6   :  { %v4065_v48 = vadd.f32 %v551_v46, %v430_v27  ;;  %v553_v49 = vpop.f32.mrb[15].mxu0 }
 0x2e7   :  { %v554_v51 = vadd.f32 %v553_v49, %v434_v22 }
 0x2e8   :  { %v956_v52 = vsel %vm4060_vm2, %v4058_v40, %v4065_v48  ;;  %v1059_v54 = vsel %vm4060_vm2, %v4065_v48, %v4058_v40 }
 0x2e9   :  { %584 = vst.msk [vmem:[#allocation2 + $0x48] sm:$0xff] %vm575_vm1, %v554_v51  ;;  %v557_v55 = vpop.f32.mrb[16].mxu0 }
 0x2ea   :  { %v4076_v57 = vadd.f32 %v557_v55, %v430_v27  ;;  %v559_v58 = vpop.f32.mrb[17].mxu0 }
 0x2eb   :  { %v560_v61 = vadd.f32 %v559_v58, %v434_v22 }
 0x2ec   :  { %v847_v63 = vsel %vm4060_vm2, %v4055_v34, %v4076_v57  ;;  %v1162_v0 = vsel %vm4060_vm2, %v4076_v57, %v4055_v34 }
 0x2ed   :  { %586 = vst.msk [vmem:[#allocation2 + $0x58] sm:$0xff] %vm575_vm1, %v560_v61  ;;  %v563_v1 = vpop.f32.mrb[18].mxu0 }
 0x2ee   :  { %v4093_v3 = vadd.f32 %v563_v1, %v430_v27  ;;  %v565_v4 = vpop.f32.mrb[19].mxu0 }
 0x2ef   :  { %v566_v5 = vadd.f32 %v565_v4, %v434_v22 }
 0x2f0   :  { %v738_v6 = vsel %vm4060_vm2, %v4052_v29, %v4093_v3  ;;  %v1265_v7 = vsel %vm4060_vm2, %v4093_v3, %v4052_v29 }
 0x2f1   :  { %588 = vst.msk [vmem:[#allocation2 + $0x68] sm:$0xff] %vm575_vm1, %v566_v5  ;;  %v569_v8 = vpop.f32.mrb[20].mxu0 }
 0x2f2   :  { %v4107_v11 = vadd.f32 %v569_v8, %v430_v27  ;;  %v571_v12 = vpop.f32.mrb[21].mxu0 }
 0x2f3   :  { %v572_v13 = vadd.f32 %v571_v12, %v434_v22  ;;  %v4119_v22 = vrot.slane %v607_v60, %v4042_v20 }
 0x2f4   :  { %v618_v14 = vsel %vm4060_vm2, %v4105_v10, %v4107_v11  ;;  %v1368_v15 = vsel %vm4060_vm2, %v4107_v11, %v4105_v10 }
 0x2f5   :  { %590 = vst.msk [vmem:[#allocation2 + $0x78] sm:$0xff] %vm575_vm1, %v572_v13  ;;  %v705_v18 = vadd.f32 %v701_v9, %v618_v14  ;;  %v703_v27 = vadd.f32 %v4040_v17, %v4119_v22  ;;  %v4152_v9 = vld [vmem:[#allocation2 + $0x18] sm:$0xff] }
 0x2f7   :  { %v2998_v16 = vmul.f32 -1.442695, %v705_v18 }
 0x2f8   :  { %v4149_v4 = vld [vmem:[#allocation2 + $0x68] sm:$0xff] }
 0x2f9   :  { %3528 = vpow2.f32 %v2998_v16  ;;  %v739_v13 = vsel %vm4125_vm3, %v4152_v9, %v4149_v4 }
 0x2fc   :  { %v4121_v26 = vld [vmem:[#allocation2 + $0x78] sm:$0xff] }
 0x2fd   :  { %v619_v32 = vsel %vm4125_vm3, %v4129_v31, %v4121_v26 }
 0x303   :  { %v3529_v19 = vpop.eup %3528 }
 0x304   :  { %v709_v21 = vadd.f32 1.0, %v3529_v19 }
 0x306   :  { %3530 = vrcp.f32 %v709_v21 }
 0x310   :  { %v3531_v28 = vpop.eup %3530 }
 0x311   :  { %v712_v33 = vmul.f32 %v3531_v28, %v703_v27  ;;  %v715_v17 = vsub.f32 1.0, %v3531_v28  ;;  %v721_v39 = vmul.f32 0.0, %v3531_v28 }
 0x313   :  { %v713_v35 = vadd.f32 %v712_v33, %v619_v32 }
 0x315   :  { %3532 = vtanh.f32 %v713_v35 }
 0x31f   :  { %v3533_v36 = vpop.eup %3532 }
 0x320   :  { %717 = vrot.lane.b32.xlu0 %v3533_v36, %s3727_s29 }
 0x392   :  { %v718_v37 = vpop.permute.xlu0 %717 }
 0x393   :  { %v720_v42 = vmul.f32 %v718_v37, %v715_v17  ;;  %v4177_v37 = vld [vmem:[#allocation2 + $0x58] sm:$0xff] }
 0x395   :  { %v722_v43 = vadd.f32 %v721_v39, %v720_v42 }
 0x397   :  { %724 = vrot.lane.b32.xlu0 %v722_v43, %s3727_s29 }
 0x409   :  { %v725_v46 = vpop.permute.xlu0 %724 }
 0x40a   :  { %727 = vst.msk [vmem:[#allocation4] sm:$0xff] %vm575_vm1, %v725_v46  ;;  %2999 = vmatmul.mubr.msk.f32.vlgmr.msra.gmra.mrb[12].mxu1 %vm575_vm1, %v725_v46 }
 0x40b   :  { %3262 = vmatpush1.bf16.msra.mxu1 %v3943_v44  ;;  %1024 = vmatprep.mubr.f32.mxu1 %v3726_v38 }
 0x40c   :  { %3264 = vmatprep.subr.bf16.mxu1 %v3954_v47 }
 0x40f   :  { %3266 = vmatpush1.bf16.msra.mxu1 %v3962_v50 }
 0x410   :  { %3268 = vmatprep.subr.bf16.mxu1 %v3972_v53 }
 0x413   :  { %3270 = vmatpush1.bf16.msra.mxu1 %v3980_v56 }
 0x414   :  { %3272 = vmatprep.subr.bf16.mxu1 %v3990_v59 }
 0x417   :  { %3274 = vmatpush1.bf16.msra.mxu1 %v3998_v62 }
 0x418   :  { %3292 = vmatprep.subr.bf16.mxu1 %v3935_v41 }
 0x4dd   :  { %v808_v49 = vpop.f32.mrb[12].mxu1 }
 0x4de   :  { %v809_v51 = vadd.f32 %v808_v49, %v4091_v2  ;;  %v810_v55 = vpop.f32.mrb[13].mxu1 }
 0x4df   :  { %v811_v5 = vadd.f32 %v810_v55, %v4119_v22 }
 0x4e0   :  { %v813_v58 = vadd.f32 %v809_v51, %v738_v6 }
 0x4e2   :  { %v3000_v60 = vmul.f32 -1.442695, %v813_v58 }
 0x4e4   :  { %3534 = vpow2.f32 %v3000_v60 }
 0x4ee   :  { %v3535_v61 = vpop.eup %3534 }
 0x4ef   :  { %v817_v1 = vadd.f32 1.0, %v3535_v61 }
 0x4f1   :  { %3536 = vrcp.f32 %v817_v1 }
 0x4fb   :  { %v3537_v8 = vpop.eup %3536 }
 0x4fc   :  { %v820_v12 = vmul.f32 %v3537_v8, %v811_v5  ;;  %v823_v18 = vsub.f32 1.0, %v3537_v8  ;;  %v829_v19 = vmul.f32 %v3537_v8, %v722_v43  ;;  %v4180_v43 = vld [vmem:[#allocation2 + $0x28] sm:$0xff] }
 0x4fd   :  { %v848_v49 = vsel %vm4125_vm3, %v4180_v43, %v4177_v37 }
 0x4fe   :  { %v821_v14 = vadd.f32 %v820_v12, %v739_v13 }
 0x500   :  { %3538 = vtanh.f32 %v821_v14 }
 0x50a   :  { %v3539_v6 = vpop.eup %3538 }
 0x50b   :  { %825 = vrot.lane.b32.xlu1 %v3539_v6, %s3727_s29 }
 0x57d   :  { %v826_v16 = vpop.permute.xlu1 %825 }
 0x57e   :  { %v828_v21 = vmul.f32 %v826_v16, %v823_v18 }
 0x580   :  { %v830_v24 = vadd.f32 %v829_v19, %v828_v21  ;;  %v955_v19 = vld [vmem:[#allocation2 + $0x48] sm:$0xff] }
 0x582   :  { %832 = vrot.lane.b32.xlu1 %v830_v24, %s3727_s29 }
 0x5f4   :  { %v833_v25 = vpop.permute.xlu1 %832 }
 0x5f5   :  { %836 = vst.msk [vmem:[#allocation4 + $0x8] sm:$0xff] %vm575_vm1, %v833_v25  ;;  %3001 = vmatmul.mubr.msk.f32.vlgmr.msra.gmra.mrb[22].mxu0 %vm575_vm1, %v833_v25 }
 0x5f6   :  { %3278 = vmatpush1.bf16.msra.mxu0 %v3943_v44  ;;  %1127 = vmatprep.mubr.f32.mxu0 %v3726_v38 }
 0x5f7   :  { %3280 = vmatprep.subr.bf16.mxu0 %v3954_v47 }
 0x5fa   :  { %3282 = vmatpush1.bf16.msra.mxu0 %v3962_v50 }
 0x5fb   :  { %3284 = vmatprep.subr.bf16.mxu0 %v3972_v53 }
 0x5fe   :  { %3286 = vmatpush1.bf16.msra.mxu0 %v3980_v56 }
 0x5ff   :  { %3288 = vmatprep.subr.bf16.mxu0 %v3990_v59 }
 0x602   :  { %3290 = vmatpush1.bf16.msra.mxu0 %v3998_v62 }
 0x603   :  { %3308 = vmatprep.subr.bf16.mxu0 %v3935_v41 }
 0x6c8   :  { %v917_v27 = vpop.f32.mrb[22].mxu0 }
 0x6c9   :  { %v918_v28 = vadd.f32 %v917_v27, %v4091_v2  ;;  %v919_v33 = vpop.f32.mrb[23].mxu0 }
 0x6ca   :  { %v920_v39 = vadd.f32 %v919_v33, %v4119_v22 }
 0x6cb   :  { %v922_v32 = vadd.f32 %v918_v28, %v847_v63 }
 0x6cd   :  { %v3002_v35 = vmul.f32 -1.442695, %v922_v32 }
 0x6cf   :  { %3540 = vpow2.f32 %v3002_v35 }
 0x6d9   :  { %v3541_v36 = vpop.eup %3540 }
 0x6da   :  { %v926_v17 = vadd.f32 1.0, %v3541_v36 }
 0x6dc   :  { %3542 = vrcp.f32 %v926_v17 }
 0x6e6   :  { %v3543_v42 = vpop.eup %3542 }
 0x6e7   :  { %v929_v46 = vmul.f32 %v3543_v42, %v920_v39  ;;  %v932_v55 = vsub.f32 1.0, %v3543_v42  ;;  %v938_v60 = vmul.f32 %v3543_v42, %v830_v24 }
 0x6e9   :  { %v930_v51 = vadd.f32 %v929_v46, %v848_v49 }
 0x6eb   :  { %3544 = vtanh.f32 %v930_v51 }
 0x6f5   :  { %v3545_v63 = vpop.eup %3544 }
 0x6f6   :  { %934 = vrot.lane.b32.xlu0 %v3545_v63, %s3727_s29 }
 0x768   :  { %v935_v58 = vpop.permute.xlu0 %934 }
 0x769   :  { %v937_v61 = vmul.f32 %v935_v58, %v932_v55 }
 0x76b   :  { %v939_v1 = vadd.f32 %v938_v60, %v937_v61 }
 0x76d   :  { %941 = vrot.lane.b32.xlu1 %v939_v1, %s3727_s29 }
 0x7df   :  { %v942_v5 = vpop.permute.xlu1 %941 }
 0x7e0   :  { %945 = vst.msk [vmem:[#allocation4 + $0x10] sm:$0xff] %vm575_vm1, %v942_v5  ;;  %3003 = vmatmul.mubr.msk.f32.vlgmr.msra.gmra.mrb[14].mxu1 %vm575_vm1, %v942_v5 }
 0x7e1   :  { %3294 = vmatpush1.bf16.msra.mxu1 %v3943_v44  ;;  %1230 = vmatprep.mubr.f32.mxu1 %v3726_v38 }
 0x7e2   :  { %3296 = vmatprep.subr.bf16.mxu1 %v3954_v47 }
 0x7e5   :  { %3298 = vmatpush1.bf16.msra.mxu1 %v3962_v50 }
 0x7e6   :  { %3300 = vmatprep.subr.bf16.mxu1 %v3972_v53 }
 0x7e9   :  { %3302 = vmatpush1.bf16.msra.mxu1 %v3980_v56 }
 0x7ea   :  { %3304 = vmatprep.subr.bf16.mxu1 %v3990_v59 }
 0x7ed   :  { %3306 = vmatpush1.bf16.msra.mxu1 %v3998_v62 }
 0x7ee   :  { %3324 = vmatprep.subr.bf16.mxu1 %v3935_v41  ;;  %v950_v41 = vld [vmem:[#allocation2 + $0x38] sm:$0xff] }
 0x7ef   :  { %v957_v27 = vsel %vm4125_vm3, %v950_v41, %v955_v19  ;;  %v1060_v5 = vsel %vm4125_vm3, %v955_v19, %v950_v41  ;;  %v1484_v41 = vld [vmem:[#allocation10 + $0x8] sm:$0xff] }
 0x8b3   :  { %v1026_v8 = vpop.f32.mrb[14].mxu1 }
 0x8b4   :  { %v1027_v12 = vadd.f32 %v1026_v8, %v4091_v2  ;;  %v1028_v13 = vpop.f32.mrb[15].mxu1 }
 0x8b5   :  { %v1029_v21 = vadd.f32 %v1028_v13, %v4119_v22 }
 0x8b6   :  { %v1031_v14 = vadd.f32 %v1027_v12, %v956_v52 }
 0x8b8   :  { %v3004_v6 = vmul.f32 -1.442695, %v1031_v14 }
 0x8ba   :  { %3546 = vpow2.f32 %v3004_v6 }
 0x8c4   :  { %v3547_v18 = vpop.eup %3546 }
 0x8c5   :  { %v1035_v16 = vadd.f32 1.0, %v3547_v18 }
 0x8c7   :  { %3548 = vrcp.f32 %v1035_v16 }
 0x8d1   :  { %v3549_v24 = vpop.eup %3548 }
 0x8d2   :  { %v1038_v25 = vmul.f32 %v3549_v24, %v1029_v21  ;;  %v1041_v52 = vsub.f32 1.0, %v3549_v24  ;;  %v1047_v35 = vmul.f32 %v3549_v24, %v939_v1 }
 0x8d4   :  { %v1039_v28 = vadd.f32 %v1038_v25, %v957_v27  ;;  %v1486_v25 = vld [vmem:[#allocation10 + $0x18] sm:$0xff] }
 0x8d5   :  { %v3339_v34 = vpack.c.bf16 %v1486_v25, %v1484_v41 }
 0x8d6   :  { %3550 = vtanh.f32 %v1039_v28 }
 0x8e0   :  { %v3551_v33 = vpop.eup %3550 }
 0x8e1   :  { %1043 = vrot.lane.b32.xlu0 %v3551_v33, %s3727_s29 }
 0x953   :  { %v1044_v32 = vpop.permute.xlu0 %1043 }
 0x954   :  { %v1046_v36 = vmul.f32 %v1044_v32, %v1041_v52  ;;  %v1483_v32 = vld [vmem:[#allocation10] sm:$0xff] }
 0x956   :  { %v1048_v17 = vadd.f32 %v1047_v35, %v1046_v36  ;;  %v1490_v35 = vld [vmem:[#allocation10 + $0x38] sm:$0xff] }
 0x958   :  { %1050 = vrot.lane.b32.xlu1 %v1048_v17, %s3727_s29 }
 0x9ca   :  { %v1051_v39 = vpop.permute.xlu1 %1050 }
 0x9cb   :  { %1054 = vst.msk [vmem:[#allocation4 + $0x18] sm:$0xff] %vm575_vm1, %v1051_v39  ;;  %3005 = vmatmul.mubr.msk.f32.vlgmr.msra.gmra.mrb[24].mxu0 %vm575_vm1, %v1051_v39  ;;  %v1487_v39 = vld [vmem:[#allocation10 + $0x20] sm:$0xff] }
 0x9cc   :  { %3310 = vmatpush1.bf16.msra.mxu0 %v3943_v44  ;;  %1333 = vmatprep.mubr.f32.mxu0 %v3726_v38 }
 0x9cd   :  { %3312 = vmatprep.subr.bf16.mxu0 %v3954_v47 }
 0x9d0   :  { %3314 = vmatpush1.bf16.msra.mxu0 %v3962_v50 }
 0x9d1   :  { %3316 = vmatprep.subr.bf16.mxu0 %v3972_v53 }
 0x9d4   :  { %3318 = vmatpush1.bf16.msra.mxu0 %v3980_v56 }
 0x9d5   :  { %3320 = vmatprep.subr.bf16.mxu0 %v3990_v59 }
 0x9d8   :  { %3322 = vmatpush1.bf16.msra.mxu0 %v3998_v62 }
 0x9d9   :  { %3340 = vmatprep.subr.bf16.mxu0 %v3339_v34 }
 0xa9e   :  { %v1129_v42 = vpop.f32.mrb[24].mxu0 }
 0xa9f   :  { %v1130_v46 = vadd.f32 %v1129_v42, %v4091_v2  ;;  %v1131_v49 = vpop.f32.mrb[25].mxu0  ;;  %v1489_v42 = vld [vmem:[#allocation10 + $0x30] sm:$0xff] }
 0xaa0   :  { %v1132_v60 = vadd.f32 %v1131_v49, %v4119_v22  ;;  %v3345_v49 = vpack.c.bf16 %v1489_v42, %v1487_v39  ;;  %v1266_v42 = vsel %vm4125_vm3, %v4149_v4, %v4152_v9 }
 0xaa1   :  { %v1134_v51 = vadd.f32 %v1130_v46, %v1059_v54 }
 0xaa3   :  { %v3006_v63 = vmul.f32 -1.442695, %v1134_v51  ;;  %v4260_v51 = vld [vmem:[#allocation4] sm:$0xff] }
 0xaa5   :  { %3552 = vpow2.f32 %v3006_v63  ;;  %v4265_v63 = vld [vmem:[#allocation4 + $0x8] sm:$0xff] }
 0xaaf   :  { %v3553_v55 = vpop.eup %3552 }
 0xab0   :  { %v1138_v58 = vadd.f32 1.0, %v3553_v55  ;;  %v4270_v55 = vld [vmem:[#allocation4 + $0x10] sm:$0xff] }
 0xab2   :  { %3554 = vrcp.f32 %v1138_v58  ;;  %v4275_v58 = vld [vmem:[#allocation4 + $0x18] sm:$0xff] }
 0xabc   :  { %v3555_v61 = vpop.eup %3554 }
 0xabd   :  { %v1141_v1 = vmul.f32 %v3555_v61, %v1132_v60  ;;  %v1144_v13 = vsub.f32 1.0, %v3555_v61  ;;  %v1150_v48 = vmul.f32 %v3555_v61, %v1048_v17 }
 0xabf   :  { %v1142_v8 = vadd.f32 %v1141_v1, %v1060_v5 }
 0xac1   :  { %3556 = vtanh.f32 %v1142_v8 }
 0xacb   :  { %v3557_v12 = vpop.eup %3556 }
 0xacc   :  { %1146 = vrot.lane.b32.xlu0 %v3557_v12, %s3727_s29  ;;  %v3013_v12 = vld [vmem:[%s4895_s8 + $0x2] sm:$0x3]  ;;  %s3728_s8 = smov 96  }
 0xb3e   :  { %v1147_v40 = vpop.permute.xlu0 %1146 }
 0xb3f   :  { %v1149_v54 = vmul.f32 %v1147_v40, %v1144_v13 }
 0xb41   :  { %v1151_v14 = vadd.f32 %v1150_v48, %v1149_v54  ;;  %v4300_v48 = vrot.slane %v3013_v12, %v4048_v23  ;;  %v4303_v54 = vrot.slane %v3013_v12, %v4042_v20 }
 0xb43   :  { %1153 = vrot.lane.b32.xlu1 %v1151_v14, %s3727_s29 }
 0xbb5   :  { %v1154_v6 = vpop.permute.xlu1 %1153 }
 0xbb6   :  { %1157 = vst.msk [vmem:[#allocation4 + $0x20] sm:$0xff] %vm575_vm1, %v1154_v6  ;;  %3007 = vmatmul.mubr.msk.f32.vlgmr.msra.gmra.mrb[16].mxu1 %vm575_vm1, %v1154_v6 }
 0xbb7   :  { %3326 = vmatpush1.bf16.msra.mxu1 %v3943_v44  ;;  %1436 = vmatprep.mubr.f32.mxu1 %v3726_v38 }
 0xbb8   :  { %3328 = vmatprep.subr.bf16.mxu1 %v3954_v47 }
 0xbbb   :  { %3330 = vmatpush1.bf16.msra.mxu1 %v3962_v50 }
 0xbbc   :  { %3332 = vmatprep.subr.bf16.mxu1 %v3972_v53 }
 0xbbd   :  { %v4280_v60 = vld [vmem:[#allocation4 + $0x20] sm:$0xff] }
 0xbbf   :  { %3334 = vmatpush1.bf16.msra.mxu1 %v3980_v56 }
 0xbc0   :  { %3336 = vmatprep.subr.bf16.mxu1 %v3990_v59 }
 0xbc3   :  { %3338 = vmatpush1.bf16.msra.mxu1 %v3998_v62  ;;  %v1163_v62 = vsel %vm4125_vm3, %v4177_v37, %v4180_v43  ;;  %v1485_v37 = vld [vmem:[#allocation10 + $0x10] sm:$0xff]  ;;  %v1488_v43 = vld [vmem:[#allocation10 + $0x28] sm:$0xff] }
 0xbc4   :  { %v3341_v36 = vpack.c.bf16 %v1485_v37, %v1483_v32  ;;  %v3343_v17 = vpack.c.bf16 %v1490_v35, %v1488_v43 }
 0xc89   :  { %v1232_v18 = vpop.f32.mrb[16].mxu1 }
 0xc8a   :  { %v1233_v16 = vadd.f32 %v1232_v18, %v4091_v2  ;;  %v1234_v19 = vpop.f32.mrb[17].mxu1 }
 0xc8b   :  { %v1235_v56 = vadd.f32 %v1234_v19, %v4119_v22 }
 0xc8c   :  { %v1237_v44 = vadd.f32 %v1233_v16, %v1162_v0 }
 0xc8e   :  { %v3008_v47 = vmul.f32 -1.442695, %v1237_v44 }
 0xc90   :  { %3558 = vpow2.f32 %v3008_v47 }
 0xc9a   :  { %v3559_v50 = vpop.eup %3558 }
 0xc9b   :  { %v1241_v53 = vadd.f32 1.0, %v3559_v50 }
 0xc9d   :  { %3560 = vrcp.f32 %v1241_v53 }
 0xca7   :  { %v3561_v59 = vpop.eup %3560 }
 0xca8   :  { %v1244_v21 = vmul.f32 %v3561_v59, %v1235_v56  ;;  %v1247_v0 = vsub.f32 1.0, %v3561_v59  ;;  %v1253_v28 = vmul.f32 %v3561_v59, %v1151_v14 }
 0xcaa   :  { %v1245_v24 = vadd.f32 %v1244_v21, %v1163_v62 }
 0xcac   :  { %3562 = vtanh.f32 %v1245_v24 }
 0xcb6   :  { %v3563_v57 = vpop.eup %3562 }
 0xcb7   :  { %1249 = vrot.lane.b32.xlu0 %v3563_v57, %s3727_s29 }
 0xd29   :  { %v1250_v27 = vpop.permute.xlu0 %1249 }
 0xd2a   :  { %v1252_v33 = vmul.f32 %v1250_v27, %v1247_v0 }
 0xd2c   :  { %v4253_v52 = vadd.f32 %v1253_v28, %v1252_v33 }
 0xd2e   :  { %1256 = vrot.lane.b32.xlu1 %v4253_v52, %s3727_s29 }
 0xda0   :  { %v1257_v46 = vpop.permute.xlu1 %1256 }
 0xda1   :  { %1260 = vst.msk [vmem:[#allocation4 + $0x28] sm:$0xff] %vm575_vm1, %v1257_v46  ;;  %3009 = vmatmul.mubr.msk.f32.vlgmr.msra.gmra.mrb[26].mxu0 %vm575_vm1, %v1257_v46 }
 0xda2   :  { %3342 = vmatpush1.bf16.msra.mxu0 %v3341_v36  ;;  %1593 = vmatprep.mubr.f32.mxu0 %v3726_v38 }
 0xda3   :  { %3344 = vmatprep.subr.bf16.mxu0 %v3343_v17 }
 0xda6   :  { %3346 = vmatpush1.bf16.msra.mxu0 %v3345_v49 }
 0xda8   :  { %v4285_v61 = vld [vmem:[#allocation4 + $0x28] sm:$0xff] }
 0xda9   :  { %3014 = vmatmul.mubr.msk.f32.vlgmr.msra.gmra.mrb[28].mxu0 %vm1504_vm4, %v4260_v51 }
 0xdaa   :  { %1599 = vmatprep.mubr.f32.mxu0 %v3726_v38 }
 0xdad   :  { %3015 = vmatmul.mubr.msk.f32.gmra.mrb[30].mxu0 %vm1504_vm4, %v4265_v63 }
 0xdae   :  { %1605 = vmatprep.mubr.f32.mxu0 %v3726_v38 }
 0xdb1   :  { %3016 = vmatmul.mubr.msk.f32.gmra.mrb[32].mxu0 %vm1504_vm4, %v4270_v55 }
 0xdb2   :  { %1611 = vmatprep.mubr.f32.mxu0 %v3726_v38 }
 0xdb5   :  { %3017 = vmatmul.mubr.msk.f32.gmra.mrb[34].mxu0 %vm1504_vm4, %v4275_v58 }
 0xdb6   :  { %1617 = vmatprep.mubr.f32.mxu0 %v3726_v38 }
 0xdb9   :  { %3018 = vmatmul.mubr.msk.f32.gmra.mrb[36].mxu0 %vm1504_vm4, %v4280_v60 }
 0xdba   :  { %1623 = vmatprep.mubr.f32.mxu0 %v3726_v38 }
 0xdbd   :  { %3019 = vmatmul.mubr.msk.f32.gmra.mrb[38].mxu0 %vm1504_vm4, %v4285_v61 }
 0xdbe   :  { %1629 = vmatprep.mubr.f32.mxu0 %v3726_v38 }
 0xe74   :  { %v1335_v1 = vpop.f32.mrb[26].mxu0 }
 0xe75   :  { %v1336_v5 = vadd.f32 %v1335_v1, %v4091_v2  ;;  %v1337_v8 = vpop.f32.mrb[27].mxu0 }
 0xe76   :  { %v1338_v32 = vadd.f32 %v1337_v8, %v4119_v22 }
 0xe77   :  { %v1340_v13 = vadd.f32 %v1336_v5, %v1265_v7 }
 0xe79   :  { %v3010_v40 = vmul.f32 -1.442695, %v1340_v13 }
 0xe7b   :  { %3564 = vpow2.f32 %v3010_v40 }
 0xe7c   :  { %v1595_v14 = vpop.f32.mrb[28].mxu0 }
 0xe7d   :  { %v4306_v6 = vadd.f32 %v1595_v14, %v4300_v48  ;;  %v1597_v18 = vpop.f32.mrb[29].mxu0 }
 0xe7e   :  { %v1598_v16 = vadd.f32 %v1597_v18, %v4303_v54 }
 0xe80   :  { %v1601_v19 = vpop.f32.mrb[30].mxu0  ;;  %1643 = vst.msk [vmem:[#allocation2 + $0x8] sm:$0xff] %vm575_vm1, %v1598_v16 }
 0xe81   :  { %v4311_v29 = vadd.f32 %v1601_v19, %v4300_v48  ;;  %v1603_v3 = vpop.f32.mrb[31].mxu0 }
 0xe82   :  { %v1604_v7 = vadd.f32 %v1603_v3, %v4303_v54 }
 0xe84   :  { %1645 = vst.msk [vmem:[#allocation2 + $0x18] sm:$0xff] %vm575_vm1, %v1604_v7  ;;  %v1607_v44 = vpop.f32.mrb[32].mxu0 }
 0xe85   :  { %v3565_v47 = vpop.eup %3564  ;;  %v4316_v50 = vadd.f32 %v1607_v44, %v4300_v48  ;;  %v1609_v53 = vpop.f32.mrb[33].mxu0  ;;  %v1659_v44 = vld [vmem:[#allocation11 + $0x8] sm:$0xff] }
 0xe86   :  { %v1344_v56 = vadd.f32 1.0, %v3565_v47  ;;  %v1610_v59 = vadd.f32 %v1609_v53, %v4303_v54  ;;  %v1661_v47 = vld [vmem:[#allocation11 + $0x18] sm:$0xff]  ;;  %v1658_v53 = vld [vmem:[#allocation11] sm:$0xff] }
 0xe88   :  { %3566 = vrcp.f32 %v1344_v56  ;;  %1647 = vst.msk [vmem:[#allocation2 + $0x28] sm:$0xff] %vm575_vm1, %v1610_v59  ;;  %v1613_v21 = vpop.f32.mrb[34].mxu0  ;;  %v1660_v56 = vld [vmem:[#allocation11 + $0x10] sm:$0xff] }
 0xe89   :  { %v4321_v62 = vadd.f32 %v1613_v21, %v4300_v48  ;;  %v1615_v24 = vpop.f32.mrb[35].mxu0  ;;  %v3349_v59 = vpack.c.bf16 %v1660_v56, %v1658_v53 }
 0xe8a   :  { %v1616_v41 = vadd.f32 %v1615_v24, %v4303_v54 }
 0xe8c   :  { %1649 = vst.msk [vmem:[#allocation2 + $0x38] sm:$0xff] %vm575_vm1, %v1616_v41  ;;  %v1619_v25 = vpop.f32.mrb[36].mxu0 }
 0xe8d   :  { %v4326_v34 = vadd.f32 %v1619_v25, %v4300_v48  ;;  %v1621_v57 = vpop.f32.mrb[37].mxu0 }
 0xe8e   :  { %v1622_v0 = vadd.f32 %v1621_v57, %v4303_v54 }
 0xe8f   :  { %v2192_v27 = vsel %vm4060_vm2, %v4321_v62, %v4326_v34  ;;  %v2300_v28 = vsel %vm4060_vm2, %v4326_v34, %v4321_v62  ;;  %v4364_v12 = vld [vmem:[#allocation2 + $0x28] sm:$0xff] }
 0xe90   :  { %1651 = vst.msk [vmem:[#allocation2 + $0x48] sm:$0xff] %vm575_vm1, %v1622_v0  ;;  %v1625_v33 = vpop.f32.mrb[38].mxu0 }
 0xe91   :  { %v4340_v37 = vadd.f32 %v1625_v33, %v4300_v48  ;;  %v1627_v43 = vpop.f32.mrb[39].mxu0 }
 0xe92   :  { %v3567_v35 = vpop.eup %3566  ;;  %v1628_v36 = vadd.f32 %v1627_v43, %v4303_v54 }
 0xe93   :  { %v1347_v17 = vmul.f32 %v3567_v35, %v1338_v32  ;;  %v2080_v39 = vsel %vm4060_vm2, %v4316_v50, %v4340_v37  ;;  %v2400_v46 = vsel %vm4060_vm2, %v4340_v37, %v4316_v50  ;;  %v4356_v1 = vld [vmem:[#allocation2 + $0x38] sm:$0xff]  ;;  %v1350_v40 = vsub.f32 1.0, %v3567_v35 }
 0xe94   :  { %1653 = vst.msk [vmem:[#allocation2 + $0x58] sm:$0xff] %vm575_vm1, %v1628_v36  ;;  %v1356_v18 = vmul.f32 %v3567_v35, %v4253_v52  ;;  %v3347_v52 = vpack.c.bf16 %v1661_v47, %v1659_v44  ;;  %v4391_v36 = vld [vmem:[#allocation2 + $0x18] sm:$0xff] }
 0xe95   :  { %v1348_v49 = vadd.f32 %v1347_v17, %v1266_v42 }
 0xe96   :  { %3348 = vmatprep.subr.bf16.mxu1 %v3347_v52 }
 0xe97   :  { %3568 = vtanh.f32 %v1348_v49  ;;  %v4358_v5 = vld [vmem:[#allocation2 + $0x48] sm:$0xff]  ;;  %v1663_v49 = vld [vmem:[#allocation11 + $0x28] sm:$0xff] }
 0xe98   :  { %v2301_v8 = vsel %vm4125_vm3, %v4358_v5, %v4356_v1 }
 0xe9b   :  { %v4366_v4 = vld [vmem:[#allocation2 + $0x58] sm:$0xff] }
 0xe9c   :  { %v2401_v9 = vsel %vm4125_vm3, %v4366_v4, %v4364_v12 }
 0xea1   :  { %v3569_v13 = vpop.eup %3568 }
 0xea2   :  { %1352 = vrot.lane.b32.xlu0 %v3569_v13, %s3727_s29  ;;  %v1665_v13 = vld [vmem:[#allocation11 + $0x38] sm:$0xff] }
 0xf14   :  { %v1353_v14 = vpop.permute.xlu0 %1352 }
 0xf15   :  { %v1355_v16 = vmul.f32 %v1353_v14, %v1350_v40  ;;  %v1369_v40 = vsel %vm4125_vm3, %v4121_v26, %v4129_v31  ;;  %v3351_v14 = vpack.c.bf16 %v1665_v13, %v1663_v49  ;;  %v3044_v49 = vld [vmem:[%s4896_s9 + $0xf0] sm:$0xff] }
 0xf17   :  { %v1357_v19 = vadd.f32 %v1356_v18, %v1355_v16  ;;  %v1662_v18 = vld [vmem:[#allocation11 + $0x20] sm:$0xff]  ;;  %v1664_v16 = vld [vmem:[#allocation11 + $0x30] sm:$0xff] }
 0xf18   :  { %v3353_v44 = vpack.c.bf16 %v1664_v16, %v1662_v18 }
 0xf19   :  { %1359 = vrot.lane.b32.xlu1 %v1357_v19, %s3727_s29 }
 0xf8b   :  { %v1360_v3 = vpop.permute.xlu1 %1359 }
 0xf8c   :  { %1363 = vst.msk [vmem:[#allocation4 + $0x30] sm:$0xff] %vm575_vm1, %v1360_v3  ;;  %3011 = vmatmul.mubr.msk.f32.vlgmr.msra.gmra.mrb[18].mxu1 %vm575_vm1, %v1360_v3 }
 0xf8d   :  { %1762 = vmatprep.mubr.f32.mxu1 %v3726_v38  ;;  %3350 = vmatpush1.bf16.msra.mxu1 %v3349_v59 }
 0xf8e   :  { %3352 = vmatprep.subr.bf16.mxu1 %v3351_v14 }
 0xf91   :  { %3354 = vmatpush1.bf16.msra.mxu1 %v3353_v44 }
 0xf93   :  { %v1481_v7 = vld [vmem:[#allocation4 + $0x30] sm:$0xff] }
 0xf94   :  { %3020 = vmatmul.mubr.msk.f32.gmra.mrb[40].mxu0 %vm1504_vm4, %v1481_v7 }
 0xf95   :  { %1635 = vmatprep.mubr.f32.mxu0 %v3726_v38 }
0x105f   :  { %v1438_v21 = vpop.f32.mrb[18].mxu1 }
0x1060   :  { %v1439_v24 = vadd.f32 %v1438_v21, %v4091_v2  ;;  %v1440_v41 = vpop.f32.mrb[19].mxu1  ;;  %v3034_v21 = vld [vmem:[%s4896_s9 + $0xa0] sm:$0xff] }
0x1061   :  { %v1441_v11 = vadd.f32 %v1440_v41, %v4119_v22  ;;  %v3039_v41 = vld [vmem:[%s4896_s9 + $0xc8] sm:$0xff] }
0x1062   :  { %v1443_v25 = vadd.f32 %v1439_v24, %v1368_v15  ;;  %v3036_v24 = vld [vmem:[%s4896_s9 + $0xb0] sm:$0xff] }
0x1064   :  { %v3012_v57 = vmul.f32 -1.442695, %v1443_v25  ;;  %v3041_v25 = vld [vmem:[%s4896_s9 + $0xd8] sm:$0xff] }
0x1066   :  { %3570 = vpow2.f32 %v3012_v57  ;;  %v4460_v57 = vpack.c.bf16 %v3036_v24, %v3034_v21 }
0x1067   :  { %v1631_v0 = vpop.f32.mrb[40].mxu0 }
0x1068   :  { %v4387_v33 = vadd.f32 %v1631_v0, %v4300_v48  ;;  %v1633_v32 = vpop.f32.mrb[41].mxu0  ;;  %v4464_v0 = vpack.c.bf16 %v3041_v25, %v3039_v41 }
0x1069   :  { %v1634_v43 = vadd.f32 %v1633_v32, %v4303_v54  ;;  %v3038_v32 = vld [vmem:[%s4896_s9 + $0xc0] sm:$0xff] }
0x106a   :  { %v2500_v50 = vsel %vm4060_vm2, %v4387_v33, %v4311_v29 }
0x106b   :  { %1655 = vst.msk [vmem:[#allocation2 + $0x68] sm:$0xff] %vm575_vm1, %v1634_v43  ;;  %v3040_v43 = vld [vmem:[%s4896_s9 + $0xd0] sm:$0xff] }
0x1070   :  { %v3571_v35 = vpop.eup %3570 }
0x1071   :  { %v1447_v2 = vadd.f32 1.0, %v3571_v35  ;;  %v4474_v35 = vpack.c.bf16 %v3040_v43, %v3038_v32 }
0x1072   :  { %v4393_v17 = vld [vmem:[#allocation2 + $0x68] sm:$0xff] }
0x1073   :  { %3572 = vrcp.f32 %v1447_v2  ;;  %v2501_v10 = vsel %vm4125_vm3, %v4393_v17, %v4391_v36  ;;  %v3043_v2 = vld [vmem:[%s4896_s9 + $0xe8] sm:$0xff] }
0x107d   :  { %v3573_v15 = vpop.eup %3572 }
0x107e   :  { %v1450_v42 = vmul.f32 %v3573_v15, %v1441_v11  ;;  %v1453_v22 = vsub.f32 1.0, %v3573_v15  ;;  %v1459_v31 = vmul.f32 %v3573_v15, %v1357_v19  ;;  %v3045_v11 = vld [vmem:[%s4896_s9 + $0xf8] sm:$0xff] }
0x107f   :  { %v4487_v15 = vpack.c.bf16 %v3045_v11, %v3043_v2  ;;  %v1847_v2 = vld [vmem:[#allocation2 + $0x8] sm:$0xff] }
0x1080   :  { %v1451_v3 = vadd.f32 %v1450_v42, %v1369_v40  ;;  %v3042_v42 = vld [vmem:[%s4896_s9 + $0xe0] sm:$0xff] }
0x1081   :  { %v4495_v13 = vpack.c.bf16 %v3044_v49, %v3042_v42 }
0x1082   :  { %3574 = vtanh.f32 %v1451_v3 }
0x108c   :  { %v3575_v47 = vpop.eup %3574 }
0x108d   :  { %1455 = vrot.lane.b32.xlu0 %v3575_v47, %s3727_s29 }
0x1091   :  { %1666 = vrot.lane.b32.xlu0 %v4260_v51, %s3728_s8  ;;  %v3031_v51 = vld [vmem:[%s4896_s9 + $0x88] sm:$0xff] }
0x1095   :  { %1670 = vrot.lane.b32.xlu0 %v4270_v55, %s3728_s8  ;;  %v3033_v55 = vld [vmem:[%s4896_s9 + $0x98] sm:$0xff] }
0x1096   :  { %v4430_v19 = vpack.c.bf16 %v3033_v55, %v3031_v51 }
0x1098   :  { %3356 = vmatprep.subr.bf16.mxu0 %v4430_v19  ;;  %3372 = vmatprep.subr.bf16.mxu1 %v4430_v19 }
0x1099   :  { %1674 = vrot.lane.b32.xlu0 %v4280_v60, %s3728_s8  ;;  %v3030_v60 = vld [vmem:[%s4896_s9 + $0x80] sm:$0xff] }
0x109d   :  { %1678 = vrot.lane.b32.xlu0 %v1481_v7, %s3728_s8 }
0x10ff   :  { %v1456_v26 = vpop.permute.xlu0 %1455 }
0x1100   :  { %v1458_v53 = vmul.f32 %v1456_v26, %v1453_v22 }
0x1102   :  { %v1460_v52 = vadd.f32 %v1459_v31, %v1458_v53 }
0x1103   :  { %v1667_v56 = vpop.permute.xlu0 %1666 }
0x1104   :  { %1462 = vrot.lane.b32.xlu1 %v1460_v52, %s3727_s29  ;;  %3022 = vmatmul.mubr.msk.f32.vlgmr.msra.gmra.mrb[20].mxu1 %vm1504_vm4, %v1667_v56 }
0x1105   :  { %1768 = vmatprep.mubr.f32.mxu1 %v3726_v38 }
0x1107   :  { %v1671_v16 = vpop.permute.xlu0 %1670 }
0x1108   :  { %1668 = vrot.lane.b32.xlu1 %v4265_v63, %s3728_s8  ;;  %v3032_v63 = vld [vmem:[%s4896_s9 + $0x90] sm:$0xff] }
0x1109   :  { %v4441_v7 = vpack.c.bf16 %v3032_v63, %v3030_v60 }
0x110b   :  { %3358 = vmatpush1.bf16.msra.mxu0 %v4441_v7  ;;  %3374 = vmatpush1.bf16.msra.mxu1 %v4441_v7  ;;  %v1675_v44 = vpop.permute.xlu0 %1674 }
0x110c   :  { %1672 = vrot.lane.b32.xlu1 %v4275_v58, %s3728_s8  ;;  %v3035_v58 = vld [vmem:[%s4896_s9 + $0xa8] sm:$0xff] }
0x110f   :  { %v1679_v22 = vpop.permute.xlu0 %1678 }
0x1110   :  { %1676 = vrot.lane.b32.xlu1 %v4285_v61, %s3728_s8  ;;  %v3037_v61 = vld [vmem:[%s4896_s9 + $0xb8] sm:$0xff] }
0x1111   :  { %v4443_v59 = vpack.c.bf16 %v3037_v61, %v3035_v58 }
0x1113   :  { %3360 = vmatprep.subr.bf16.mxu0 %v4443_v59  ;;  %3376 = vmatprep.subr.bf16.mxu1 %v4443_v59 }
0x1114   :  { %3362 = vmatpush1.bf16.msra.mxu0 %v4460_v57  ;;  %3378 = vmatpush1.bf16.msra.mxu1 %v4460_v57 }
0x1115   :  { %3364 = vmatprep.subr.bf16.mxu0 %v4464_v0  ;;  %3380 = vmatprep.subr.bf16.mxu1 %v4464_v0 }
0x1118   :  { %3366 = vmatpush1.bf16.msra.mxu0 %v4474_v35  ;;  %3382 = vmatpush1.bf16.msra.mxu1 %v4474_v35 }
0x1119   :  { %3368 = vmatprep.subr.bf16.mxu0 %v4487_v15  ;;  %3384 = vmatprep.subr.bf16.mxu1 %v4487_v15 }
0x111c   :  { %3370 = vmatpush1.bf16.msra.mxu0 %v4495_v13  ;;  %3386 = vmatpush1.bf16.msra.mxu1 %v4495_v13 }
0x111d   :  { %3388 = vmatprep.subr.bf16.mxu0 %v4430_v19  ;;  %3404 = vmatprep.subr.bf16.mxu1 %v4430_v19 }
0x1176   :  { %v4503_v40 = vpop.permute.xlu1 %1462 }
0x1177   :  { %1466 = vst.msk [vmem:[#allocation4 + $0x38] sm:$0xff] %vm575_vm1, %v4503_v40 }
0x117a   :  { %v1669_v14 = vpop.permute.xlu1 %1668 }
0x117b   :  { %3023 = vmatmul.mubr.msk.f32.gmra.mrb[22].mxu1 %vm1504_vm4, %v1669_v14 }
0x117c   :  { %1774 = vmatprep.mubr.f32.mxu1 %v3726_v38 }
0x117e   :  { %v1482_v18 = vld [vmem:[#allocation4 + $0x38] sm:$0xff]  ;;  %v1673_v3 = vpop.permute.xlu1 %1672 }
0x117f   :  { %1680 = vrot.lane.b32.xlu1 %v1482_v18, %s3728_s8  ;;  %3021 = vmatmul.mubr.msk.f32.gmra.mrb[42].mxu0 %vm1504_vm4, %v1482_v18 }
0x1180   :  { %3024 = vmatmul.mubr.msk.f32.gmra.mrb[24].mxu1 %vm1504_vm4, %v1671_v16  ;;  %1939 = vmatprep.mubr.f32.mxu0 %v3726_v38 }
0x1181   :  { %1780 = vmatprep.mubr.f32.mxu1 %v3726_v38 }
0x1182   :  { %v1677_v47 = vpop.permute.xlu1 %1676 }
0x1183   :  { %1940 = vmatmul.mubr.f32.vlgmr.msra.gmra.mrb[44].mxu0 %v3726_v38 }
0x1184   :  { %3025 = vmatmul.mubr.msk.f32.gmra.mrb[26].mxu1 %vm1504_vm4, %v1673_v3  ;;  %3390 = vmatpush1.bf16.msra.mxu0 %v4441_v7 }
0x1185   :  { %1786 = vmatprep.mubr.f32.mxu1 %v3726_v38  ;;  %3392 = vmatprep.subr.bf16.mxu0 %v4443_v59 }
0x1186   :  { %2163 = vmatprep.mubr.f32.mxu0 %v3726_v38 }
0x1188   :  { %3026 = vmatmul.mubr.msk.f32.gmra.mrb[28].mxu1 %vm1504_vm4, %v1675_v44  ;;  %3394 = vmatpush1.bf16.msra.mxu0 %v4460_v57 }
0x1189   :  { %1792 = vmatprep.mubr.f32.mxu1 %v3726_v38  ;;  %3396 = vmatprep.subr.bf16.mxu0 %v4464_v0 }
0x118c   :  { %3027 = vmatmul.mubr.msk.f32.gmra.mrb[30].mxu1 %vm1504_vm4, %v1677_v47  ;;  %3398 = vmatpush1.bf16.msra.mxu0 %v4474_v35  ;;  %v1968_v47 = vsel %vm4060_vm2, %v4311_v29, %v4387_v33 }
0x118d   :  { %1798 = vmatprep.mubr.f32.mxu1 %v3726_v38  ;;  %3400 = vmatprep.subr.bf16.mxu0 %v4487_v15 }
0x1190   :  { %3028 = vmatmul.mubr.msk.f32.gmra.mrb[32].mxu1 %vm1504_vm4, %v1679_v22  ;;  %3402 = vmatpush1.bf16.msra.mxu0 %v4495_v13 }
0x1191   :  { %1804 = vmatprep.mubr.f32.mxu1 %v3726_v38  ;;  %3420 = vmatprep.subr.bf16.mxu0 %v4430_v19 }
0x11d7   :  { %v4532_v26 = vpop.f32.mrb[20].mxu1 }
0x11d8   :  { %v1766_v31 = vpop.f32.mrb[21].mxu1 }
0x11d9   :  { %1812 = vst.msk [vmem:[#allocation3 + $0x8] sm:$0xff] %vm575_vm1, %v1766_v31 }
0x11f1   :  { %v1681_v53 = vpop.permute.xlu1 %1680 }
0x11f2   :  { %3029 = vmatmul.mubr.msk.f32.gmra.mrb[34].mxu1 %vm1504_vm4, %v1681_v53 }
0x11f3   :  { %2051 = vmatprep.mubr.f32.mxu1 %v3726_v38 }
0x124e   :  { %v1770_v52 = vpop.f32.mrb[22].mxu1 }
0x124f   :  { %v1772_v56 = vpop.f32.mrb[23].mxu1 }
0x1250   :  { %1814 = vst.msk [vmem:[#allocation3 + $0x18] sm:$0xff] %vm575_vm1, %v1772_v56 }
0x1252   :  { %v1637_v51 = vpop.f32.mrb[42].mxu0 }
0x1253   :  { %v1638_v55 = vadd.f32 %v1637_v51, %v4300_v48  ;;  %v1776_v60 = vpop.f32.mrb[24].mxu1  ;;  %v1639_v63 = vpop.f32.mrb[43].mxu0 }
0x1254   :  { %v1640_v58 = vadd.f32 %v1639_v63, %v4303_v54  ;;  %v1778_v61 = vpop.f32.mrb[25].mxu1 }
0x1255   :  { %1816 = vst.msk [vmem:[#allocation3 + $0x28] sm:$0xff] %vm575_vm1, %v1778_v61 }
0x1256   :  { %1657 = vst.msk [vmem:[#allocation2 + $0x78] sm:$0xff] %vm575_vm1, %v1640_v58  ;;  %v1941_v21 = vpop.f32.mrb[44].mxu0 }
0x1257   :  { %v1782_v24 = vpop.f32.mrb[26].mxu1  ;;  %v4542_v41 = vpop.f32.mrb[45].mxu0 }
0x1258   :  { %v1784_v25 = vpop.f32.mrb[27].mxu1 }
0x1259   :  { %1818 = vst.msk [vmem:[#allocation3 + $0x38] sm:$0xff] %vm575_vm1, %v1784_v25 }
0x125b   :  { %v1788_v32 = vpop.f32.mrb[28].mxu1 }
0x125c   :  { %v1790_v43 = vpop.f32.mrb[29].mxu1  ;;  %v2202_v48 = vsel %vm4060_vm2, %v1788_v32, %v1782_v24  ;;  %v2302_v54 = vsel %vm4060_vm2, %v1782_v24, %v1788_v32 }
0x125d   :  { %1820 = vst.msk [vmem:[#allocation3 + $0x48] sm:$0xff] %vm575_vm1, %v1790_v43  ;;  %v1849_v11 = vld [vmem:[#allocation2 + $0x78] sm:$0xff]  ;;  %v4555_v42 = vadd.f32 %v2202_v48, %v2192_v27  ;;  %v4562_v49 = vadd.f32 %v2302_v54, %v2300_v28  ;;  %v1850_v48 = vsel %vm4060_vm2, %v4306_v6, %v1638_v55  ;;  %v2600_v54 = vsel %vm4060_vm2, %v1638_v55, %v4306_v6 }
0x125e   :  { %v2601_v14 = vsel %vm4125_vm3, %v1849_v11, %v1847_v2 }
0x125f   :  { %v1794_v18 = vpop.f32.mrb[30].mxu1 }
0x1260   :  { %v1796_v16 = vpop.f32.mrb[31].mxu1  ;;  %v2090_v3 = vsel %vm4060_vm2, %v1794_v18, %v1776_v60  ;;  %v2402_v44 = vsel %vm4060_vm2, %v1776_v60, %v1794_v18 }
0x1261   :  { %1822 = vst.msk [vmem:[#allocation3 + $0x58] sm:$0xff] %vm575_vm1, %v1796_v16  ;;  %v4576_v62 = vadd.f32 %v2090_v3, %v2080_v39  ;;  %v4583_v34 = vadd.f32 %v2402_v44, %v2400_v46  ;;  %v4593_v39 = vld [vmem:[#allocation3 + $0x38] sm:$0xff] }
0x1263   :  { %v1800_v27 = vpop.f32.mrb[32].mxu1 }
0x1264   :  { %v1802_v28 = vpop.f32.mrb[33].mxu1  ;;  %v1978_v22 = vsel %vm4060_vm2, %v1800_v27, %v1770_v52  ;;  %v4591_v31 = vld [vmem:[#allocation3 + $0x48] sm:$0xff]  ;;  %v2502_v37 = vsel %vm4060_vm2, %v1770_v52, %v1800_v27 }
0x1265   :  { %1824 = vst.msk [vmem:[#allocation3 + $0x68] sm:$0xff] %vm575_vm1, %v1802_v28  ;;  %v4602_v46 = vadd.f32 %v1978_v22, %v1968_v47  ;;  %v2303_v53 = vsel %vm4125_vm3, %v4593_v39, %v4591_v31  ;;  %v4608_v56 = vadd.f32 %v2502_v37, %v2500_v50  ;;  %v4619_v52 = vld [vmem:[#allocation3 + $0x28] sm:$0xff]  ;;  %v1851_v37 = vsel %vm4125_vm3, %v1847_v2, %v1849_v11 }
0x1266   :  { %v4615_v29 = vadd.f32 %v2303_v53, %v2301_v8  ;;  %v4634_v8 = vld [vmem:[#allocation3 + $0x18] sm:$0xff]  ;;  %v1859_v27 = vld [vmem:[#allocation3 + $0x8] sm:$0xff] }
0x1268   :  { %v4617_v33 = vld [vmem:[#allocation3 + $0x58] sm:$0xff] }
0x1269   :  { %v2403_v51 = vsel %vm4125_vm3, %v4619_v52, %v4617_v33 }
0x126a   :  { %v4630_v60 = vadd.f32 %v2403_v51, %v2401_v9  ;;  %v3046_v9 = vld [vmem:[%s4897_s10 + $0x2] sm:$0x3] }
0x126b   :  { %v4651_v24 = vrot.slane %v3046_v9, %v4048_v23  ;;  %v4674_v45 = vrot.slane %v3046_v9, %v4042_v20 }
0x126c   :  { %v4632_v63 = vld [vmem:[#allocation3 + $0x68] sm:$0xff] }
0x126d   :  { %v2503_v58 = vsel %vm4125_vm3, %v4634_v8, %v4632_v63  ;;  %v1942_v32 = vadd.f32 %v1941_v21, %v4651_v24  ;;  %v1944_v22 = vadd.f32 %v4542_v41, %v4674_v45 }
0x126e   :  { %v4645_v61 = vadd.f32 %v2503_v58, %v2501_v10 }
0x12c5   :  { %v1806_v25 = vpop.f32.mrb[34].mxu1 }
0x12c6   :  { %v1808_v43 = vpop.f32.mrb[35].mxu1  ;;  %v1860_v10 = vsel %vm4060_vm2, %v1806_v25, %v4532_v26  ;;  %v2602_v23 = vsel %vm4060_vm2, %v4532_v26, %v1806_v25 }
0x12c7   :  { %1826 = vst.msk [vmem:[#allocation3 + $0x78] sm:$0xff] %vm575_vm1, %v1808_v43  ;;  %v1862_v21 = vadd.f32 %v1860_v10, %v1850_v48  ;;  %v4667_v18 = vadd.f32 %v2602_v23, %v2600_v54 }
0x12c9   :  { %v1946_v16 = vadd.f32 %v1942_v32, %v1862_v21 }
0x12cb   :  { %v3047_v3 = vmul.f32 -1.442695, %v1946_v16  ;;  %v1979_v16 = vsel %vm4125_vm3, %v4632_v63, %v4634_v8 }
0x12cd   :  { %3576 = vpow2.f32 %v3047_v3 }
0x12ce   :  { %v1855_v44 = vld [vmem:[#allocation3 + $0x78] sm:$0xff] }
0x12cf   :  { %v2603_v28 = vsel %vm4125_vm3, %v1859_v27, %v1855_v44  ;;  %v1861_v26 = vsel %vm4125_vm3, %v1855_v44, %v1859_v27  ;;  %v1969_v27 = vsel %vm4125_vm3, %v4391_v36, %v4393_v17 }
0x12d0   :  { %v4671_v47 = vadd.f32 %v2603_v28, %v2601_v14  ;;  %v1863_v53 = vadd.f32 %v1861_v26, %v1851_v37  ;;  %v1981_v28 = vadd.f32 %v1979_v16, %v1969_v27 }
0x12d7   :  { %v3577_v6 = vpop.eup %3576 }
0x12d8   :  { %v1950_v55 = vadd.f32 1.0, %v3577_v6 }
0x12da   :  { %3578 = vrcp.f32 %v1950_v55 }
0x12e4   :  { %v3579_v50 = vpop.eup %3578 }
0x12e5   :  { %v1953_v51 = vmul.f32 %v3579_v50, %v1944_v22  ;;  %v1956_v25 = vsub.f32 1.0, %v3579_v50  ;;  %v1962_v9 = vmul.f32 0.0, %v3579_v50 }
0x12e7   :  { %v1954_v14 = vadd.f32 %v1953_v51, %v1863_v53 }
0x12e9   :  { %3580 = vtanh.f32 %v1954_v14 }
0x12f3   :  { %v3581_v58 = vpop.eup %3580 }
0x12f4   :  { %1958 = vrot.lane.b32.xlu0 %v3581_v58, %s3727_s29 }
0x1366   :  { %v1959_v20 = vpop.permute.xlu0 %1958 }
0x1367   :  { %v1961_v32 = vmul.f32 %v1959_v20, %v1956_v25  ;;  %v2091_v20 = vsel %vm4125_vm3, %v4617_v33, %v4619_v52 }
0x1369   :  { %v1963_v43 = vadd.f32 %v1962_v9, %v1961_v32 }
0x136b   :  { %1983 = vrot.lane.b32.xlu1 %v1963_v43, %s3727_s29 }
0x13dd   :  { %v1984_v48 = vpop.permute.xlu1 %1983 }
0x13de   :  { %3048 = vmatmul.mubr.msk.f32.vlgmr.msra.gmra.mrb[36].mxu1 %vm575_vm1, %v1984_v48 }
0x13df   :  { %3406 = vmatpush1.bf16.msra.mxu1 %v4441_v7  ;;  %2275 = vmatprep.mubr.f32.mxu1 %v3726_v38 }
0x13e0   :  { %3408 = vmatprep.subr.bf16.mxu1 %v4443_v59 }
0x13e3   :  { %3410 = vmatpush1.bf16.msra.mxu1 %v4460_v57 }
0x13e4   :  { %3412 = vmatprep.subr.bf16.mxu1 %v4464_v0 }
0x13e7   :  { %3414 = vmatpush1.bf16.msra.mxu1 %v4474_v35 }
0x13e8   :  { %3416 = vmatprep.subr.bf16.mxu1 %v4487_v15 }
0x13eb   :  { %3418 = vmatpush1.bf16.msra.mxu1 %v4495_v13 }
0x13ec   :  { %3436 = vmatprep.subr.bf16.mxu1 %v4430_v19 }
0x14b1   :  { %v2053_v41 = vpop.f32.mrb[36].mxu1 }
0x14b2   :  { %v2054_v2 = vadd.f32 %v2053_v41, %v4651_v24  ;;  %v2055_v11 = vpop.f32.mrb[37].mxu1 }
0x14b3   :  { %v2056_v3 = vadd.f32 %v2055_v11, %v4674_v45 }
0x14b4   :  { %v2058_v10 = vadd.f32 %v2054_v2, %v4602_v46 }
0x14b6   :  { %v3049_v54 = vmul.f32 -1.442695, %v2058_v10 }
0x14b8   :  { %3582 = vpow2.f32 %v3049_v54 }
0x14c2   :  { %v3583_v23 = vpop.eup %3582 }
0x14c3   :  { %v2062_v21 = vadd.f32 1.0, %v3583_v23 }
0x14c5   :  { %3584 = vrcp.f32 %v2062_v21 }
0x14cf   :  { %v3585_v44 = vpop.eup %3584 }
0x14d0   :  { %v2065_v46 = vmul.f32 %v3585_v44, %v2056_v3  ;;  %v2068_v26 = vsub.f32 1.0, %v3585_v44  ;;  %v2074_v50 = vmul.f32 %v3585_v44, %v1963_v43  ;;  %v2081_v43 = vsel %vm4125_vm3, %v4364_v12, %v4366_v4 }
0x14d1   :  { %v2093_v48 = vadd.f32 %v2091_v20, %v2081_v43 }
0x14d2   :  { %v2066_v6 = vadd.f32 %v2065_v46, %v1981_v28  ;;  %v2203_v28 = vsel %vm4125_vm3, %v4591_v31, %v4593_v39 }
0x14d4   :  { %3586 = vtanh.f32 %v2066_v6 }
0x14de   :  { %v3587_v55 = vpop.eup %3586 }
0x14df   :  { %2070 = vrot.lane.b32.xlu0 %v3587_v55, %s3727_s29 }
0x1551   :  { %v2071_v22 = vpop.permute.xlu0 %2070 }
0x1552   :  { %v2073_v37 = vmul.f32 %v2071_v22, %v2068_v26 }
0x1554   :  { %v2075_v63 = vadd.f32 %v2074_v50, %v2073_v37 }
0x1556   :  { %2095 = vrot.lane.b32.xlu1 %v2075_v63, %s3727_s29 }
0x15c8   :  { %v2096_v8 = vpop.permute.xlu1 %2095 }
0x15c9   :  { %3050 = vmatmul.mubr.msk.f32.vlgmr.msra.gmra.mrb[46].mxu0 %vm575_vm1, %v2096_v8 }
0x15ca   :  { %3422 = vmatpush1.bf16.msra.mxu0 %v4441_v7  ;;  %2375 = vmatprep.mubr.f32.mxu0 %v3726_v38 }
0x15cb   :  { %3424 = vmatprep.subr.bf16.mxu0 %v4443_v59 }
0x15ce   :  { %3426 = vmatpush1.bf16.msra.mxu0 %v4460_v57 }
0x15cf   :  { %3428 = vmatprep.subr.bf16.mxu0 %v4464_v0 }
0x15d2   :  { %3430 = vmatpush1.bf16.msra.mxu0 %v4474_v35 }
0x15d3   :  { %3432 = vmatprep.subr.bf16.mxu0 %v4487_v15 }
0x15d6   :  { %3434 = vmatpush1.bf16.msra.mxu0 %v4495_v13 }
0x15d7   :  { %3452 = vmatprep.subr.bf16.mxu0 %v4430_v19 }
0x169c   :  { %v2165_v36 = vpop.f32.mrb[46].mxu0 }
0x169d   :  { %v2166_v17 = vadd.f32 %v2165_v36, %v4651_v24  ;;  %v2167_v53 = vpop.f32.mrb[47].mxu0 }
0x169e   :  { %v2168_v9 = vadd.f32 %v2167_v53, %v4674_v45 }
0x169f   :  { %v2170_v51 = vadd.f32 %v2166_v17, %v4576_v62 }
0x16a1   :  { %v3051_v14 = vmul.f32 -1.442695, %v2170_v51 }
0x16a3   :  { %3588 = vpow2.f32 %v3051_v14 }
0x16ad   :  { %v3589_v58 = vpop.eup %3588 }
0x16ae   :  { %v2174_v25 = vadd.f32 1.0, %v3589_v58 }
0x16b0   :  { %3590 = vrcp.f32 %v2174_v25 }
0x16ba   :  { %v3591_v32 = vpop.eup %3590 }
0x16bb   :  { %v2177_v62 = vmul.f32 %v3591_v32, %v2168_v9  ;;  %v2180_v11 = vsub.f32 1.0, %v3591_v32  ;;  %v2186_v54 = vmul.f32 %v3591_v32, %v2075_v63 }
0x16bd   :  { %v2178_v41 = vadd.f32 %v2177_v62, %v2093_v48 }
0x16bf   :  { %3592 = vtanh.f32 %v2178_v41 }
0x16c9   :  { %v3593_v2 = vpop.eup %3592 }
0x16ca   :  { %2182 = vrot.lane.b32.xlu0 %v3593_v2, %s3727_s29 }
0x173c   :  { %v2183_v10 = vpop.permute.xlu0 %2182 }
0x173d   :  { %v2185_v23 = vmul.f32 %v2183_v10, %v2180_v11 }
0x173f   :  { %v2187_v33 = vadd.f32 %v2186_v54, %v2185_v23 }
0x1741   :  { %2207 = vrot.lane.b32.xlu1 %v2187_v33, %s3727_s29 }
0x17b3   :  { %v2208_v52 = vpop.permute.xlu1 %2207 }
0x17b4   :  { %3052 = vmatmul.mubr.msk.f32.vlgmr.msra.gmra.mrb[38].mxu1 %vm575_vm1, %v2208_v52 }
0x17b5   :  { %3438 = vmatpush1.bf16.msra.mxu1 %v4441_v7  ;;  %2475 = vmatprep.mubr.f32.mxu1 %v3726_v38 }
0x17b6   :  { %3440 = vmatprep.subr.bf16.mxu1 %v4443_v59 }
0x17b9   :  { %3442 = vmatpush1.bf16.msra.mxu1 %v4460_v57 }
0x17ba   :  { %3444 = vmatprep.subr.bf16.mxu1 %v4464_v0 }
0x17bd   :  { %3446 = vmatpush1.bf16.msra.mxu1 %v4474_v35 }
0x17be   :  { %3448 = vmatprep.subr.bf16.mxu1 %v4487_v15 }
0x17c1   :  { %3450 = vmatpush1.bf16.msra.mxu1 %v4495_v13 }
0x17c2   :  { %3468 = vmatprep.subr.bf16.mxu1 %v4430_v19  ;;  %v2193_v19 = vsel %vm4125_vm3, %v4356_v1, %v4358_v5 }
0x17c3   :  { %v2205_v55 = vadd.f32 %v2203_v28, %v2193_v19 }
0x1887   :  { %v2277_v12 = vpop.f32.mrb[38].mxu1 }
0x1888   :  { %v2278_v4 = vadd.f32 %v2277_v12, %v4651_v24  ;;  %v2279_v21 = vpop.f32.mrb[39].mxu1 }
0x1889   :  { %v2280_v46 = vadd.f32 %v2279_v21, %v4674_v45 }
0x188a   :  { %v2282_v16 = vadd.f32 %v2278_v4, %v4555_v42 }
0x188c   :  { %v3053_v3 = vmul.f32 -1.442695, %v2282_v16 }
0x188e   :  { %3594 = vpow2.f32 %v3053_v3 }
0x1898   :  { %v3595_v44 = vpop.eup %3594 }
0x1899   :  { %v2286_v27 = vadd.f32 1.0, %v3595_v44 }
0x189b   :  { %3596 = vrcp.f32 %v2286_v27 }
0x18a5   :  { %v3597_v6 = vpop.eup %3596 }
0x18a6   :  { %v2289_v42 = vmul.f32 %v3597_v6, %v2280_v46  ;;  %v2292_v50 = vsub.f32 1.0, %v3597_v6  ;;  %v2298_v63 = vmul.f32 %v3597_v6, %v2187_v33 }
0x18a8   :  { %v2290_v26 = vadd.f32 %v2289_v42, %v2205_v55  ;;  %v3729_v42 = vmov 0.0|0.0  }
0x18aa   :  { %3598 = vtanh.f32 %v2290_v26 }
0x18b4   :  { %v3599_v22 = vpop.eup %3598 }
0x18b5   :  { %2294 = vrot.lane.b32.xlu0 %v3599_v22, %s3727_s29 }
0x1927   :  { %v2295_v37 = vpop.permute.xlu0 %2294 }
0x1928   :  { %v2297_v8 = vmul.f32 %v2295_v37, %v2292_v50 }
0x192a   :  { %v2299_v31 = vadd.f32 %v2298_v63, %v2297_v8  ;;  %v1468_v8 = vld [vmem:[%s4898_s11 + $0x8] sm:$0xff] }
0x192c   :  { %2307 = vrot.lane.b32.xlu1 %v2299_v31, %s3727_s29 }
0x199e   :  { %v2308_v39 = vpop.permute.xlu1 %2307 }
0x199f   :  { %3054 = vmatmul.mubr.msk.f32.vlgmr.msra.gmra.mrb[48].mxu0 %vm575_vm1, %v2308_v39  ;;  %v1469_v39 = vld [vmem:[%s4898_s11 + $0x10] sm:$0xff] }
0x19a0   :  { %3454 = vmatpush1.bf16.msra.mxu0 %v4441_v7  ;;  %2575 = vmatprep.mubr.f32.mxu0 %v3726_v38 }
0x19a1   :  { %3456 = vmatprep.subr.bf16.mxu0 %v4443_v59 }
0x19a4   :  { %3458 = vmatpush1.bf16.msra.mxu0 %v4460_v57 }
0x19a5   :  { %3460 = vmatprep.subr.bf16.mxu0 %v4464_v0 }
0x19a8   :  { %3462 = vmatpush1.bf16.msra.mxu0 %v4474_v35 }
0x19a9   :  { %3464 = vmatprep.subr.bf16.mxu0 %v4487_v15 }
0x19ac   :  { %3466 = vmatpush1.bf16.msra.mxu0 %v4495_v13 }
0x19ad   :  { %3483 = vmatprep.subr.bf16.mxu0 %v3729_v42 }
0x1a72   :  { %v2377_v30 = vpop.f32.mrb[48].mxu0 }
0x1a73   :  { %v2378_v1 = vadd.f32 %v2377_v30, %v4651_v24  ;;  %v2379_v5 = vpop.f32.mrb[49].mxu0  ;;  %v1470_v30 = vld [vmem:[%s4898_s11 + $0x18] sm:$0xff] }
0x1a74   :  { %v2380_v14 = vadd.f32 %v2379_v5, %v4674_v45  ;;  %v3499_v5 = vpack.c.bf16 %v1470_v30, %v1469_v39 }
0x1a75   :  { %v2382_v36 = vadd.f32 %v2378_v1, %v4562_v49 }
0x1a77   :  { %v3055_v17 = vmul.f32 -1.442695, %v2382_v36  ;;  %v1471_v36 = vld [vmem:[%s4898_s11 + $0x20] sm:$0xff] }
0x1a79   :  { %3600 = vpow2.f32 %v3055_v17  ;;  %v1472_v17 = vld [vmem:[%s4898_s11 + $0x28] sm:$0xff] }
0x1a83   :  { %v3601_v53 = vpop.eup %3600 }
0x1a84   :  { %v2386_v51 = vadd.f32 1.0, %v3601_v53  ;;  %v3502_v53 = vpack.c.bf16 %v1472_v17, %v1471_v36 }
0x1a86   :  { %3602 = vrcp.f32 %v2386_v51  ;;  %v1473_v51 = vld [vmem:[%s4898_s11 + $0x30] sm:$0xff] }
0x1a90   :  { %v3603_v58 = vpop.eup %3602 }
0x1a91   :  { %v2389_v25 = vmul.f32 %v3603_v58, %v2380_v14  ;;  %v2392_v32 = vsub.f32 1.0, %v3603_v58  ;;  %v2398_v48 = vmul.f32 %v3603_v58, %v2299_v31  ;;  %v1474_v14 = vld [vmem:[%s4898_s11 + $0x38] sm:$0xff] }
0x1a92   :  { %v3505_v58 = vpack.c.bf16 %v1474_v14, %v1473_v51 }
0x1a93   :  { %v2390_v20 = vadd.f32 %v2389_v25, %v4615_v29 }
0x1a95   :  { %3604 = vtanh.f32 %v2390_v20 }
0x1a9f   :  { %v3605_v9 = vpop.eup %3604 }
0x1aa0   :  { %2394 = vrot.lane.b32.xlu0 %v3605_v9, %s3727_s29 }
0x1b12   :  { %v2395_v43 = vpop.permute.xlu0 %2394 }
0x1b13   :  { %v2397_v62 = vmul.f32 %v2395_v43, %v2392_v32 }
0x1b15   :  { %v2399_v49 = vadd.f32 %v2398_v48, %v2397_v62 }
0x1b17   :  { %2407 = vrot.lane.b32.xlu1 %v2399_v49, %s3727_s29 }
0x1b89   :  { %v2408_v41 = vpop.permute.xlu1 %2407 }
0x1b8a   :  { %3056 = vmatmul.mubr.msk.f32.vlgmr.msra.gmra.mrb[40].mxu1 %vm575_vm1, %v2408_v41 }
0x1b8b   :  { %3470 = vmatpush1.bf16.msra.mxu1 %v4441_v7  ;;  %2675 = vmatprep.mubr.f32.mxu1 %v3726_v38 }
0x1b8c   :  { %3472 = vmatprep.subr.bf16.mxu1 %v4443_v59 }
0x1b8f   :  { %3474 = vmatpush1.bf16.msra.mxu1 %v4460_v57 }
0x1b90   :  { %3476 = vmatprep.subr.bf16.mxu1 %v4464_v0 }
0x1b93   :  { %3478 = vmatpush1.bf16.msra.mxu1 %v4474_v35 }
0x1b94   :  { %3480 = vmatprep.subr.bf16.mxu1 %v4487_v15 }
0x1b97   :  { %3482 = vmatpush1.bf16.msra.mxu1 %v4495_v13 }
0x1b98   :  { %3495 = vmatprep.subr.bf16.mxu1 %v3729_v42 }
0x1c5d   :  { %v2477_v29 = vpop.f32.mrb[40].mxu1 }
0x1c5e   :  { %v2478_v2 = vadd.f32 %v2477_v29, %v4651_v24  ;;  %v2479_v11 = vpop.f32.mrb[41].mxu1 }
0x1c5f   :  { %v2480_v57 = vadd.f32 %v2479_v11, %v4674_v45 }
0x1c60   :  { %v2482_v7 = vadd.f32 %v2478_v2, %v4583_v34 }
0x1c62   :  { %v3057_v10 = vmul.f32 -1.442695, %v2482_v7 }
0x1c64   :  { %3606 = vpow2.f32 %v3057_v10 }
0x1c6e   :  { %v3607_v54 = vpop.eup %3606 }
0x1c6f   :  { %v2486_v59 = vadd.f32 1.0, %v3607_v54  ;;  %v3066_v54 = vld [vmem:[%s4898_s11 + $0x60] sm:$0xff] }
0x1c71   :  { %3608 = vrcp.f32 %v2486_v59  ;;  %v3067_v59 = vld [vmem:[%s4898_s11 + $0x68] sm:$0xff] }
0x1c7b   :  { %v3609_v0 = vpop.eup %3608 }
0x1c7c   :  { %v2489_v23 = vmul.f32 %v3609_v0, %v2480_v57  ;;  %v2492_v13 = vsub.f32 1.0, %v3609_v0  ;;  %v2498_v52 = vmul.f32 %v3609_v0, %v2399_v49  ;;  %v3490_v57 = vpack.c.bf16 %v3067_v59, %v3066_v54 }
0x1c7e   :  { %v2490_v35 = vadd.f32 %v2489_v23, %v4630_v60  ;;  %v3068_v23 = vld [vmem:[%s4898_s11 + $0x70] sm:$0xff] }
0x1c80   :  { %3610 = vtanh.f32 %v2490_v35  ;;  %v3069_v35 = vld [vmem:[%s4898_s11 + $0x78] sm:$0xff] }
0x1c8a   :  { %v3611_v15 = vpop.eup %3610 }
0x1c8b   :  { %2494 = vrot.lane.b32.xlu0 %v3611_v15, %s3727_s29  ;;  %v3493_v15 = vpack.c.bf16 %v3069_v35, %v3068_v23 }
0x1cfd   :  { %v2495_v33 = vpop.permute.xlu0 %2494 }
0x1cfe   :  { %v2497_v12 = vmul.f32 %v2495_v33, %v2492_v13 }
0x1d00   :  { %v2499_v34 = vadd.f32 %v2498_v52, %v2497_v12 }
0x1d02   :  { %2507 = vrot.lane.b32.xlu1 %v2499_v34, %s3727_s29 }
0x1d74   :  { %v2508_v4 = vpop.permute.xlu1 %2507 }
0x1d75   :  { %3058 = vmatmul.mubr.msk.f32.vlgmr.msra.gmra.mrb[50].mxu0 %vm575_vm1, %v2508_v4 }
0x1d76   :  { %3166 = vmatprep.mubr.msk.f32.mxu0 %vm3730_vm5, %v3726_v38 }
0x1e48   :  { %v2577_v21 = vpop.f32.mrb[50].mxu0 }
0x1e49   :  { %v2578_v16 = vadd.f32 %v2577_v21, %v4651_v24  ;;  %v2579_v3 = vpop.f32.mrb[51].mxu0  ;;  %v2865_v21 = vld [vmem:[%s4900_s13] sm:$0xff] }
0x1e4a   :  { %v2580_v46 = vadd.f32 %v2579_v3, %v4674_v45 }
0x1e4b   :  { %v2582_v60 = vadd.f32 %v2578_v16, %v4608_v56  ;;  %v2866_v16 = vld [vmem:[%s4900_s13 + $0x8] sm:$0xff] }
0x1e4c   :  { %v3508_v3 = vpack.c.bf16 %v2866_v16, %v2865_v21 }
0x1e4d   :  { %v3059_v44 = vmul.f32 -1.442695, %v2582_v60  ;;  %v2867_v60 = vld [vmem:[%s4900_s13 + $0x10] sm:$0xff] }
0x1e4f   :  { %3612 = vpow2.f32 %v3059_v44 }
0x1e59   :  { %v3613_v27 = vpop.eup %3612 }
0x1e5a   :  { %v2586_v28 = vadd.f32 1.0, %v3613_v27 }
0x1e5c   :  { %3614 = vrcp.f32 %v2586_v28  ;;  %v3072_v28 = vld [vmem:[%s4899_s12] ss:$0 sm:$0xff] }
0x1e66   :  { %v3615_v6 = vpop.eup %3614 }
0x1e67   :  { %v2589_v19 = vmul.f32 %v3615_v6, %v2580_v46  ;;  %v2592_v56 = vsub.f32 1.0, %v3615_v6  ;;  %v2598_v50 = vmul.f32 %v3615_v6, %v2499_v34 }
0x1e69   :  { %v2590_v55 = vadd.f32 %v2589_v19, %v4645_v61  ;;  %v1467_v61 = vld [vmem:[%s4898_s11] sm:$0xff] }
0x1e6a   :  { %v3496_v31 = vpack.c.bf16 %v1468_v8, %v1467_v61 }
0x1e6b   :  { %3616 = vtanh.f32 %v2590_v55 }
0x1e75   :  { %v3617_v26 = vpop.eup %3616 }
0x1e76   :  { %2594 = vrot.lane.b32.xlu0 %v3617_v26, %s3727_s29 }
0x1ee8   :  { %v2595_v22 = vpop.permute.xlu0 %2594 }
0x1ee9   :  { %v2597_v37 = vmul.f32 %v2595_v22, %v2592_v56 }
0x1eeb   :  { %v4791_v63 = vadd.f32 %v2598_v50, %v2597_v37 }
0x1eed   :  { %2607 = vrot.lane.b32.xlu1 %v4791_v63, %s3727_s29 }
0x1f5f   :  { %v2608_v1 = vpop.permute.xlu1 %2607 }
0x1f60   :  { %3060 = vmatmul.mubr.msk.f32.vlgmr.msra.gmra.mrb[42].mxu1 %vm575_vm1, %v2608_v1 }
0x1f61   :  { %3497 = vmatpush3.bf16.msra.mxu1 %v3496_v31  ;;  %3185 = vmatprep.mubr.msk.f32.mxu1 %vm3730_vm5, %v3726_v38 }
0x1f62   :  { %3498 = vmatprep.subr.bf16.mxu1 %v3729_v42 }
0x1f65   :  { %3500 = vmatpush3.bf16.msra.mxu1 %v3499_v5 }
0x1f66   :  { %3501 = vmatprep.subr.bf16.mxu1 %v3729_v42 }
0x1f69   :  { %3503 = vmatpush3.bf16.msra.mxu1 %v3502_v53 }
0x1f6a   :  { %3504 = vmatprep.subr.bf16.mxu1 %v3729_v42 }
0x1f6d   :  { %3506 = vmatpush3.bf16.msra.mxu1 %v3505_v58 }
0x1f70   :  { %3186 = vmatmul.mubr.msk.f32.vlgmr.msra.gmra.mrb[44].mxu1 %vm575_vm1, %v4503_v40  ;;  %v3062_v40 = vld [vmem:[%s4898_s11 + $0x40] sm:$0xff] }
0x2033   :  { %v2677_v25 = vpop.f32.mrb[42].mxu1 }
0x2034   :  { %v2678_v20 = vadd.f32 %v2677_v25, %v4651_v24  ;;  %v2679_v9 = vpop.f32.mrb[43].mxu1  ;;  %v3063_v24 = vld [vmem:[%s4898_s11 + $0x48] sm:$0xff] }
0x2035   :  { %v2680_v29 = vadd.f32 %v2679_v9, %v4674_v45  ;;  %v3484_v10 = vpack.c.bf16 %v3063_v24, %v3062_v40  ;;  %v3065_v45 = vld [vmem:[%s4898_s11 + $0x58] sm:$0xff] }
0x2036   :  { %v2682_v32 = vadd.f32 %v2678_v20, %v4667_v18  ;;  %v3064_v18 = vld [vmem:[%s4898_s11 + $0x50] sm:$0xff] }
0x2037   :  { %3485 = vmatpush3.bf16.msra.mxu0 %v3484_v10 }
0x2038   :  { %v3061_v43 = vmul.f32 -1.442695, %v2682_v32  ;;  %3486 = vmatprep.subr.bf16.mxu0 %v3729_v42 }
0x203a   :  { %3618 = vpow2.f32 %v3061_v43 }
0x2043   :  { %v2852_v48 = vpop.f32.mrb[44].mxu1 }
0x2044   :  { %v3619_v62 = vpop.eup %3618  ;;  %v3187_v49 = vpop.f32.mrb[45].mxu1 }
0x2045   :  { %v2686_v41 = vadd.f32 1.0, %v3619_v62 }
0x2047   :  { %3620 = vrcp.f32 %v2686_v41 }
0x2051   :  { %v3621_v2 = vpop.eup %3620 }
0x2052   :  { %v2689_v11 = vmul.f32 %v3621_v2, %v2680_v29  ;;  %v2692_v13 = vsub.f32 1.0, %v3621_v2  ;;  %v2698_v52 = vmul.f32 %v3621_v2, %v4791_v63 }
0x2054   :  { %v2690_v7 = vadd.f32 %v2689_v11, %v4671_v47  ;;  %v3487_v47 = vpack.c.bf16 %v3065_v45, %v3064_v18 }
0x2056   :  { %3622 = vtanh.f32 %v2690_v7  ;;  %3488 = vmatpush3.bf16.msra.mxu0 %v3487_v47 }
0x2057   :  { %3489 = vmatprep.subr.bf16.mxu0 %v3729_v42 }
0x205a   :  { %3491 = vmatpush3.bf16.msra.mxu0 %v3490_v57 }
0x205b   :  { %3492 = vmatprep.subr.bf16.mxu0 %v3729_v42 }
0x205e   :  { %3494 = vmatpush3.bf16.msra.mxu0 %v3493_v15 }
0x205f   :  { %3507 = vmatprep.subr.bf16.mxu0 %v3729_v42 }
0x2060   :  { %v3623_v0 = vpop.eup %3622 }
0x2061   :  { %2694 = vrot.lane.b32.xlu0 %v3623_v0, %s3727_s29 }
0x20d3   :  { %v2695_v33 = vpop.permute.xlu0 %2694 }
0x20d4   :  { %v2697_v12 = vmul.f32 %v2695_v33, %v2692_v13 }
0x20d6   :  { %v2699_v34 = vadd.f32 %v2698_v52, %v2697_v12 }
0x20d8   :  { %2710 = vrot.lane.b32.xlu1 %v2699_v34, %s3727_s29 }
0x214a   :  { %v2711_v4 = vpop.permute.xlu1 %2710 }
0x214b   :  { %3167 = vmatmul.mubr.msk.f32.vlgmr.msra.gmra.mrb[52].mxu0 %vm575_vm1, %v2711_v4 }
0x214c   :  { %3196 = vmatprep.mubr.msk.f32.mxu0 %vm3730_vm5, %v3726_v38  ;;  %3509 = vmatpush3.bf16.msra.mxu0 %v3508_v3  ;;  %v2868_v38 = vld [vmem:[%s4900_s13 + $0x18] sm:$0xff] }
0x214d   :  { %3510 = vmatprep.subr.bf16.mxu0 %v3729_v42  ;;  %v3511_v44 = vpack.c.bf16 %v2868_v38, %v2867_v60  ;;  %v3073_v42 = vld [vmem:[#allocation5] ss:$0 sm:$0xff] }
0x2150   :  { %3512 = vmatpush3.bf16.msra.mxu0 %v3511_v44 }
0x221e   :  { %v2780_v27 = vpop.f32.mrb[52].mxu0 }
0x221f   :  { %v2853_v46 = vadd.f32 %v2852_v48, %v2780_v27  ;;  %v3168_v6 = vpop.f32.mrb[53].mxu0 }
0x2221   :  { %v2863_v19 = vadd.f32 %v3072_v28, %v2853_v46 }
0x2223   :  { %v2864_v55 = vmax.f32 %v2863_v19, 0.0 }
0x2225   :  { %3197 = vmatmul.mubr.msk.f32.vlgmr.msra.gmra.mrb[54].mxu0 %vm1504_vm4, %v2864_v55 }
0x22f8   :  { %v2945_v26 = vpop.f32.mrb[54].mxu0 }
0x22f9   :  { %v2946_v56 = vadd.f32 %v3073_v42, %v2945_v26  ;;  %v3198_v22 = vpop.f32.mrb[55].mxu0 }
0x22fb   :  { %2950 = vst.msk [vmem:[%s4902_s15] sm:$0xff] %vm2949_vm6, %v2946_v56 }
0x22fc   :  { %2955 = vsyncpa [#allocation7], 1 }
0x22fd   :  { %2956 = vsyncpa [#allocation9], 1 }
0x22fe   :  { %2957 = vsyncpa [#allocation12], 1 }

</bundles_post_ra>
